<compile_context>
chip_gen: v5e
topology: v5e:2x2
jax: 0.10.0
libtpu: 0.0.40
codegen_flags: <defaults>
</compile_context>

<pallas_src>
import functools

import jax
import jax.numpy as jnp
from jax import lax
from jax.experimental import pallas as pl
from jax.experimental.pallas import tpu as pltpu


_MX_DTYPE = jnp.bfloat16   # MXU operand dtype (f32 accumulation everywhere)


def _dot(a, b):
    return jnp.dot(a.astype(_MX_DTYPE), b.astype(_MX_DTYPE),
                   preferred_element_type=jnp.float32)


def _dotg(a, b, dims):
    return lax.dot_general(a.astype(_MX_DTYPE), b.astype(_MX_DTYPE), dims,
                           preferred_element_type=jnp.float32)


# --------------------------------------------------------------------------
# Fused Pallas kernel (one grid step == one batch element)
# --------------------------------------------------------------------------

def _timbre_fused_kernel(
    # activations
    mel_ref,
    # preblock
    pre_w_ref, pre_aff_ref,
    # SERes2Blocks (stacked over blocks along the leading dim)
    bpre_w_ref, bpre_aff_ref,
    res2_w_ref, res2_aff_ref,
    bpost_w_ref, bpost_aff_ref,
    se_w1_ref, se_b1_ref, se_w2_ref, se_b2_ref,
    # multi-layer feature aggregation (folded per block)
    mfa_w_ref, mfa_b_ref,
    # attentive statistics pooling + pool head
    asp_w1_ref, asp_b1_ref, asp_w2_ref, asp_b2_ref,
    pool_w_ref, pool_b_ref, pool_aff_ref,
    # timbre token bank
    query_ref,
    p1_wk_ref, p1_bk_ref, p1_wv_ref, p1_bv_ref,
    p1_wq_ref, p1_bq_ref, p1_wo_ref, p1_bo_ref,
    p2_wk_ref, p2_bk_ref, p2_wv_ref, p2_bv_ref,
    p2_wq_ref, p2_bq_ref, p2_wo_ref, p2_bo_ref,
    # outputs
    global_ref, local_ref,
    *, prekernels, channels, scale, kernels, dilations, heads, head_dim):

    width = channels // scale
    x_f32 = mel_ref[0]                                # [T, Cin] f32
    T = x_f32.shape[0]

    # -------- building blocks -------------------------------------------------
    def conv_k(xin, w_kcc, aff, K, dil):
        """'same'-padded dilated conv as a sum of K shifted matmuls.

        xin: [T, Cin] (any float); w_kcc: [K, Cin, Cout] bf16;
        aff: [3, Cout] f32 rows = (bias, bn_scale, bn_shift). ReLU then BN affine.
        """
        Cin = xin.shape[-1]
        pad = (K - 1) * dil // 2
        xbf = xin.astype(_MX_DTYPE)
        if pad:
            z = jnp.zeros((pad, Cin), _MX_DTYPE)
            xp = jnp.concatenate([z, xbf, z], axis=0)          # [T + 2*pad, Cin] bf16
        else:
            xp = xbf
        acc = jnp.dot(xp[0:T, :], w_kcc[0].astype(_MX_DTYPE),
                      preferred_element_type=jnp.float32)
        for k in range(1, K):
            acc = acc + jnp.dot(xp[k * dil:k * dil + T, :],
                                w_kcc[k].astype(_MX_DTYPE),
                                preferred_element_type=jnp.float32)
        y = jnp.maximum(acc + aff[0:1, :], 0.0)
        return y * aff[1:2, :] + aff[2:3, :]

    def conv1x1(xin, w, aff):
        """1x1 conv + bias + ReLU + BN affine."""
        y = jnp.maximum(_dot(xin, w) + aff[0:1, :], 0.0)
        return y * aff[1:2, :] + aff[2:3, :]

    # ---------------- preblock: Conv(prekernels) -> ReLU -> BN ---------------
    x = conv_k(x_f32, pre_w_ref[...], pre_aff_ref[...], K=prekernels, dil=1)
    x_bf = x.astype(_MX_DTYPE)

    # ---------------- SERes2Blocks + folded MFA accumulation -----------------
    mfa_acc = None
    for bi, dil in enumerate(dilations):
        inp = x
        h = conv1x1(x_bf, bpre_w_ref[bi], bpre_aff_ref[bi])      # [T, C] f32

        # Res2Block cascade, with the postblock 1x1 conv folded over chunks.
        rw = res2_w_ref[bi]                                      # [scale-1, K, w, w]
        raff = res2_aff_ref[bi]                                  # [scale-1, 3, w]
        bw = bpost_w_ref[bi]                                     # [scale, w, C]
        baff = bpost_aff_ref[bi]                                 # [3, C]

        straight = h[:, 0:width]
        pacc = _dot(straight, bw[0])                             # [T, C] f32
        base = None
        for si in range(scale - 1):
            chunk = h[:, (si + 1) * width:(si + 2) * width]
            cin = chunk if base is None else chunk + base        # skip zero-add at si==0
            base = conv_k(cin, rw[si], raff[si], K=kernels, dil=dil)
            pacc = pacc + _dot(base, bw[si + 1])
        hpost = jnp.maximum(pacc + baff[0:1, :], 0.0) * baff[1:2, :] + baff[2:3, :]

        # Squeeze-Excitation + residual
        m = jnp.mean(hpost, axis=0, keepdims=True)               # [1, C]
        e1 = jnp.maximum(_dot(m, se_w1_ref[bi]) + se_b1_ref[bi], 0.0)
        gate = jax.nn.sigmoid(_dot(e1, se_w2_ref[bi]) + se_b2_ref[bi])
        x = hpost * gate + inp
        x_bf = x.astype(_MX_DTYPE)                               # reused next block

        # MFA contribution of this block (folds the big concat + 1x1 conv).
        contrib = jnp.dot(x_bf, mfa_w_ref[bi].astype(_MX_DTYPE),
                          preferred_element_type=jnp.float32)
        mfa_acc = contrib if mfa_acc is None else mfa_acc + contrib

    mfa = jnp.maximum(mfa_acc + mfa_b_ref[...], 0.0)             # [T, H] f32
    mfa_bf = mfa.astype(_MX_DTYPE)                               # hoisted bf16 cast

    # ---------------- attentive statistics pooling ---------------------------
    a = jnp.tanh(_dot(mfa_bf, asp_w1_ref[...]) + asp_b1_ref[...])
    logits = _dot(a, asp_w2_ref[...]) + asp_b2_ref[...]          # [T, H]
    mx = jnp.max(logits, axis=0, keepdims=True)
    e = jnp.exp(logits - mx)
    wgt = e * pl.reciprocal(jnp.sum(e, axis=0, keepdims=True), approx=True)
    wm = wgt * mfa                                               # reused for both moments
    mean = jnp.sum(wm, axis=0, keepdims=True)                    # [1, H]
    var = jnp.maximum(jnp.sum(wm * mfa, axis=0, keepdims=True) - mean * mean, 0.0)
    stats = jnp.concatenate([mean, jnp.sqrt(var + 1e-7)], axis=-1)   # [1, 2H]

    # ---------------- pool head: (BN folded) Linear -> BN -> L2 normalize ----
    pooled = _dot(stats, pool_w_ref[...]) + pool_b_ref[...]      # [1, out]
    paff = pool_aff_ref[...]
    pooled = pooled * paff[0:1, :] + paff[1:2, :]
    inv_nrm = lax.rsqrt(jnp.maximum(
        jnp.sum(pooled * pooled, axis=-1, keepdims=True), 1e-24))
    global_ref[0] = pooled * inv_nrm

    # ---------------- timbre token bank: two cross-attentions ----------------
    inv_sqrt_d = head_dim ** -0.5

    def mha(kv_bf, q_in, wk, bk, wv, bv, wq, bq, wo, bo):
        """Batched-projection MHA; only score/softmax is per-head.

        kv_bf: [S, Hin] bf16; q_in: [Tq, Cq] f32. Returns [Tq, Cout] f32.
        """
        Kp = (_dot(kv_bf, wk[...]) + bk[...]).astype(_MX_DTYPE)  # [S, lat]
        Vp = (_dot(kv_bf, wv[...]) + bv[...]).astype(_MX_DTYPE)  # [S, lat]
        Qp = (_dot(q_in, wq[...]) + bq[...]).astype(_MX_DTYPE)   # [Tq, lat]
        outs = []
        for hh in range(heads):
            lo, hi = hh * head_dim, (hh + 1) * head_dim
            Qh, Kh, Vh = Qp[:, lo:hi], Kp[:, lo:hi], Vp[:, lo:hi]
            # score[t, s] = Qh[t] . Kh[s]  -> softmax over lane axis (S)
            score = _dotg(Qh, Kh, (((1,), (1,)), ((), ()))) * inv_sqrt_d   # [Tq, S]
            smx = jnp.max(score, axis=-1, keepdims=True)
            se_ = jnp.exp(score - smx)
            w_ = se_ * pl.reciprocal(jnp.sum(se_, axis=-1, keepdims=True), approx=True)
            outs.append(_dot(w_, Vh))                             # [Tq, d]
        o = jnp.concatenate(outs, axis=-1)                        # [Tq, lat]
        return _dot(o, wo[...]) + bo[...]                         # [Tq, Cout]

    query = query_ref[...]                                        # [tokens, latent]
    q1 = mha(mfa_bf, query,
             p1_wk_ref, p1_bk_ref, p1_wv_ref, p1_bv_ref,
             p1_wq_ref, p1_bq_ref, p1_wo_ref, p1_bo_ref) + query
    local = mha(mfa_bf, q1,
                p2_wk_ref, p2_bk_ref, p2_wv_ref, p2_bv_ref,
                p2_wq_ref, p2_bq_ref, p2_wo_ref, p2_bo_ref)       # [tokens, timbre]
    local_ref[0] = local


# --------------------------------------------------------------------------
# Wrapper
# --------------------------------------------------------------------------

def _const_spec(arr):
    """Constant-index, single-buffered BlockSpec for a resident weight."""
    nd = arr.ndim
    return pl.BlockSpec(arr.shape, lambda i, _nd=nd: (0,) * _nd,
                        pipeline_mode=pl.Buffered(1))


def timbre_encoder_forward(mel_nct, params, cfg):
    """mel_nct: [B, in_channels, T] (PyTorch NCT).

    Returns (global [B, out_channels], local [B, timbre, tokens])."""
    assert cfg["prekernels"] % 2 == 1 and cfg["kernels"] % 2 == 1
    assert cfg["channels"] % cfg["scale"] == 0
    assert cfg["latent"] % cfg["heads"] == 0

    B, Cin, T = mel_nct.shape
    tokens, timbre, out_ch = cfg["tokens"], cfg["timbre"], cfg["out_channels"]
    mel = jnp.transpose(mel_nct, (0, 2, 1)).astype(jnp.float32)   # [B, T, Cin]

    def bf(x):
        return x.astype(_MX_DTYPE)

    p = params
    m1, m2 = p["mha1"], p["mha2"]
    weights = [
        bf(p["pre_w"]), p["pre_aff"],
        bf(p["bpre_w"]), p["bpre_aff"],
        bf(p["res2_w"]), p["res2_aff"],
        bf(p["bpost_w"]), p["bpost_aff"],
        bf(p["se_w1"]), p["se_b1"], bf(p["se_w2"]), p["se_b2"],
        bf(p["mfa_w"]), p["mfa_b"],
        bf(p["asp_w1"]), p["asp_b1"], bf(p["asp_w2"]), p["asp_b2"],
        bf(p["pool_w"]), p["pool_b"], p["pool_aff"],
        p["query"],
        bf(m1["wk"]), m1["bk"], bf(m1["wv"]), m1["bv"],
        bf(m1["wq"]), m1["bq"], bf(m1["wo"]), m1["bo"],
        bf(m2["wk"]), m2["bk"], bf(m2["wv"]), m2["bv"],
        bf(m2["wq"]), m2["bq"], bf(m2["wo"]), m2["bo"],
    ]

    kernel = functools.partial(
        _timbre_fused_kernel,
        prekernels=cfg["prekernels"], channels=cfg["channels"],
        scale=cfg["scale"], kernels=cfg["kernels"],
        dilations=tuple(cfg["dilations"]), heads=cfg["heads"],
        head_dim=cfg["latent"] // cfg["heads"])

    global_, local = pl.pallas_call(
        kernel,
        out_shape=(jax.ShapeDtypeStruct((B, 1, out_ch), jnp.float32),
                   jax.ShapeDtypeStruct((B, tokens, timbre), jnp.float32)),
        grid=(B,),
        in_specs=[pl.BlockSpec((1, T, Cin), lambda i: (i, 0, 0))]
                 + [_const_spec(a) for a in weights],
        out_specs=(pl.BlockSpec((1, 1, out_ch), lambda i: (i, 0, 0)),
                   pl.BlockSpec((1, tokens, timbre), lambda i: (i, 0, 0))),
        compiler_params=pltpu.CompilerParams(
            dimension_semantics=("parallel",),
            vmem_limit_bytes=48 * 1024 * 1024),
    )(mel, *weights)

    global_ = global_[:, 0, :]
    local = jnp.transpose(local, (0, 2, 1))                       # [B, timbre, tokens]
    return global_, local


# --------------------------------------------------------------------------
# Deterministic parameter initialization (fused-kernel layouts)
# --------------------------------------------------------------------------

class _KeyGen:
    def __init__(self, seed):
        self._key = jax.random.PRNGKey(seed)

    def __call__(self):
        self._key, sub = jax.random.split(self._key)
        return sub


def init_params(cfg, seed=0):
    kg = _KeyGen(seed)

    def w(shape, s=0.1):
        return s * jax.random.normal(kg(), shape, jnp.float32)

    def bn(c):
        gamma = 1.0 + 0.1 * jax.random.normal(kg(), (c,), jnp.float32)
        beta = 0.1 * jax.random.normal(kg(), (c,), jnp.float32)
        rm = 0.1 * jax.random.normal(kg(), (c,), jnp.float32)
        rv = 1.0 + 0.1 * jnp.abs(jax.random.normal(kg(), (c,), jnp.float32))
        s = gamma / jnp.sqrt(rv + 1e-5)
        t = beta - rm * s
        return s, t

    def conv_aff(cout):       # rows: (bias, bn_scale, bn_shift)
        b = w((cout,), 0.05)
        s, t = bn(cout)
        return jnp.stack([b, s, t], axis=0)

    C, H = cfg["channels"], cfg["hidden_channels"]
    lat, btl = cfg["latent"], cfg["bottleneck"]
    width = C // cfg["scale"]
    K, nb = cfg["kernels"], len(cfg["dilations"])

    params = {}
    # preblock conv weight: [K, Cin, C]
    params["pre_w"] = w((cfg["prekernels"], cfg["in_channels"], C))
    params["pre_aff"] = conv_aff(C)

    bpre_w, bpre_aff, res2_w, res2_aff = [], [], [], []
    bpost_w, bpost_aff = [], []
    se_w1, se_b1, se_w2, se_b2 = [], [], [], []
    for _ in range(nb):
        bpre_w.append(w((C, C)))
        bpre_aff.append(conv_aff(C))
        res2_w.append(jnp.stack([w((K, width, width)) for _ in range(cfg["scale"] - 1)]))
        res2_aff.append(jnp.stack([conv_aff(width) for _ in range(cfg["scale"] - 1)]))
        # postblock 1x1 conv split per Res2 chunk: [scale, width, C]
        bpost_w.append(w((cfg["scale"], width, C)))
        bpost_aff.append(conv_aff(C))
        se_w1.append(w((C, btl)))
        se_b1.append(w((1, btl), 0.05))
        se_w2.append(w((btl, C)))
        se_b2.append(w((1, C), 0.05))
    params["bpre_w"] = jnp.stack(bpre_w)
    params["bpre_aff"] = jnp.stack(bpre_aff)
    params["res2_w"] = jnp.stack(res2_w)
    params["res2_aff"] = jnp.stack(res2_aff)
    params["bpost_w"] = jnp.stack(bpost_w)
    params["bpost_aff"] = jnp.stack(bpost_aff)
    params["se_w1"] = jnp.stack(se_w1)
    params["se_b1"] = jnp.stack(se_b1)
    params["se_w2"] = jnp.stack(se_w2)
    params["se_b2"] = jnp.stack(se_b2)

    # MFA 1x1 conv split per block: [nb, C, H]
    params["mfa_w"] = w((nb, C, H))
    params["mfa_b"] = w((1, H), 0.05)

    params["asp_w1"] = w((H, btl))
    params["asp_b1"] = w((1, btl), 0.05)
    params["asp_w2"] = w((btl, H))
    params["asp_b2"] = w((1, H), 0.05)

    # pool head: fold BN(2H) into Linear(2H, out); trailing BN(out) as affine rows.
    s1, t1 = bn(2 * H)
    Wl = w((2 * H, cfg["out_channels"]))
    bl = w((cfg["out_channels"],), 0.05)
    s2, t2 = bn(cfg["out_channels"])
    params["pool_w"] = s1[:, None] * Wl
    params["pool_b"] = (t1 @ Wl + bl)[None, :]
    params["pool_aff"] = jnp.stack([s2, t2], axis=0)

    # timbre query stored channels-last: [tokens, latent]
    params["query"] = jax.random.normal(kg(), (cfg["tokens"], lat), jnp.float32)

    def mha_params(ck, cq, cout):
        return {"wk": w((ck, lat)), "bk": w((1, lat), 0.05),
                "wv": w((ck, lat)), "bv": w((1, lat), 0.05),
                "wq": w((cq, lat)), "bq": w((1, lat), 0.05),
                "wo": w((lat, cout)), "bo": w((1, cout), 0.05)}

    params["mha1"] = mha_params(H, lat, lat)
    params["mha2"] = mha_params(H, lat, cfg["timbre"])
    return params


# --------------------------------------------------------------------------
# Main
# --------------------------------------------------------------------------

if __name__ == "__main__":
    cfg = dict(in_channels=16, out_channels=32, channels=32, prekernels=5,
               scale=4, kernels=3, dilations=[2, 3], bottleneck=16,
               hidden_channels=64, latent=32, timbre=32, tokens=8, heads=4)
    params = init_params(cfg, seed=0)

    B, T = 2, 16
    mel = jax.random.normal(jax.random.PRNGKey(0),
                            (B, cfg["in_channels"], T), jnp.float32)

    fwd = jax.jit(functools.partial(timbre_encoder_forward, cfg=cfg))
    global_, local = fwd(mel, params)
    jax.block_until_ready((global_, local))

    assert global_.shape == (B, cfg["out_channels"])
    assert local.shape == (B, cfg["timbre"], cfg["tokens"])
    assert bool(jnp.all(jnp.isfinite(global_))) and bool(jnp.all(jnp.isfinite(local)))
    print("KERNEL_OK")
</pallas_src>

<mosaic_0001>
module attributes {stable_mosaic.version = 11 : i64} {
  func.func @_timbre_fused_kernel(%arg0: i32, %arg1: memref<1x16x16xf32, #tpu.memory_space<vmem>>, %arg2: memref<5x16x32xbf16, #tpu.memory_space<vmem>>, %arg3: memref<3x32xf32, #tpu.memory_space<vmem>>, %arg4: memref<2x32x32xbf16, #tpu.memory_space<vmem>>, %arg5: memref<2x3x32xf32, #tpu.memory_space<vmem>>, %arg6: memref<2x3x3x8x8xbf16, #tpu.memory_space<vmem>>, %arg7: memref<2x3x3x8xf32, #tpu.memory_space<vmem>>, %arg8: memref<2x4x8x32xbf16, #tpu.memory_space<vmem>>, %arg9: memref<2x3x32xf32, #tpu.memory_space<vmem>>, %arg10: memref<2x32x16xbf16, #tpu.memory_space<vmem>>, %arg11: memref<2x1x16xf32, #tpu.memory_space<vmem>>, %arg12: memref<2x16x32xbf16, #tpu.memory_space<vmem>>, %arg13: memref<2x1x32xf32, #tpu.memory_space<vmem>>, %arg14: memref<2x32x64xbf16, #tpu.memory_space<vmem>>, %arg15: memref<1x64xf32, #tpu.memory_space<vmem>>, %arg16: memref<64x16xbf16, #tpu.memory_space<vmem>>, %arg17: memref<1x16xf32, #tpu.memory_space<vmem>>, %arg18: memref<16x64xbf16, #tpu.memory_space<vmem>>, %arg19: memref<1x64xf32, #tpu.memory_space<vmem>>, %arg20: memref<128x32xbf16, #tpu.memory_space<vmem>>, %arg21: memref<1x32xf32, #tpu.memory_space<vmem>>, %arg22: memref<2x32xf32, #tpu.memory_space<vmem>>, %arg23: memref<8x32xf32, #tpu.memory_space<vmem>>, %arg24: memref<64x32xbf16, #tpu.memory_space<vmem>>, %arg25: memref<1x32xf32, #tpu.memory_space<vmem>>, %arg26: memref<64x32xbf16, #tpu.memory_space<vmem>>, %arg27: memref<1x32xf32, #tpu.memory_space<vmem>>, %arg28: memref<32x32xbf16, #tpu.memory_space<vmem>>, %arg29: memref<1x32xf32, #tpu.memory_space<vmem>>, %arg30: memref<32x32xbf16, #tpu.memory_space<vmem>>, %arg31: memref<1x32xf32, #tpu.memory_space<vmem>>, %arg32: memref<64x32xbf16, #tpu.memory_space<vmem>>, %arg33: memref<1x32xf32, #tpu.memory_space<vmem>>, %arg34: memref<64x32xbf16, #tpu.memory_space<vmem>>, %arg35: memref<1x32xf32, #tpu.memory_space<vmem>>, %arg36: memref<32x32xbf16, #tpu.memory_space<vmem>>, %arg37: memref<1x32xf32, #tpu.memory_space<vmem>>, %arg38: memref<32x32xbf16, #tpu.memory_space<vmem>>, %arg39: memref<1x32xf32, #tpu.memory_space<vmem>>, %arg40: memref<1x1x32xf32, #tpu.memory_space<vmem>>, %arg41: memref<1x8x32xf32, #tpu.memory_space<vmem>>) attributes {dimension_semantics = [#tpu.dimension_semantics<parallel>], iteration_bounds = array<i64: 2>, scalar_prefetch = 0 : i64, scratch_operands = 0 : i64, tpu.core_type = #tpu.core_type<tc>, window_params = [{transform_indices = @transform_0, window_bounds = array<i64: 1, 16, 16>}, {pipeline_mode = #tpu.pipeline_mode<synchronous>, transform_indices = @transform_1, window_bounds = array<i64: 5, 16, 32>}, {pipeline_mode = #tpu.pipeline_mode<synchronous>, transform_indices = @transform_2, window_bounds = array<i64: 3, 32>}, {pipeline_mode = #tpu.pipeline_mode<synchronous>, transform_indices = @transform_3, window_bounds = array<i64: 2, 32, 32>}, {pipeline_mode = #tpu.pipeline_mode<synchronous>, transform_indices = @transform_4, window_bounds = array<i64: 2, 3, 32>}, {pipeline_mode = #tpu.pipeline_mode<synchronous>, transform_indices = @transform_5, window_bounds = array<i64: 2, 3, 3, 8, 8>}, {pipeline_mode = #tpu.pipeline_mode<synchronous>, transform_indices = @transform_6, window_bounds = array<i64: 2, 3, 3, 8>}, {pipeline_mode = #tpu.pipeline_mode<synchronous>, transform_indices = @transform_7, window_bounds = array<i64: 2, 4, 8, 32>}, {pipeline_mode = #tpu.pipeline_mode<synchronous>, transform_indices = @transform_8, window_bounds = array<i64: 2, 3, 32>}, {pipeline_mode = #tpu.pipeline_mode<synchronous>, transform_indices = @transform_9, window_bounds = array<i64: 2, 32, 16>}, {pipeline_mode = #tpu.pipeline_mode<synchronous>, transform_indices = @transform_10, window_bounds = array<i64: 2, 1, 16>}, {pipeline_mode = #tpu.pipeline_mode<synchronous>, transform_indices = @transform_11, window_bounds = array<i64: 2, 16, 32>}, {pipeline_mode = #tpu.pipeline_mode<synchronous>, transform_indices = @transform_12, window_bounds = array<i64: 2, 1, 32>}, {pipeline_mode = #tpu.pipeline_mode<synchronous>, transform_indices = @transform_13, window_bounds = array<i64: 2, 32, 64>}, {pipeline_mode = #tpu.pipeline_mode<synchronous>, transform_indices = @transform_14, window_bounds = array<i64: 1, 64>}, {pipeline_mode = #tpu.pipeline_mode<synchronous>, transform_indices = @transform_15, window_bounds = array<i64: 64, 16>}, {pipeline_mode = #tpu.pipeline_mode<synchronous>, transform_indices = @transform_16, window_bounds = array<i64: 1, 16>}, {pipeline_mode = #tpu.pipeline_mode<synchronous>, transform_indices = @transform_17, window_bounds = array<i64: 16, 64>}, {pipeline_mode = #tpu.pipeline_mode<synchronous>, transform_indices = @transform_18, window_bounds = array<i64: 1, 64>}, {pipeline_mode = #tpu.pipeline_mode<synchronous>, transform_indices = @transform_19, window_bounds = array<i64: 128, 32>}, {pipeline_mode = #tpu.pipeline_mode<synchronous>, transform_indices = @transform_20, window_bounds = array<i64: 1, 32>}, {pipeline_mode = #tpu.pipeline_mode<synchronous>, transform_indices = @transform_21, window_bounds = array<i64: 2, 32>}, {pipeline_mode = #tpu.pipeline_mode<synchronous>, transform_indices = @transform_22, window_bounds = array<i64: 8, 32>}, {pipeline_mode = #tpu.pipeline_mode<synchronous>, transform_indices = @transform_23, window_bounds = array<i64: 64, 32>}, {pipeline_mode = #tpu.pipeline_mode<synchronous>, transform_indices = @transform_24, window_bounds = array<i64: 1, 32>}, {pipeline_mode = #tpu.pipeline_mode<synchronous>, transform_indices = @transform_25, window_bounds = array<i64: 64, 32>}, {pipeline_mode = #tpu.pipeline_mode<synchronous>, transform_indices = @transform_26, window_bounds = array<i64: 1, 32>}, {pipeline_mode = #tpu.pipeline_mode<synchronous>, transform_indices = @transform_27, window_bounds = array<i64: 32, 32>}, {pipeline_mode = #tpu.pipeline_mode<synchronous>, transform_indices = @transform_28, window_bounds = array<i64: 1, 32>}, {pipeline_mode = #tpu.pipeline_mode<synchronous>, transform_indices = @transform_29, window_bounds = array<i64: 32, 32>}, {pipeline_mode = #tpu.pipeline_mode<synchronous>, transform_indices = @transform_30, window_bounds = array<i64: 1, 32>}, {pipeline_mode = #tpu.pipeline_mode<synchronous>, transform_indices = @transform_31, window_bounds = array<i64: 64, 32>}, {pipeline_mode = #tpu.pipeline_mode<synchronous>, transform_indices = @transform_32, window_bounds = array<i64: 1, 32>}, {pipeline_mode = #tpu.pipeline_mode<synchronous>, transform_indices = @transform_33, window_bounds = array<i64: 64, 32>}, {pipeline_mode = #tpu.pipeline_mode<synchronous>, transform_indices = @transform_34, window_bounds = array<i64: 1, 32>}, {pipeline_mode = #tpu.pipeline_mode<synchronous>, transform_indices = @transform_35, window_bounds = array<i64: 32, 32>}, {pipeline_mode = #tpu.pipeline_mode<synchronous>, transform_indices = @transform_36, window_bounds = array<i64: 1, 32>}, {pipeline_mode = #tpu.pipeline_mode<synchronous>, transform_indices = @transform_37, window_bounds = array<i64: 32, 32>}, {pipeline_mode = #tpu.pipeline_mode<synchronous>, transform_indices = @transform_38, window_bounds = array<i64: 1, 32>}, {transform_indices = @transform_39, window_bounds = array<i64: 1, 1, 32>}, {transform_indices = @transform_40, window_bounds = array<i64: 1, 8, 32>}]} {
    %c0 = arith.constant 0 : index
    %c0_0 = arith.constant 0 : index
    %c0_1 = arith.constant 0 : index
    %0 = vector.load %arg1[%c0, %c0_0, %c0_1] : memref<1x16x16xf32, #tpu.memory_space<vmem>>, vector<1x16x16xf32>
    %1 = vector.shape_cast %0 : vector<1x16x16xf32> to vector<16x16xf32>
    %c0_2 = arith.constant 0 : index
    %c0_3 = arith.constant 0 : index
    %c0_4 = arith.constant 0 : index
    %2 = vector.load %arg2[%c0_2, %c0_3, %c0_4] : memref<5x16x32xbf16, #tpu.memory_space<vmem>>, vector<5x16x32xbf16>
    %c0_5 = arith.constant 0 : index
    %c0_6 = arith.constant 0 : index
    %3 = vector.load %arg3[%c0_5, %c0_6] : memref<3x32xf32, #tpu.memory_space<vmem>>, vector<3x32xf32>
    %4 = arith.truncf %1 : vector<16x16xf32> to vector<16x16xbf16>
    %cst = arith.constant 0.000000e+00 : bf16
    %5 = vector.broadcast %cst : bf16 to vector<2x16xbf16>
    %6 = tpu.concatenate %5, %4, %5 in 0 : vector<2x16xbf16>, vector<16x16xbf16>, vector<2x16xbf16> -> vector<20x16xbf16>
    %7 = vector.extract_strided_slice %6 {offsets = [0, 0], sizes = [16, 16], strides = [1, 1]} : vector<20x16xbf16> to vector<16x16xbf16>
    %8 = vector.extract_strided_slice %2 {offsets = [0, 0, 0], sizes = [1, 16, 32], strides = [1, 1, 1]} : vector<5x16x32xbf16> to vector<1x16x32xbf16>
    %9 = vector.shape_cast %8 : vector<1x16x32xbf16> to vector<16x32xbf16>
    %cst_7 = arith.constant dense<0.000000e+00> : vector<16x32xf32>
    %10 = tpu.matmul %7, %9, %cst_7 {dimension_numbers = #tpu.dot_dimension_numbers<[1], [0], [0], [1], [0, 0, 1, 1], [], []>} : vector<16x16xbf16>, vector<16x32xbf16>, vector<16x32xf32> -> vector<16x32xf32>
    %11 = vector.extract_strided_slice %6 {offsets = [1, 0], sizes = [16, 16], strides = [1, 1]} : vector<20x16xbf16> to vector<16x16xbf16>
    %12 = vector.extract_strided_slice %2 {offsets = [1, 0, 0], sizes = [1, 16, 32], strides = [1, 1, 1]} : vector<5x16x32xbf16> to vector<1x16x32xbf16>
    %13 = vector.shape_cast %12 : vector<1x16x32xbf16> to vector<16x32xbf16>
    %cst_8 = arith.constant dense<0.000000e+00> : vector<16x32xf32>
    %14 = tpu.matmul %11, %13, %cst_8 {dimension_numbers = #tpu.dot_dimension_numbers<[1], [0], [0], [1], [0, 0, 1, 1], [], []>} : vector<16x16xbf16>, vector<16x32xbf16>, vector<16x32xf32> -> vector<16x32xf32>
    %15 = arith.addf %10, %14 : vector<16x32xf32>
    %16 = vector.extract_strided_slice %6 {offsets = [2, 0], sizes = [16, 16], strides = [1, 1]} : vector<20x16xbf16> to vector<16x16xbf16>
    %17 = vector.extract_strided_slice %2 {offsets = [2, 0, 0], sizes = [1, 16, 32], strides = [1, 1, 1]} : vector<5x16x32xbf16> to vector<1x16x32xbf16>
    %18 = vector.shape_cast %17 : vector<1x16x32xbf16> to vector<16x32xbf16>
    %cst_9 = arith.constant dense<0.000000e+00> : vector<16x32xf32>
    %19 = tpu.matmul %16, %18, %cst_9 {dimension_numbers = #tpu.dot_dimension_numbers<[1], [0], [0], [1], [0, 0, 1, 1], [], []>} : vector<16x16xbf16>, vector<16x32xbf16>, vector<16x32xf32> -> vector<16x32xf32>
    %20 = arith.addf %15, %19 : vector<16x32xf32>
    %21 = vector.extract_strided_slice %6 {offsets = [3, 0], sizes = [16, 16], strides = [1, 1]} : vector<20x16xbf16> to vector<16x16xbf16>
    %22 = vector.extract_strided_slice %2 {offsets = [3, 0, 0], sizes = [1, 16, 32], strides = [1, 1, 1]} : vector<5x16x32xbf16> to vector<1x16x32xbf16>
    %23 = vector.shape_cast %22 : vector<1x16x32xbf16> to vector<16x32xbf16>
    %cst_10 = arith.constant dense<0.000000e+00> : vector<16x32xf32>
    %24 = tpu.matmul %21, %23, %cst_10 {dimension_numbers = #tpu.dot_dimension_numbers<[1], [0], [0], [1], [0, 0, 1, 1], [], []>} : vector<16x16xbf16>, vector<16x32xbf16>, vector<16x32xf32> -> vector<16x32xf32>
    %25 = arith.addf %20, %24 : vector<16x32xf32>
    %26 = vector.extract_strided_slice %6 {offsets = [4, 0], sizes = [16, 16], strides = [1, 1]} : vector<20x16xbf16> to vector<16x16xbf16>
    %27 = vector.extract_strided_slice %2 {offsets = [4, 0, 0], sizes = [1, 16, 32], strides = [1, 1, 1]} : vector<5x16x32xbf16> to vector<1x16x32xbf16>
    %28 = vector.shape_cast %27 : vector<1x16x32xbf16> to vector<16x32xbf16>
    %cst_11 = arith.constant dense<0.000000e+00> : vector<16x32xf32>
    %29 = tpu.matmul %26, %28, %cst_11 {dimension_numbers = #tpu.dot_dimension_numbers<[1], [0], [0], [1], [0, 0, 1, 1], [], []>} : vector<16x16xbf16>, vector<16x32xbf16>, vector<16x32xf32> -> vector<16x32xf32>
    %30 = arith.addf %25, %29 : vector<16x32xf32>
    %31 = vector.extract_strided_slice %3 {offsets = [0, 0], sizes = [1, 32], strides = [1, 1]} : vector<3x32xf32> to vector<1x32xf32>
    %32 = vector.broadcast %31 : vector<1x32xf32> to vector<16x32xf32>
    %33 = arith.addf %30, %32 : vector<16x32xf32>
    %cst_12 = arith.constant 0.000000e+00 : f32
    %34 = vector.broadcast %cst_12 : f32 to vector<16x32xf32>
    %35 = arith.maximumf %33, %34 : vector<16x32xf32>
    %36 = vector.extract_strided_slice %3 {offsets = [1, 0], sizes = [1, 32], strides = [1, 1]} : vector<3x32xf32> to vector<1x32xf32>
    %37 = vector.broadcast %36 : vector<1x32xf32> to vector<16x32xf32>
    %38 = arith.mulf %35, %37 : vector<16x32xf32>
    %39 = vector.extract_strided_slice %3 {offsets = [2, 0], sizes = [1, 32], strides = [1, 1]} : vector<3x32xf32> to vector<1x32xf32>
    %40 = vector.broadcast %39 : vector<1x32xf32> to vector<16x32xf32>
    %41 = arith.addf %38, %40 : vector<16x32xf32>
    %42 = arith.truncf %41 : vector<16x32xf32> to vector<16x32xbf16>
    %c0_13 = arith.constant 0 : index
    %c0_14 = arith.constant 0 : index
    %c0_15 = arith.constant 0 : index
    %43 = vector.load %arg4[%c0_13, %c0_14, %c0_15] : memref<2x32x32xbf16, #tpu.memory_space<vmem>>, vector<1x32x32xbf16>
    %44 = vector.shape_cast %43 : vector<1x32x32xbf16> to vector<32x32xbf16>
    %c0_16 = arith.constant 0 : index
    %c0_17 = arith.constant 0 : index
    %c0_18 = arith.constant 0 : index
    %45 = vector.load %arg5[%c0_16, %c0_17, %c0_18] : memref<2x3x32xf32, #tpu.memory_space<vmem>>, vector<1x3x32xf32>
    %46 = vector.shape_cast %45 : vector<1x3x32xf32> to vector<3x32xf32>
    %cst_19 = arith.constant dense<0.000000e+00> : vector<16x32xf32>
    %47 = tpu.matmul %42, %44, %cst_19 {dimension_numbers = #tpu.dot_dimension_numbers<[1], [0], [0], [1], [0, 0, 1, 1], [], []>} : vector<16x32xbf16>, vector<32x32xbf16>, vector<16x32xf32> -> vector<16x32xf32>
    %48 = vector.extract_strided_slice %46 {offsets = [0, 0], sizes = [1, 32], strides = [1, 1]} : vector<3x32xf32> to vector<1x32xf32>
    %49 = vector.broadcast %48 : vector<1x32xf32> to vector<16x32xf32>
    %50 = arith.addf %47, %49 : vector<16x32xf32>
    %cst_20 = arith.constant 0.000000e+00 : f32
    %51 = vector.broadcast %cst_20 : f32 to vector<16x32xf32>
    %52 = arith.maximumf %50, %51 : vector<16x32xf32>
    %53 = vector.extract_strided_slice %46 {offsets = [1, 0], sizes = [1, 32], strides = [1, 1]} : vector<3x32xf32> to vector<1x32xf32>
    %54 = vector.broadcast %53 : vector<1x32xf32> to vector<16x32xf32>
    %55 = arith.mulf %52, %54 : vector<16x32xf32>
    %56 = vector.extract_strided_slice %46 {offsets = [2, 0], sizes = [1, 32], strides = [1, 1]} : vector<3x32xf32> to vector<1x32xf32>
    %57 = vector.broadcast %56 : vector<1x32xf32> to vector<16x32xf32>
    %58 = arith.addf %55, %57 : vector<16x32xf32>
    %c0_21 = arith.constant 0 : index
    %c0_22 = arith.constant 0 : index
    %c0_23 = arith.constant 0 : index
    %c0_24 = arith.constant 0 : index
    %c0_25 = arith.constant 0 : index
    %59 = vector.load %arg6[%c0_21, %c0_22, %c0_23, %c0_24, %c0_25] : memref<2x3x3x8x8xbf16, #tpu.memory_space<vmem>>, vector<1x3x3x8x8xbf16>
    %60 = vector.shape_cast %59 : vector<1x3x3x8x8xbf16> to vector<3x3x8x8xbf16>
    %c0_26 = arith.constant 0 : index
    %c0_27 = arith.constant 0 : index
    %c0_28 = arith.constant 0 : index
    %c0_29 = arith.constant 0 : index
    %61 = vector.load %arg7[%c0_26, %c0_27, %c0_28, %c0_29] : memref<2x3x3x8xf32, #tpu.memory_space<vmem>>, vector<1x3x3x8xf32>
    %62 = vector.shape_cast %61 : vector<1x3x3x8xf32> to vector<3x3x8xf32>
    %c0_30 = arith.constant 0 : index
    %c0_31 = arith.constant 0 : index
    %c0_32 = arith.constant 0 : index
    %c0_33 = arith.constant 0 : index
    %63 = vector.load %arg8[%c0_30, %c0_31, %c0_32, %c0_33] : memref<2x4x8x32xbf16, #tpu.memory_space<vmem>>, vector<1x4x8x32xbf16>
    %64 = vector.shape_cast %63 : vector<1x4x8x32xbf16> to vector<4x8x32xbf16>
    %c0_34 = arith.constant 0 : index
    %c0_35 = arith.constant 0 : index
    %c0_36 = arith.constant 0 : index
    %65 = vector.load %arg9[%c0_34, %c0_35, %c0_36] : memref<2x3x32xf32, #tpu.memory_space<vmem>>, vector<1x3x32xf32>
    %66 = vector.shape_cast %65 : vector<1x3x32xf32> to vector<3x32xf32>
    %67 = vector.extract_strided_slice %58 {offsets = [0, 0], sizes = [16, 8], strides = [1, 1]} : vector<16x32xf32> to vector<16x8xf32>
    %68 = vector.extract_strided_slice %64 {offsets = [0, 0, 0], sizes = [1, 8, 32], strides = [1, 1, 1]} : vector<4x8x32xbf16> to vector<1x8x32xbf16>
    %69 = vector.shape_cast %68 : vector<1x8x32xbf16> to vector<8x32xbf16>
    %70 = arith.truncf %67 : vector<16x8xf32> to vector<16x8xbf16>
    %cst_37 = arith.constant dense<0.000000e+00> : vector<16x32xf32>
    %71 = tpu.matmul %70, %69, %cst_37 {dimension_numbers = #tpu.dot_dimension_numbers<[1], [0], [0], [1], [0, 0, 1, 1], [], []>} : vector<16x8xbf16>, vector<8x32xbf16>, vector<16x32xf32> -> vector<16x32xf32>
    %72 = vector.extract_strided_slice %58 {offsets = [0, 8], sizes = [16, 8], strides = [1, 1]} : vector<16x32xf32> to vector<16x8xf32>
    %73 = vector.extract_strided_slice %60 {offsets = [0, 0, 0, 0], sizes = [1, 3, 8, 8], strides = [1, 1, 1, 1]} : vector<3x3x8x8xbf16> to vector<1x3x8x8xbf16>
    %74 = vector.shape_cast %73 : vector<1x3x8x8xbf16> to vector<3x8x8xbf16>
    %75 = vector.extract_strided_slice %62 {offsets = [0, 0, 0], sizes = [1, 3, 8], strides = [1, 1, 1]} : vector<3x3x8xf32> to vector<1x3x8xf32>
    %76 = vector.shape_cast %75 : vector<1x3x8xf32> to vector<3x8xf32>
    %77 = arith.truncf %72 : vector<16x8xf32> to vector<16x8xbf16>
    %cst_38 = arith.constant 0.000000e+00 : bf16
    %78 = vector.broadcast %cst_38 : bf16 to vector<2x8xbf16>
    %79 = tpu.concatenate %78, %77, %78 in 0 : vector<2x8xbf16>, vector<16x8xbf16>, vector<2x8xbf16> -> vector<20x8xbf16>
    %80 = vector.extract_strided_slice %79 {offsets = [0, 0], sizes = [16, 8], strides = [1, 1]} : vector<20x8xbf16> to vector<16x8xbf16>
    %81 = vector.extract_strided_slice %74 {offsets = [0, 0, 0], sizes = [1, 8, 8], strides = [1, 1, 1]} : vector<3x8x8xbf16> to vector<1x8x8xbf16>
    %82 = vector.shape_cast %81 : vector<1x8x8xbf16> to vector<8x8xbf16>
    %cst_39 = arith.constant dense<0.000000e+00> : vector<16x8xf32>
    %83 = tpu.matmul %80, %82, %cst_39 {dimension_numbers = #tpu.dot_dimension_numbers<[1], [0], [0], [1], [0, 0, 1, 1], [], []>} : vector<16x8xbf16>, vector<8x8xbf16>, vector<16x8xf32> -> vector<16x8xf32>
    %84 = vector.extract_strided_slice %79 {offsets = [2, 0], sizes = [16, 8], strides = [1, 1]} : vector<20x8xbf16> to vector<16x8xbf16>
    %85 = vector.extract_strided_slice %74 {offsets = [1, 0, 0], sizes = [1, 8, 8], strides = [1, 1, 1]} : vector<3x8x8xbf16> to vector<1x8x8xbf16>
    %86 = vector.shape_cast %85 : vector<1x8x8xbf16> to vector<8x8xbf16>
    %cst_40 = arith.constant dense<0.000000e+00> : vector<16x8xf32>
    %87 = tpu.matmul %84, %86, %cst_40 {dimension_numbers = #tpu.dot_dimension_numbers<[1], [0], [0], [1], [0, 0, 1, 1], [], []>} : vector<16x8xbf16>, vector<8x8xbf16>, vector<16x8xf32> -> vector<16x8xf32>
    %88 = arith.addf %83, %87 : vector<16x8xf32>
    %89 = vector.extract_strided_slice %79 {offsets = [4, 0], sizes = [16, 8], strides = [1, 1]} : vector<20x8xbf16> to vector<16x8xbf16>
    %90 = vector.extract_strided_slice %74 {offsets = [2, 0, 0], sizes = [1, 8, 8], strides = [1, 1, 1]} : vector<3x8x8xbf16> to vector<1x8x8xbf16>
    %91 = vector.shape_cast %90 : vector<1x8x8xbf16> to vector<8x8xbf16>
    %cst_41 = arith.constant dense<0.000000e+00> : vector<16x8xf32>
    %92 = tpu.matmul %89, %91, %cst_41 {dimension_numbers = #tpu.dot_dimension_numbers<[1], [0], [0], [1], [0, 0, 1, 1], [], []>} : vector<16x8xbf16>, vector<8x8xbf16>, vector<16x8xf32> -> vector<16x8xf32>
    %93 = arith.addf %88, %92 : vector<16x8xf32>
    %94 = vector.extract_strided_slice %76 {offsets = [0, 0], sizes = [1, 8], strides = [1, 1]} : vector<3x8xf32> to vector<1x8xf32>
    %95 = vector.broadcast %94 : vector<1x8xf32> to vector<16x8xf32>
    %96 = arith.addf %93, %95 : vector<16x8xf32>
    %cst_42 = arith.constant 0.000000e+00 : f32
    %97 = vector.broadcast %cst_42 : f32 to vector<16x8xf32>
    %98 = arith.maximumf %96, %97 : vector<16x8xf32>
    %99 = vector.extract_strided_slice %76 {offsets = [1, 0], sizes = [1, 8], strides = [1, 1]} : vector<3x8xf32> to vector<1x8xf32>
    %100 = vector.broadcast %99 : vector<1x8xf32> to vector<16x8xf32>
    %101 = arith.mulf %98, %100 : vector<16x8xf32>
    %102 = vector.extract_strided_slice %76 {offsets = [2, 0], sizes = [1, 8], strides = [1, 1]} : vector<3x8xf32> to vector<1x8xf32>
    %103 = vector.broadcast %102 : vector<1x8xf32> to vector<16x8xf32>
    %104 = arith.addf %101, %103 : vector<16x8xf32>
    %105 = vector.extract_strided_slice %64 {offsets = [1, 0, 0], sizes = [1, 8, 32], strides = [1, 1, 1]} : vector<4x8x32xbf16> to vector<1x8x32xbf16>
    %106 = vector.shape_cast %105 : vector<1x8x32xbf16> to vector<8x32xbf16>
    %107 = arith.truncf %104 : vector<16x8xf32> to vector<16x8xbf16>
    %cst_43 = arith.constant dense<0.000000e+00> : vector<16x32xf32>
    %108 = tpu.matmul %107, %106, %cst_43 {dimension_numbers = #tpu.dot_dimension_numbers<[1], [0], [0], [1], [0, 0, 1, 1], [], []>} : vector<16x8xbf16>, vector<8x32xbf16>, vector<16x32xf32> -> vector<16x32xf32>
    %109 = arith.addf %71, %108 : vector<16x32xf32>
    %110 = vector.extract_strided_slice %58 {offsets = [0, 16], sizes = [16, 8], strides = [1, 1]} : vector<16x32xf32> to vector<16x8xf32>
    %111 = arith.addf %110, %104 : vector<16x8xf32>
    %112 = vector.extract_strided_slice %60 {offsets = [1, 0, 0, 0], sizes = [1, 3, 8, 8], strides = [1, 1, 1, 1]} : vector<3x3x8x8xbf16> to vector<1x3x8x8xbf16>
    %113 = vector.shape_cast %112 : vector<1x3x8x8xbf16> to vector<3x8x8xbf16>
    %114 = vector.extract_strided_slice %62 {offsets = [1, 0, 0], sizes = [1, 3, 8], strides = [1, 1, 1]} : vector<3x3x8xf32> to vector<1x3x8xf32>
    %115 = vector.shape_cast %114 : vector<1x3x8xf32> to vector<3x8xf32>
    %116 = arith.truncf %111 : vector<16x8xf32> to vector<16x8xbf16>
    %cst_44 = arith.constant 0.000000e+00 : bf16
    %117 = vector.broadcast %cst_44 : bf16 to vector<2x8xbf16>
    %118 = tpu.concatenate %117, %116, %117 in 0 : vector<2x8xbf16>, vector<16x8xbf16>, vector<2x8xbf16> -> vector<20x8xbf16>
    %119 = vector.extract_strided_slice %118 {offsets = [0, 0], sizes = [16, 8], strides = [1, 1]} : vector<20x8xbf16> to vector<16x8xbf16>
    %120 = vector.extract_strided_slice %113 {offsets = [0, 0, 0], sizes = [1, 8, 8], strides = [1, 1, 1]} : vector<3x8x8xbf16> to vector<1x8x8xbf16>
    %121 = vector.shape_cast %120 : vector<1x8x8xbf16> to vector<8x8xbf16>
    %cst_45 = arith.constant dense<0.000000e+00> : vector<16x8xf32>
    %122 = tpu.matmul %119, %121, %cst_45 {dimension_numbers = #tpu.dot_dimension_numbers<[1], [0], [0], [1], [0, 0, 1, 1], [], []>} : vector<16x8xbf16>, vector<8x8xbf16>, vector<16x8xf32> -> vector<16x8xf32>
    %123 = vector.extract_strided_slice %118 {offsets = [2, 0], sizes = [16, 8], strides = [1, 1]} : vector<20x8xbf16> to vector<16x8xbf16>
    %124 = vector.extract_strided_slice %113 {offsets = [1, 0, 0], sizes = [1, 8, 8], strides = [1, 1, 1]} : vector<3x8x8xbf16> to vector<1x8x8xbf16>
    %125 = vector.shape_cast %124 : vector<1x8x8xbf16> to vector<8x8xbf16>
    %cst_46 = arith.constant dense<0.000000e+00> : vector<16x8xf32>
    %126 = tpu.matmul %123, %125, %cst_46 {dimension_numbers = #tpu.dot_dimension_numbers<[1], [0], [0], [1], [0, 0, 1, 1], [], []>} : vector<16x8xbf16>, vector<8x8xbf16>, vector<16x8xf32> -> vector<16x8xf32>
    %127 = arith.addf %122, %126 : vector<16x8xf32>
    %128 = vector.extract_strided_slice %118 {offsets = [4, 0], sizes = [16, 8], strides = [1, 1]} : vector<20x8xbf16> to vector<16x8xbf16>
    %129 = vector.extract_strided_slice %113 {offsets = [2, 0, 0], sizes = [1, 8, 8], strides = [1, 1, 1]} : vector<3x8x8xbf16> to vector<1x8x8xbf16>
    %130 = vector.shape_cast %129 : vector<1x8x8xbf16> to vector<8x8xbf16>
    %cst_47 = arith.constant dense<0.000000e+00> : vector<16x8xf32>
    %131 = tpu.matmul %128, %130, %cst_47 {dimension_numbers = #tpu.dot_dimension_numbers<[1], [0], [0], [1], [0, 0, 1, 1], [], []>} : vector<16x8xbf16>, vector<8x8xbf16>, vector<16x8xf32> -> vector<16x8xf32>
    %132 = arith.addf %127, %131 : vector<16x8xf32>
    %133 = vector.extract_strided_slice %115 {offsets = [0, 0], sizes = [1, 8], strides = [1, 1]} : vector<3x8xf32> to vector<1x8xf32>
    %134 = vector.broadcast %133 : vector<1x8xf32> to vector<16x8xf32>
    %135 = arith.addf %132, %134 : vector<16x8xf32>
    %cst_48 = arith.constant 0.000000e+00 : f32
    %136 = vector.broadcast %cst_48 : f32 to vector<16x8xf32>
    %137 = arith.maximumf %135, %136 : vector<16x8xf32>
    %138 = vector.extract_strided_slice %115 {offsets = [1, 0], sizes = [1, 8], strides = [1, 1]} : vector<3x8xf32> to vector<1x8xf32>
    %139 = vector.broadcast %138 : vector<1x8xf32> to vector<16x8xf32>
    %140 = arith.mulf %137, %139 : vector<16x8xf32>
    %141 = vector.extract_strided_slice %115 {offsets = [2, 0], sizes = [1, 8], strides = [1, 1]} : vector<3x8xf32> to vector<1x8xf32>
    %142 = vector.broadcast %141 : vector<1x8xf32> to vector<16x8xf32>
    %143 = arith.addf %140, %142 : vector<16x8xf32>
    %144 = vector.extract_strided_slice %64 {offsets = [2, 0, 0], sizes = [1, 8, 32], strides = [1, 1, 1]} : vector<4x8x32xbf16> to vector<1x8x32xbf16>
    %145 = vector.shape_cast %144 : vector<1x8x32xbf16> to vector<8x32xbf16>
    %146 = arith.truncf %143 : vector<16x8xf32> to vector<16x8xbf16>
    %cst_49 = arith.constant dense<0.000000e+00> : vector<16x32xf32>
    %147 = tpu.matmul %146, %145, %cst_49 {dimension_numbers = #tpu.dot_dimension_numbers<[1], [0], [0], [1], [0, 0, 1, 1], [], []>} : vector<16x8xbf16>, vector<8x32xbf16>, vector<16x32xf32> -> vector<16x32xf32>
    %148 = arith.addf %109, %147 : vector<16x32xf32>
    %149 = vector.extract_strided_slice %58 {offsets = [0, 24], sizes = [16, 8], strides = [1, 1]} : vector<16x32xf32> to vector<16x8xf32>
    %150 = arith.addf %149, %143 : vector<16x8xf32>
    %151 = vector.extract_strided_slice %60 {offsets = [2, 0, 0, 0], sizes = [1, 3, 8, 8], strides = [1, 1, 1, 1]} : vector<3x3x8x8xbf16> to vector<1x3x8x8xbf16>
    %152 = vector.shape_cast %151 : vector<1x3x8x8xbf16> to vector<3x8x8xbf16>
    %153 = vector.extract_strided_slice %62 {offsets = [2, 0, 0], sizes = [1, 3, 8], strides = [1, 1, 1]} : vector<3x3x8xf32> to vector<1x3x8xf32>
    %154 = vector.shape_cast %153 : vector<1x3x8xf32> to vector<3x8xf32>
    %155 = arith.truncf %150 : vector<16x8xf32> to vector<16x8xbf16>
    %cst_50 = arith.constant 0.000000e+00 : bf16
    %156 = vector.broadcast %cst_50 : bf16 to vector<2x8xbf16>
    %157 = tpu.concatenate %156, %155, %156 in 0 : vector<2x8xbf16>, vector<16x8xbf16>, vector<2x8xbf16> -> vector<20x8xbf16>
    %158 = vector.extract_strided_slice %157 {offsets = [0, 0], sizes = [16, 8], strides = [1, 1]} : vector<20x8xbf16> to vector<16x8xbf16>
    %159 = vector.extract_strided_slice %152 {offsets = [0, 0, 0], sizes = [1, 8, 8], strides = [1, 1, 1]} : vector<3x8x8xbf16> to vector<1x8x8xbf16>
    %160 = vector.shape_cast %159 : vector<1x8x8xbf16> to vector<8x8xbf16>
    %cst_51 = arith.constant dense<0.000000e+00> : vector<16x8xf32>
    %161 = tpu.matmul %158, %160, %cst_51 {dimension_numbers = #tpu.dot_dimension_numbers<[1], [0], [0], [1], [0, 0, 1, 1], [], []>} : vector<16x8xbf16>, vector<8x8xbf16>, vector<16x8xf32> -> vector<16x8xf32>
    %162 = vector.extract_strided_slice %157 {offsets = [2, 0], sizes = [16, 8], strides = [1, 1]} : vector<20x8xbf16> to vector<16x8xbf16>
    %163 = vector.extract_strided_slice %152 {offsets = [1, 0, 0], sizes = [1, 8, 8], strides = [1, 1, 1]} : vector<3x8x8xbf16> to vector<1x8x8xbf16>
    %164 = vector.shape_cast %163 : vector<1x8x8xbf16> to vector<8x8xbf16>
    %cst_52 = arith.constant dense<0.000000e+00> : vector<16x8xf32>
    %165 = tpu.matmul %162, %164, %cst_52 {dimension_numbers = #tpu.dot_dimension_numbers<[1], [0], [0], [1], [0, 0, 1, 1], [], []>} : vector<16x8xbf16>, vector<8x8xbf16>, vector<16x8xf32> -> vector<16x8xf32>
    %166 = arith.addf %161, %165 : vector<16x8xf32>
    %167 = vector.extract_strided_slice %157 {offsets = [4, 0], sizes = [16, 8], strides = [1, 1]} : vector<20x8xbf16> to vector<16x8xbf16>
    %168 = vector.extract_strided_slice %152 {offsets = [2, 0, 0], sizes = [1, 8, 8], strides = [1, 1, 1]} : vector<3x8x8xbf16> to vector<1x8x8xbf16>
    %169 = vector.shape_cast %168 : vector<1x8x8xbf16> to vector<8x8xbf16>
    %cst_53 = arith.constant dense<0.000000e+00> : vector<16x8xf32>
    %170 = tpu.matmul %167, %169, %cst_53 {dimension_numbers = #tpu.dot_dimension_numbers<[1], [0], [0], [1], [0, 0, 1, 1], [], []>} : vector<16x8xbf16>, vector<8x8xbf16>, vector<16x8xf32> -> vector<16x8xf32>
    %171 = arith.addf %166, %170 : vector<16x8xf32>
    %172 = vector.extract_strided_slice %154 {offsets = [0, 0], sizes = [1, 8], strides = [1, 1]} : vector<3x8xf32> to vector<1x8xf32>
    %173 = vector.broadcast %172 : vector<1x8xf32> to vector<16x8xf32>
    %174 = arith.addf %171, %173 : vector<16x8xf32>
    %cst_54 = arith.constant 0.000000e+00 : f32
    %175 = vector.broadcast %cst_54 : f32 to vector<16x8xf32>
    %176 = arith.maximumf %174, %175 : vector<16x8xf32>
    %177 = vector.extract_strided_slice %154 {offsets = [1, 0], sizes = [1, 8], strides = [1, 1]} : vector<3x8xf32> to vector<1x8xf32>
    %178 = vector.broadcast %177 : vector<1x8xf32> to vector<16x8xf32>
    %179 = arith.mulf %176, %178 : vector<16x8xf32>
    %180 = vector.extract_strided_slice %154 {offsets = [2, 0], sizes = [1, 8], strides = [1, 1]} : vector<3x8xf32> to vector<1x8xf32>
    %181 = vector.broadcast %180 : vector<1x8xf32> to vector<16x8xf32>
    %182 = arith.addf %179, %181 : vector<16x8xf32>
    %183 = vector.extract_strided_slice %64 {offsets = [3, 0, 0], sizes = [1, 8, 32], strides = [1, 1, 1]} : vector<4x8x32xbf16> to vector<1x8x32xbf16>
    %184 = vector.shape_cast %183 : vector<1x8x32xbf16> to vector<8x32xbf16>
    %185 = arith.truncf %182 : vector<16x8xf32> to vector<16x8xbf16>
    %cst_55 = arith.constant dense<0.000000e+00> : vector<16x32xf32>
    %186 = tpu.matmul %185, %184, %cst_55 {dimension_numbers = #tpu.dot_dimension_numbers<[1], [0], [0], [1], [0, 0, 1, 1], [], []>} : vector<16x8xbf16>, vector<8x32xbf16>, vector<16x32xf32> -> vector<16x32xf32>
    %187 = arith.addf %148, %186 : vector<16x32xf32>
    %188 = vector.extract_strided_slice %66 {offsets = [0, 0], sizes = [1, 32], strides = [1, 1]} : vector<3x32xf32> to vector<1x32xf32>
    %189 = vector.broadcast %188 : vector<1x32xf32> to vector<16x32xf32>
    %190 = arith.addf %187, %189 : vector<16x32xf32>
    %cst_56 = arith.constant 0.000000e+00 : f32
    %191 = vector.broadcast %cst_56 : f32 to vector<16x32xf32>
    %192 = arith.maximumf %190, %191 : vector<16x32xf32>
    %193 = vector.extract_strided_slice %66 {offsets = [1, 0], sizes = [1, 32], strides = [1, 1]} : vector<3x32xf32> to vector<1x32xf32>
    %194 = vector.broadcast %193 : vector<1x32xf32> to vector<16x32xf32>
    %195 = arith.mulf %192, %194 : vector<16x32xf32>
    %196 = vector.extract_strided_slice %66 {offsets = [2, 0], sizes = [1, 32], strides = [1, 1]} : vector<3x32xf32> to vector<1x32xf32>
    %197 = vector.broadcast %196 : vector<1x32xf32> to vector<16x32xf32>
    %198 = arith.addf %195, %197 : vector<16x32xf32>
    %cst_57 = arith.constant dense<0.000000e+00> : vector<32xf32>
    %199 = vector.multi_reduction <add>, %198, %cst_57 [0] : vector<16x32xf32> to vector<32xf32>
    %200 = vector.shape_cast %199 : vector<32xf32> to vector<1x32xf32>
    %cst_58 = arith.constant 1.600000e+01 : f32
    %201 = vector.broadcast %cst_58 : f32 to vector<1x32xf32>
    %202 = arith.divf %200, %201 : vector<1x32xf32>
    %c0_59 = arith.constant 0 : index
    %c0_60 = arith.constant 0 : index
    %c0_61 = arith.constant 0 : index
    %203 = vector.load %arg10[%c0_59, %c0_60, %c0_61] : memref<2x32x16xbf16, #tpu.memory_space<vmem>>, vector<1x32x16xbf16>
    %204 = vector.shape_cast %203 : vector<1x32x16xbf16> to vector<32x16xbf16>
    %205 = arith.truncf %202 : vector<1x32xf32> to vector<1x32xbf16>
    %cst_62 = arith.constant dense<0.000000e+00> : vector<1x16xf32>
    %206 = tpu.matmul %205, %204, %cst_62 {dimension_numbers = #tpu.dot_dimension_numbers<[1], [0], [0], [1], [0, 0, 1, 1], [], []>} : vector<1x32xbf16>, vector<32x16xbf16>, vector<1x16xf32> -> vector<1x16xf32>
    %c0_63 = arith.constant 0 : index
    %c0_64 = arith.constant 0 : index
    %c0_65 = arith.constant 0 : index
    %207 = vector.load %arg11[%c0_63, %c0_64, %c0_65] : memref<2x1x16xf32, #tpu.memory_space<vmem>>, vector<1x1x16xf32>
    %208 = vector.shape_cast %207 : vector<1x1x16xf32> to vector<1x16xf32>
    %209 = arith.addf %206, %208 : vector<1x16xf32>
    %cst_66 = arith.constant 0.000000e+00 : f32
    %210 = vector.broadcast %cst_66 : f32 to vector<1x16xf32>
    %211 = arith.maximumf %209, %210 : vector<1x16xf32>
    %c0_67 = arith.constant 0 : index
    %c0_68 = arith.constant 0 : index
    %c0_69 = arith.constant 0 : index
    %212 = vector.load %arg12[%c0_67, %c0_68, %c0_69] : memref<2x16x32xbf16, #tpu.memory_space<vmem>>, vector<1x16x32xbf16>
    %213 = vector.shape_cast %212 : vector<1x16x32xbf16> to vector<16x32xbf16>
    %214 = arith.truncf %211 : vector<1x16xf32> to vector<1x16xbf16>
    %cst_70 = arith.constant dense<0.000000e+00> : vector<1x32xf32>
    %215 = tpu.matmul %214, %213, %cst_70 {dimension_numbers = #tpu.dot_dimension_numbers<[1], [0], [0], [1], [0, 0, 1, 1], [], []>} : vector<1x16xbf16>, vector<16x32xbf16>, vector<1x32xf32> -> vector<1x32xf32>
    %c0_71 = arith.constant 0 : index
    %c0_72 = arith.constant 0 : index
    %c0_73 = arith.constant 0 : index
    %216 = vector.load %arg13[%c0_71, %c0_72, %c0_73] : memref<2x1x32xf32, #tpu.memory_space<vmem>>, vector<1x1x32xf32>
    %217 = vector.shape_cast %216 : vector<1x1x32xf32> to vector<1x32xf32>
    %218 = arith.addf %215, %217 : vector<1x32xf32>
    %219 = arith.negf %218 : vector<1x32xf32>
    %220 = math.exp %219 : vector<1x32xf32>
    %cst_74 = arith.constant 1.000000e+00 : f32
    %221 = vector.broadcast %cst_74 : f32 to vector<1x32xf32>
    %222 = arith.addf %221, %220 : vector<1x32xf32>
    %223 = arith.divf %221, %222 : vector<1x32xf32>
    %224 = vector.broadcast %223 : vector<1x32xf32> to vector<16x32xf32>
    %225 = arith.mulf %198, %224 : vector<16x32xf32>
    %226 = arith.addf %225, %41 : vector<16x32xf32>
    %227 = arith.truncf %226 : vector<16x32xf32> to vector<16x32xbf16>
    %c0_75 = arith.constant 0 : index
    %c0_76 = arith.constant 0 : index
    %c0_77 = arith.constant 0 : index
    %228 = vector.load %arg14[%c0_75, %c0_76, %c0_77] : memref<2x32x64xbf16, #tpu.memory_space<vmem>>, vector<1x32x64xbf16>
    %229 = vector.shape_cast %228 : vector<1x32x64xbf16> to vector<32x64xbf16>
    %cst_78 = arith.constant dense<0.000000e+00> : vector<16x64xf32>
    %230 = tpu.matmul %227, %229, %cst_78 {dimension_numbers = #tpu.dot_dimension_numbers<[1], [0], [0], [1], [0, 0, 1, 1], [], []>} : vector<16x32xbf16>, vector<32x64xbf16>, vector<16x64xf32> -> vector<16x64xf32>
    %c1 = arith.constant 1 : index
    %c0_79 = arith.constant 0 : index
    %c0_80 = arith.constant 0 : index
    %231 = vector.load %arg4[%c1, %c0_79, %c0_80] : memref<2x32x32xbf16, #tpu.memory_space<vmem>>, vector<1x32x32xbf16>
    %232 = vector.shape_cast %231 : vector<1x32x32xbf16> to vector<32x32xbf16>
    %c1_81 = arith.constant 1 : index
    %c0_82 = arith.constant 0 : index
    %c0_83 = arith.constant 0 : index
    %233 = vector.load %arg5[%c1_81, %c0_82, %c0_83] : memref<2x3x32xf32, #tpu.memory_space<vmem>>, vector<1x3x32xf32>
    %234 = vector.shape_cast %233 : vector<1x3x32xf32> to vector<3x32xf32>
    %cst_84 = arith.constant dense<0.000000e+00> : vector<16x32xf32>
    %235 = tpu.matmul %227, %232, %cst_84 {dimension_numbers = #tpu.dot_dimension_numbers<[1], [0], [0], [1], [0, 0, 1, 1], [], []>} : vector<16x32xbf16>, vector<32x32xbf16>, vector<16x32xf32> -> vector<16x32xf32>
    %236 = vector.extract_strided_slice %234 {offsets = [0, 0], sizes = [1, 32], strides = [1, 1]} : vector<3x32xf32> to vector<1x32xf32>
    %237 = vector.broadcast %236 : vector<1x32xf32> to vector<16x32xf32>
    %238 = arith.addf %235, %237 : vector<16x32xf32>
    %cst_85 = arith.constant 0.000000e+00 : f32
    %239 = vector.broadcast %cst_85 : f32 to vector<16x32xf32>
    %240 = arith.maximumf %238, %239 : vector<16x32xf32>
    %241 = vector.extract_strided_slice %234 {offsets = [1, 0], sizes = [1, 32], strides = [1, 1]} : vector<3x32xf32> to vector<1x32xf32>
    %242 = vector.broadcast %241 : vector<1x32xf32> to vector<16x32xf32>
    %243 = arith.mulf %240, %242 : vector<16x32xf32>
    %244 = vector.extract_strided_slice %234 {offsets = [2, 0], sizes = [1, 32], strides = [1, 1]} : vector<3x32xf32> to vector<1x32xf32>
    %245 = vector.broadcast %244 : vector<1x32xf32> to vector<16x32xf32>
    %246 = arith.addf %243, %245 : vector<16x32xf32>
    %c1_86 = arith.constant 1 : index
    %c0_87 = arith.constant 0 : index
    %c0_88 = arith.constant 0 : index
    %c0_89 = arith.constant 0 : index
    %c0_90 = arith.constant 0 : index
    %247 = vector.load %arg6[%c1_86, %c0_87, %c0_88, %c0_89, %c0_90] : memref<2x3x3x8x8xbf16, #tpu.memory_space<vmem>>, vector<1x3x3x8x8xbf16>
    %248 = vector.shape_cast %247 : vector<1x3x3x8x8xbf16> to vector<3x3x8x8xbf16>
    %c1_91 = arith.constant 1 : index
    %c0_92 = arith.constant 0 : index
    %c0_93 = arith.constant 0 : index
    %c0_94 = arith.constant 0 : index
    %249 = vector.load %arg7[%c1_91, %c0_92, %c0_93, %c0_94] : memref<2x3x3x8xf32, #tpu.memory_space<vmem>>, vector<1x3x3x8xf32>
    %250 = vector.shape_cast %249 : vector<1x3x3x8xf32> to vector<3x3x8xf32>
    %c1_95 = arith.constant 1 : index
    %c0_96 = arith.constant 0 : index
    %c0_97 = arith.constant 0 : index
    %c0_98 = arith.constant 0 : index
    %251 = vector.load %arg8[%c1_95, %c0_96, %c0_97, %c0_98] : memref<2x4x8x32xbf16, #tpu.memory_space<vmem>>, vector<1x4x8x32xbf16>
    %252 = vector.shape_cast %251 : vector<1x4x8x32xbf16> to vector<4x8x32xbf16>
    %c1_99 = arith.constant 1 : index
    %c0_100 = arith.constant 0 : index
    %c0_101 = arith.constant 0 : index
    %253 = vector.load %arg9[%c1_99, %c0_100, %c0_101] : memref<2x3x32xf32, #tpu.memory_space<vmem>>, vector<1x3x32xf32>
    %254 = vector.shape_cast %253 : vector<1x3x32xf32> to vector<3x32xf32>
    %255 = vector.extract_strided_slice %246 {offsets = [0, 0], sizes = [16, 8], strides = [1, 1]} : vector<16x32xf32> to vector<16x8xf32>
    %256 = vector.extract_strided_slice %252 {offsets = [0, 0, 0], sizes = [1, 8, 32], strides = [1, 1, 1]} : vector<4x8x32xbf16> to vector<1x8x32xbf16>
    %257 = vector.shape_cast %256 : vector<1x8x32xbf16> to vector<8x32xbf16>
    %258 = arith.truncf %255 : vector<16x8xf32> to vector<16x8xbf16>
    %cst_102 = arith.constant dense<0.000000e+00> : vector<16x32xf32>
    %259 = tpu.matmul %258, %257, %cst_102 {dimension_numbers = #tpu.dot_dimension_numbers<[1], [0], [0], [1], [0, 0, 1, 1], [], []>} : vector<16x8xbf16>, vector<8x32xbf16>, vector<16x32xf32> -> vector<16x32xf32>
    %260 = vector.extract_strided_slice %246 {offsets = [0, 8], sizes = [16, 8], strides = [1, 1]} : vector<16x32xf32> to vector<16x8xf32>
    %261 = vector.extract_strided_slice %248 {offsets = [0, 0, 0, 0], sizes = [1, 3, 8, 8], strides = [1, 1, 1, 1]} : vector<3x3x8x8xbf16> to vector<1x3x8x8xbf16>
    %262 = vector.shape_cast %261 : vector<1x3x8x8xbf16> to vector<3x8x8xbf16>
    %263 = vector.extract_strided_slice %250 {offsets = [0, 0, 0], sizes = [1, 3, 8], strides = [1, 1, 1]} : vector<3x3x8xf32> to vector<1x3x8xf32>
    %264 = vector.shape_cast %263 : vector<1x3x8xf32> to vector<3x8xf32>
    %265 = arith.truncf %260 : vector<16x8xf32> to vector<16x8xbf16>
    %cst_103 = arith.constant 0.000000e+00 : bf16
    %266 = vector.broadcast %cst_103 : bf16 to vector<3x8xbf16>
    %267 = tpu.concatenate %266, %265, %266 in 0 : vector<3x8xbf16>, vector<16x8xbf16>, vector<3x8xbf16> -> vector<22x8xbf16>
    %268 = vector.extract_strided_slice %267 {offsets = [0, 0], sizes = [16, 8], strides = [1, 1]} : vector<22x8xbf16> to vector<16x8xbf16>
    %269 = vector.extract_strided_slice %262 {offsets = [0, 0, 0], sizes = [1, 8, 8], strides = [1, 1, 1]} : vector<3x8x8xbf16> to vector<1x8x8xbf16>
    %270 = vector.shape_cast %269 : vector<1x8x8xbf16> to vector<8x8xbf16>
    %cst_104 = arith.constant dense<0.000000e+00> : vector<16x8xf32>
    %271 = tpu.matmul %268, %270, %cst_104 {dimension_numbers = #tpu.dot_dimension_numbers<[1], [0], [0], [1], [0, 0, 1, 1], [], []>} : vector<16x8xbf16>, vector<8x8xbf16>, vector<16x8xf32> -> vector<16x8xf32>
    %272 = vector.extract_strided_slice %267 {offsets = [3, 0], sizes = [16, 8], strides = [1, 1]} : vector<22x8xbf16> to vector<16x8xbf16>
    %273 = vector.extract_strided_slice %262 {offsets = [1, 0, 0], sizes = [1, 8, 8], strides = [1, 1, 1]} : vector<3x8x8xbf16> to vector<1x8x8xbf16>
    %274 = vector.shape_cast %273 : vector<1x8x8xbf16> to vector<8x8xbf16>
    %cst_105 = arith.constant dense<0.000000e+00> : vector<16x8xf32>
    %275 = tpu.matmul %272, %274, %cst_105 {dimension_numbers = #tpu.dot_dimension_numbers<[1], [0], [0], [1], [0, 0, 1, 1], [], []>} : vector<16x8xbf16>, vector<8x8xbf16>, vector<16x8xf32> -> vector<16x8xf32>
    %276 = arith.addf %271, %275 : vector<16x8xf32>
    %277 = vector.extract_strided_slice %267 {offsets = [6, 0], sizes = [16, 8], strides = [1, 1]} : vector<22x8xbf16> to vector<16x8xbf16>
    %278 = vector.extract_strided_slice %262 {offsets = [2, 0, 0], sizes = [1, 8, 8], strides = [1, 1, 1]} : vector<3x8x8xbf16> to vector<1x8x8xbf16>
    %279 = vector.shape_cast %278 : vector<1x8x8xbf16> to vector<8x8xbf16>
    %cst_106 = arith.constant dense<0.000000e+00> : vector<16x8xf32>
    %280 = tpu.matmul %277, %279, %cst_106 {dimension_numbers = #tpu.dot_dimension_numbers<[1], [0], [0], [1], [0, 0, 1, 1], [], []>} : vector<16x8xbf16>, vector<8x8xbf16>, vector<16x8xf32> -> vector<16x8xf32>
    %281 = arith.addf %276, %280 : vector<16x8xf32>
    %282 = vector.extract_strided_slice %264 {offsets = [0, 0], sizes = [1, 8], strides = [1, 1]} : vector<3x8xf32> to vector<1x8xf32>
    %283 = vector.broadcast %282 : vector<1x8xf32> to vector<16x8xf32>
    %284 = arith.addf %281, %283 : vector<16x8xf32>
    %cst_107 = arith.constant 0.000000e+00 : f32
    %285 = vector.broadcast %cst_107 : f32 to vector<16x8xf32>
    %286 = arith.maximumf %284, %285 : vector<16x8xf32>
    %287 = vector.extract_strided_slice %264 {offsets = [1, 0], sizes = [1, 8], strides = [1, 1]} : vector<3x8xf32> to vector<1x8xf32>
    %288 = vector.broadcast %287 : vector<1x8xf32> to vector<16x8xf32>
    %289 = arith.mulf %286, %288 : vector<16x8xf32>
    %290 = vector.extract_strided_slice %264 {offsets = [2, 0], sizes = [1, 8], strides = [1, 1]} : vector<3x8xf32> to vector<1x8xf32>
    %291 = vector.broadcast %290 : vector<1x8xf32> to vector<16x8xf32>
    %292 = arith.addf %289, %291 : vector<16x8xf32>
    %293 = vector.extract_strided_slice %252 {offsets = [1, 0, 0], sizes = [1, 8, 32], strides = [1, 1, 1]} : vector<4x8x32xbf16> to vector<1x8x32xbf16>
    %294 = vector.shape_cast %293 : vector<1x8x32xbf16> to vector<8x32xbf16>
    %295 = arith.truncf %292 : vector<16x8xf32> to vector<16x8xbf16>
    %cst_108 = arith.constant dense<0.000000e+00> : vector<16x32xf32>
    %296 = tpu.matmul %295, %294, %cst_108 {dimension_numbers = #tpu.dot_dimension_numbers<[1], [0], [0], [1], [0, 0, 1, 1], [], []>} : vector<16x8xbf16>, vector<8x32xbf16>, vector<16x32xf32> -> vector<16x32xf32>
    %297 = arith.addf %259, %296 : vector<16x32xf32>
    %298 = vector.extract_strided_slice %246 {offsets = [0, 16], sizes = [16, 8], strides = [1, 1]} : vector<16x32xf32> to vector<16x8xf32>
    %299 = arith.addf %298, %292 : vector<16x8xf32>
    %300 = vector.extract_strided_slice %248 {offsets = [1, 0, 0, 0], sizes = [1, 3, 8, 8], strides = [1, 1, 1, 1]} : vector<3x3x8x8xbf16> to vector<1x3x8x8xbf16>
    %301 = vector.shape_cast %300 : vector<1x3x8x8xbf16> to vector<3x8x8xbf16>
    %302 = vector.extract_strided_slice %250 {offsets = [1, 0, 0], sizes = [1, 3, 8], strides = [1, 1, 1]} : vector<3x3x8xf32> to vector<1x3x8xf32>
    %303 = vector.shape_cast %302 : vector<1x3x8xf32> to vector<3x8xf32>
    %304 = arith.truncf %299 : vector<16x8xf32> to vector<16x8xbf16>
    %cst_109 = arith.constant 0.000000e+00 : bf16
    %305 = vector.broadcast %cst_109 : bf16 to vector<3x8xbf16>
    %306 = tpu.concatenate %305, %304, %305 in 0 : vector<3x8xbf16>, vector<16x8xbf16>, vector<3x8xbf16> -> vector<22x8xbf16>
    %307 = vector.extract_strided_slice %306 {offsets = [0, 0], sizes = [16, 8], strides = [1, 1]} : vector<22x8xbf16> to vector<16x8xbf16>
    %308 = vector.extract_strided_slice %301 {offsets = [0, 0, 0], sizes = [1, 8, 8], strides = [1, 1, 1]} : vector<3x8x8xbf16> to vector<1x8x8xbf16>
    %309 = vector.shape_cast %308 : vector<1x8x8xbf16> to vector<8x8xbf16>
    %cst_110 = arith.constant dense<0.000000e+00> : vector<16x8xf32>
    %310 = tpu.matmul %307, %309, %cst_110 {dimension_numbers = #tpu.dot_dimension_numbers<[1], [0], [0], [1], [0, 0, 1, 1], [], []>} : vector<16x8xbf16>, vector<8x8xbf16>, vector<16x8xf32> -> vector<16x8xf32>
    %311 = vector.extract_strided_slice %306 {offsets = [3, 0], sizes = [16, 8], strides = [1, 1]} : vector<22x8xbf16> to vector<16x8xbf16>
    %312 = vector.extract_strided_slice %301 {offsets = [1, 0, 0], sizes = [1, 8, 8], strides = [1, 1, 1]} : vector<3x8x8xbf16> to vector<1x8x8xbf16>
    %313 = vector.shape_cast %312 : vector<1x8x8xbf16> to vector<8x8xbf16>
    %cst_111 = arith.constant dense<0.000000e+00> : vector<16x8xf32>
    %314 = tpu.matmul %311, %313, %cst_111 {dimension_numbers = #tpu.dot_dimension_numbers<[1], [0], [0], [1], [0, 0, 1, 1], [], []>} : vector<16x8xbf16>, vector<8x8xbf16>, vector<16x8xf32> -> vector<16x8xf32>
    %315 = arith.addf %310, %314 : vector<16x8xf32>
    %316 = vector.extract_strided_slice %306 {offsets = [6, 0], sizes = [16, 8], strides = [1, 1]} : vector<22x8xbf16> to vector<16x8xbf16>
    %317 = vector.extract_strided_slice %301 {offsets = [2, 0, 0], sizes = [1, 8, 8], strides = [1, 1, 1]} : vector<3x8x8xbf16> to vector<1x8x8xbf16>
    %318 = vector.shape_cast %317 : vector<1x8x8xbf16> to vector<8x8xbf16>
    %cst_112 = arith.constant dense<0.000000e+00> : vector<16x8xf32>
    %319 = tpu.matmul %316, %318, %cst_112 {dimension_numbers = #tpu.dot_dimension_numbers<[1], [0], [0], [1], [0, 0, 1, 1], [], []>} : vector<16x8xbf16>, vector<8x8xbf16>, vector<16x8xf32> -> vector<16x8xf32>
    %320 = arith.addf %315, %319 : vector<16x8xf32>
    %321 = vector.extract_strided_slice %303 {offsets = [0, 0], sizes = [1, 8], strides = [1, 1]} : vector<3x8xf32> to vector<1x8xf32>
    %322 = vector.broadcast %321 : vector<1x8xf32> to vector<16x8xf32>
    %323 = arith.addf %320, %322 : vector<16x8xf32>
    %cst_113 = arith.constant 0.000000e+00 : f32
    %324 = vector.broadcast %cst_113 : f32 to vector<16x8xf32>
    %325 = arith.maximumf %323, %324 : vector<16x8xf32>
    %326 = vector.extract_strided_slice %303 {offsets = [1, 0], sizes = [1, 8], strides = [1, 1]} : vector<3x8xf32> to vector<1x8xf32>
    %327 = vector.broadcast %326 : vector<1x8xf32> to vector<16x8xf32>
    %328 = arith.mulf %325, %327 : vector<16x8xf32>
    %329 = vector.extract_strided_slice %303 {offsets = [2, 0], sizes = [1, 8], strides = [1, 1]} : vector<3x8xf32> to vector<1x8xf32>
    %330 = vector.broadcast %329 : vector<1x8xf32> to vector<16x8xf32>
    %331 = arith.addf %328, %330 : vector<16x8xf32>
    %332 = vector.extract_strided_slice %252 {offsets = [2, 0, 0], sizes = [1, 8, 32], strides = [1, 1, 1]} : vector<4x8x32xbf16> to vector<1x8x32xbf16>
    %333 = vector.shape_cast %332 : vector<1x8x32xbf16> to vector<8x32xbf16>
    %334 = arith.truncf %331 : vector<16x8xf32> to vector<16x8xbf16>
    %cst_114 = arith.constant dense<0.000000e+00> : vector<16x32xf32>
    %335 = tpu.matmul %334, %333, %cst_114 {dimension_numbers = #tpu.dot_dimension_numbers<[1], [0], [0], [1], [0, 0, 1, 1], [], []>} : vector<16x8xbf16>, vector<8x32xbf16>, vector<16x32xf32> -> vector<16x32xf32>
    %336 = arith.addf %297, %335 : vector<16x32xf32>
    %337 = vector.extract_strided_slice %246 {offsets = [0, 24], sizes = [16, 8], strides = [1, 1]} : vector<16x32xf32> to vector<16x8xf32>
    %338 = arith.addf %337, %331 : vector<16x8xf32>
    %339 = vector.extract_strided_slice %248 {offsets = [2, 0, 0, 0], sizes = [1, 3, 8, 8], strides = [1, 1, 1, 1]} : vector<3x3x8x8xbf16> to vector<1x3x8x8xbf16>
    %340 = vector.shape_cast %339 : vector<1x3x8x8xbf16> to vector<3x8x8xbf16>
    %341 = vector.extract_strided_slice %250 {offsets = [2, 0, 0], sizes = [1, 3, 8], strides = [1, 1, 1]} : vector<3x3x8xf32> to vector<1x3x8xf32>
    %342 = vector.shape_cast %341 : vector<1x3x8xf32> to vector<3x8xf32>
    %343 = arith.truncf %338 : vector<16x8xf32> to vector<16x8xbf16>
    %cst_115 = arith.constant 0.000000e+00 : bf16
    %344 = vector.broadcast %cst_115 : bf16 to vector<3x8xbf16>
    %345 = tpu.concatenate %344, %343, %344 in 0 : vector<3x8xbf16>, vector<16x8xbf16>, vector<3x8xbf16> -> vector<22x8xbf16>
    %346 = vector.extract_strided_slice %345 {offsets = [0, 0], sizes = [16, 8], strides = [1, 1]} : vector<22x8xbf16> to vector<16x8xbf16>
    %347 = vector.extract_strided_slice %340 {offsets = [0, 0, 0], sizes = [1, 8, 8], strides = [1, 1, 1]} : vector<3x8x8xbf16> to vector<1x8x8xbf16>
    %348 = vector.shape_cast %347 : vector<1x8x8xbf16> to vector<8x8xbf16>
    %cst_116 = arith.constant dense<0.000000e+00> : vector<16x8xf32>
    %349 = tpu.matmul %346, %348, %cst_116 {dimension_numbers = #tpu.dot_dimension_numbers<[1], [0], [0], [1], [0, 0, 1, 1], [], []>} : vector<16x8xbf16>, vector<8x8xbf16>, vector<16x8xf32> -> vector<16x8xf32>
    %350 = vector.extract_strided_slice %345 {offsets = [3, 0], sizes = [16, 8], strides = [1, 1]} : vector<22x8xbf16> to vector<16x8xbf16>
    %351 = vector.extract_strided_slice %340 {offsets = [1, 0, 0], sizes = [1, 8, 8], strides = [1, 1, 1]} : vector<3x8x8xbf16> to vector<1x8x8xbf16>
    %352 = vector.shape_cast %351 : vector<1x8x8xbf16> to vector<8x8xbf16>
    %cst_117 = arith.constant dense<0.000000e+00> : vector<16x8xf32>
    %353 = tpu.matmul %350, %352, %cst_117 {dimension_numbers = #tpu.dot_dimension_numbers<[1], [0], [0], [1], [0, 0, 1, 1], [], []>} : vector<16x8xbf16>, vector<8x8xbf16>, vector<16x8xf32> -> vector<16x8xf32>
    %354 = arith.addf %349, %353 : vector<16x8xf32>
    %355 = vector.extract_strided_slice %345 {offsets = [6, 0], sizes = [16, 8], strides = [1, 1]} : vector<22x8xbf16> to vector<16x8xbf16>
    %356 = vector.extract_strided_slice %340 {offsets = [2, 0, 0], sizes = [1, 8, 8], strides = [1, 1, 1]} : vector<3x8x8xbf16> to vector<1x8x8xbf16>
    %357 = vector.shape_cast %356 : vector<1x8x8xbf16> to vector<8x8xbf16>
    %cst_118 = arith.constant dense<0.000000e+00> : vector<16x8xf32>
    %358 = tpu.matmul %355, %357, %cst_118 {dimension_numbers = #tpu.dot_dimension_numbers<[1], [0], [0], [1], [0, 0, 1, 1], [], []>} : vector<16x8xbf16>, vector<8x8xbf16>, vector<16x8xf32> -> vector<16x8xf32>
    %359 = arith.addf %354, %358 : vector<16x8xf32>
    %360 = vector.extract_strided_slice %342 {offsets = [0, 0], sizes = [1, 8], strides = [1, 1]} : vector<3x8xf32> to vector<1x8xf32>
    %361 = vector.broadcast %360 : vector<1x8xf32> to vector<16x8xf32>
    %362 = arith.addf %359, %361 : vector<16x8xf32>
    %cst_119 = arith.constant 0.000000e+00 : f32
    %363 = vector.broadcast %cst_119 : f32 to vector<16x8xf32>
    %364 = arith.maximumf %362, %363 : vector<16x8xf32>
    %365 = vector.extract_strided_slice %342 {offsets = [1, 0], sizes = [1, 8], strides = [1, 1]} : vector<3x8xf32> to vector<1x8xf32>
    %366 = vector.broadcast %365 : vector<1x8xf32> to vector<16x8xf32>
    %367 = arith.mulf %364, %366 : vector<16x8xf32>
    %368 = vector.extract_strided_slice %342 {offsets = [2, 0], sizes = [1, 8], strides = [1, 1]} : vector<3x8xf32> to vector<1x8xf32>
    %369 = vector.broadcast %368 : vector<1x8xf32> to vector<16x8xf32>
    %370 = arith.addf %367, %369 : vector<16x8xf32>
    %371 = vector.extract_strided_slice %252 {offsets = [3, 0, 0], sizes = [1, 8, 32], strides = [1, 1, 1]} : vector<4x8x32xbf16> to vector<1x8x32xbf16>
    %372 = vector.shape_cast %371 : vector<1x8x32xbf16> to vector<8x32xbf16>
    %373 = arith.truncf %370 : vector<16x8xf32> to vector<16x8xbf16>
    %cst_120 = arith.constant dense<0.000000e+00> : vector<16x32xf32>
    %374 = tpu.matmul %373, %372, %cst_120 {dimension_numbers = #tpu.dot_dimension_numbers<[1], [0], [0], [1], [0, 0, 1, 1], [], []>} : vector<16x8xbf16>, vector<8x32xbf16>, vector<16x32xf32> -> vector<16x32xf32>
    %375 = arith.addf %336, %374 : vector<16x32xf32>
    %376 = vector.extract_strided_slice %254 {offsets = [0, 0], sizes = [1, 32], strides = [1, 1]} : vector<3x32xf32> to vector<1x32xf32>
    %377 = vector.broadcast %376 : vector<1x32xf32> to vector<16x32xf32>
    %378 = arith.addf %375, %377 : vector<16x32xf32>
    %cst_121 = arith.constant 0.000000e+00 : f32
    %379 = vector.broadcast %cst_121 : f32 to vector<16x32xf32>
    %380 = arith.maximumf %378, %379 : vector<16x32xf32>
    %381 = vector.extract_strided_slice %254 {offsets = [1, 0], sizes = [1, 32], strides = [1, 1]} : vector<3x32xf32> to vector<1x32xf32>
    %382 = vector.broadcast %381 : vector<1x32xf32> to vector<16x32xf32>
    %383 = arith.mulf %380, %382 : vector<16x32xf32>
    %384 = vector.extract_strided_slice %254 {offsets = [2, 0], sizes = [1, 32], strides = [1, 1]} : vector<3x32xf32> to vector<1x32xf32>
    %385 = vector.broadcast %384 : vector<1x32xf32> to vector<16x32xf32>
    %386 = arith.addf %383, %385 : vector<16x32xf32>
    %cst_122 = arith.constant dense<0.000000e+00> : vector<32xf32>
    %387 = vector.multi_reduction <add>, %386, %cst_122 [0] : vector<16x32xf32> to vector<32xf32>
    %388 = vector.shape_cast %387 : vector<32xf32> to vector<1x32xf32>
    %cst_123 = arith.constant 1.600000e+01 : f32
    %389 = vector.broadcast %cst_123 : f32 to vector<1x32xf32>
    %390 = arith.divf %388, %389 : vector<1x32xf32>
    %c1_124 = arith.constant 1 : index
    %c0_125 = arith.constant 0 : index
    %c0_126 = arith.constant 0 : index
    %391 = vector.load %arg10[%c1_124, %c0_125, %c0_126] : memref<2x32x16xbf16, #tpu.memory_space<vmem>>, vector<1x32x16xbf16>
    %392 = vector.shape_cast %391 : vector<1x32x16xbf16> to vector<32x16xbf16>
    %393 = arith.truncf %390 : vector<1x32xf32> to vector<1x32xbf16>
    %cst_127 = arith.constant dense<0.000000e+00> : vector<1x16xf32>
    %394 = tpu.matmul %393, %392, %cst_127 {dimension_numbers = #tpu.dot_dimension_numbers<[1], [0], [0], [1], [0, 0, 1, 1], [], []>} : vector<1x32xbf16>, vector<32x16xbf16>, vector<1x16xf32> -> vector<1x16xf32>
    %c1_128 = arith.constant 1 : index
    %c0_129 = arith.constant 0 : index
    %c0_130 = arith.constant 0 : index
    %395 = vector.load %arg11[%c1_128, %c0_129, %c0_130] : memref<2x1x16xf32, #tpu.memory_space<vmem>>, vector<1x1x16xf32>
    %396 = vector.shape_cast %395 : vector<1x1x16xf32> to vector<1x16xf32>
    %397 = arith.addf %394, %396 : vector<1x16xf32>
    %cst_131 = arith.constant 0.000000e+00 : f32
    %398 = vector.broadcast %cst_131 : f32 to vector<1x16xf32>
    %399 = arith.maximumf %397, %398 : vector<1x16xf32>
    %c1_132 = arith.constant 1 : index
    %c0_133 = arith.constant 0 : index
    %c0_134 = arith.constant 0 : index
    %400 = vector.load %arg12[%c1_132, %c0_133, %c0_134] : memref<2x16x32xbf16, #tpu.memory_space<vmem>>, vector<1x16x32xbf16>
    %401 = vector.shape_cast %400 : vector<1x16x32xbf16> to vector<16x32xbf16>
    %402 = arith.truncf %399 : vector<1x16xf32> to vector<1x16xbf16>
    %cst_135 = arith.constant dense<0.000000e+00> : vector<1x32xf32>
    %403 = tpu.matmul %402, %401, %cst_135 {dimension_numbers = #tpu.dot_dimension_numbers<[1], [0], [0], [1], [0, 0, 1, 1], [], []>} : vector<1x16xbf16>, vector<16x32xbf16>, vector<1x32xf32> -> vector<1x32xf32>
    %c1_136 = arith.constant 1 : index
    %c0_137 = arith.constant 0 : index
    %c0_138 = arith.constant 0 : index
    %404 = vector.load %arg13[%c1_136, %c0_137, %c0_138] : memref<2x1x32xf32, #tpu.memory_space<vmem>>, vector<1x1x32xf32>
    %405 = vector.shape_cast %404 : vector<1x1x32xf32> to vector<1x32xf32>
    %406 = arith.addf %403, %405 : vector<1x32xf32>
    %407 = arith.negf %406 : vector<1x32xf32>
    %408 = math.exp %407 : vector<1x32xf32>
    %cst_139 = arith.constant 1.000000e+00 : f32
    %409 = vector.broadcast %cst_139 : f32 to vector<1x32xf32>
    %410 = arith.addf %409, %408 : vector<1x32xf32>
    %411 = arith.divf %409, %410 : vector<1x32xf32>
    %412 = vector.broadcast %411 : vector<1x32xf32> to vector<16x32xf32>
    %413 = arith.mulf %386, %412 : vector<16x32xf32>
    %414 = arith.addf %413, %226 : vector<16x32xf32>
    %415 = arith.truncf %414 : vector<16x32xf32> to vector<16x32xbf16>
    %c1_140 = arith.constant 1 : index
    %c0_141 = arith.constant 0 : index
    %c0_142 = arith.constant 0 : index
    %416 = vector.load %arg14[%c1_140, %c0_141, %c0_142] : memref<2x32x64xbf16, #tpu.memory_space<vmem>>, vector<1x32x64xbf16>
    %417 = vector.shape_cast %416 : vector<1x32x64xbf16> to vector<32x64xbf16>
    %cst_143 = arith.constant dense<0.000000e+00> : vector<16x64xf32>
    %418 = tpu.matmul %415, %417, %cst_143 {dimension_numbers = #tpu.dot_dimension_numbers<[1], [0], [0], [1], [0, 0, 1, 1], [], []>} : vector<16x32xbf16>, vector<32x64xbf16>, vector<16x64xf32> -> vector<16x64xf32>
    %419 = arith.addf %230, %418 : vector<16x64xf32>
    %c0_144 = arith.constant 0 : index
    %c0_145 = arith.constant 0 : index
    %420 = vector.load %arg15[%c0_144, %c0_145] : memref<1x64xf32, #tpu.memory_space<vmem>>, vector<1x64xf32>
    %421 = vector.broadcast %420 : vector<1x64xf32> to vector<16x64xf32>
    %422 = arith.addf %419, %421 : vector<16x64xf32>
    %cst_146 = arith.constant 0.000000e+00 : f32
    %423 = vector.broadcast %cst_146 : f32 to vector<16x64xf32>
    %424 = arith.maximumf %422, %423 : vector<16x64xf32>
    %425 = arith.truncf %424 : vector<16x64xf32> to vector<16x64xbf16>
    %c0_147 = arith.constant 0 : index
    %c0_148 = arith.constant 0 : index
    %426 = vector.load %arg16[%c0_147, %c0_148] : memref<64x16xbf16, #tpu.memory_space<vmem>>, vector<64x16xbf16>
    %cst_149 = arith.constant dense<0.000000e+00> : vector<16x16xf32>
    %427 = tpu.matmul %425, %426, %cst_149 {dimension_numbers = #tpu.dot_dimension_numbers<[1], [0], [0], [1], [0, 0, 1, 1], [], []>} : vector<16x64xbf16>, vector<64x16xbf16>, vector<16x16xf32> -> vector<16x16xf32>
    %c0_150 = arith.constant 0 : index
    %c0_151 = arith.constant 0 : index
    %428 = vector.load %arg17[%c0_150, %c0_151] : memref<1x16xf32, #tpu.memory_space<vmem>>, vector<1x16xf32>
    %429 = vector.broadcast %428 : vector<1x16xf32> to vector<16x16xf32>
    %430 = arith.addf %427, %429 : vector<16x16xf32>
    %431 = math.tanh %430 : vector<16x16xf32>
    %c0_152 = arith.constant 0 : index
    %c0_153 = arith.constant 0 : index
    %432 = vector.load %arg18[%c0_152, %c0_153] : memref<16x64xbf16, #tpu.memory_space<vmem>>, vector<16x64xbf16>
    %433 = arith.truncf %431 : vector<16x16xf32> to vector<16x16xbf16>
    %cst_154 = arith.constant dense<0.000000e+00> : vector<16x64xf32>
    %434 = tpu.matmul %433, %432, %cst_154 {dimension_numbers = #tpu.dot_dimension_numbers<[1], [0], [0], [1], [0, 0, 1, 1], [], []>} : vector<16x16xbf16>, vector<16x64xbf16>, vector<16x64xf32> -> vector<16x64xf32>
    %c0_155 = arith.constant 0 : index
    %c0_156 = arith.constant 0 : index
    %435 = vector.load %arg19[%c0_155, %c0_156] : memref<1x64xf32, #tpu.memory_space<vmem>>, vector<1x64xf32>
    %436 = vector.broadcast %435 : vector<1x64xf32> to vector<16x64xf32>
    %437 = arith.addf %434, %436 : vector<16x64xf32>
    %cst_157 = arith.constant dense<0xFF800000> : vector<64xf32>
    %438 = vector.multi_reduction <maximumf>, %437, %cst_157 [0] : vector<16x64xf32> to vector<64xf32>
    %439 = vector.shape_cast %438 : vector<64xf32> to vector<1x64xf32>
    %440 = vector.broadcast %439 : vector<1x64xf32> to vector<16x64xf32>
    %441 = arith.subf %437, %440 : vector<16x64xf32>
    %442 = math.exp %441 : vector<16x64xf32>
    %cst_158 = arith.constant dense<0.000000e+00> : vector<64xf32>
    %443 = vector.multi_reduction <add>, %442, %cst_158 [0] : vector<16x64xf32> to vector<64xf32>
    %444 = vector.shape_cast %443 : vector<64xf32> to vector<1x64xf32>
    %445 = tpu.reciprocal %444 {approx = true} : vector<1x64xf32> -> vector<1x64xf32>
    %446 = vector.broadcast %445 : vector<1x64xf32> to vector<16x64xf32>
    %447 = arith.mulf %442, %446 : vector<16x64xf32>
    %448 = arith.mulf %447, %424 : vector<16x64xf32>
    %cst_159 = arith.constant dense<0.000000e+00> : vector<64xf32>
    %449 = vector.multi_reduction <add>, %448, %cst_159 [0] : vector<16x64xf32> to vector<64xf32>
    %450 = vector.shape_cast %449 : vector<64xf32> to vector<1x64xf32>
    %451 = arith.mulf %448, %424 : vector<16x64xf32>
    %cst_160 = arith.constant dense<0.000000e+00> : vector<64xf32>
    %452 = vector.multi_reduction <add>, %451, %cst_160 [0] : vector<16x64xf32> to vector<64xf32>
    %453 = vector.shape_cast %452 : vector<64xf32> to vector<1x64xf32>
    %454 = arith.mulf %450, %450 : vector<1x64xf32>
    %455 = arith.subf %453, %454 : vector<1x64xf32>
    %cst_161 = arith.constant 0.000000e+00 : f32
    %456 = vector.broadcast %cst_161 : f32 to vector<1x64xf32>
    %457 = arith.maximumf %455, %456 : vector<1x64xf32>
    %cst_162 = arith.constant 1.000000e-07 : f32
    %458 = vector.broadcast %cst_162 : f32 to vector<1x64xf32>
    %459 = arith.addf %457, %458 : vector<1x64xf32>
    %460 = math.sqrt %459 : vector<1x64xf32>
    %461 = tpu.concatenate %450, %460 in 1 : vector<1x64xf32>, vector<1x64xf32> -> vector<1x128xf32>
    %c0_163 = arith.constant 0 : index
    %c0_164 = arith.constant 0 : index
    %462 = vector.load %arg20[%c0_163, %c0_164] : memref<128x32xbf16, #tpu.memory_space<vmem>>, vector<128x32xbf16>
    %463 = arith.truncf %461 : vector<1x128xf32> to vector<1x128xbf16>
    %cst_165 = arith.constant dense<0.000000e+00> : vector<1x32xf32>
    %464 = tpu.matmul %463, %462, %cst_165 {dimension_numbers = #tpu.dot_dimension_numbers<[1], [0], [0], [1], [0, 0, 1, 1], [], []>} : vector<1x128xbf16>, vector<128x32xbf16>, vector<1x32xf32> -> vector<1x32xf32>
    %c0_166 = arith.constant 0 : index
    %c0_167 = arith.constant 0 : index
    %465 = vector.load %arg21[%c0_166, %c0_167] : memref<1x32xf32, #tpu.memory_space<vmem>>, vector<1x32xf32>
    %466 = arith.addf %464, %465 : vector<1x32xf32>
    %c0_168 = arith.constant 0 : index
    %c0_169 = arith.constant 0 : index
    %467 = vector.load %arg22[%c0_168, %c0_169] : memref<2x32xf32, #tpu.memory_space<vmem>>, vector<2x32xf32>
    %468 = vector.extract_strided_slice %467 {offsets = [0, 0], sizes = [1, 32], strides = [1, 1]} : vector<2x32xf32> to vector<1x32xf32>
    %469 = arith.mulf %466, %468 : vector<1x32xf32>
    %470 = vector.extract_strided_slice %467 {offsets = [1, 0], sizes = [1, 32], strides = [1, 1]} : vector<2x32xf32> to vector<1x32xf32>
    %471 = arith.addf %469, %470 : vector<1x32xf32>
    %472 = arith.mulf %471, %471 : vector<1x32xf32>
    %cst_170 = arith.constant dense<0.000000e+00> : vector<1xf32>
    %473 = vector.multi_reduction <add>, %472, %cst_170 [1] : vector<1x32xf32> to vector<1xf32>
    %474 = vector.shape_cast %473 : vector<1xf32> to vector<1x1xf32>
    %cst_171 = arith.constant 1.000000e-24 : f32
    %475 = vector.broadcast %cst_171 : f32 to vector<1x1xf32>
    %476 = arith.maximumf %474, %475 : vector<1x1xf32>
    %477 = math.rsqrt %476 : vector<1x1xf32>
    %478 = vector.broadcast %477 : vector<1x1xf32> to vector<1x32xf32>
    %479 = arith.mulf %471, %478 : vector<1x32xf32>
    %c0_172 = arith.constant 0 : index
    %c0_173 = arith.constant 0 : index
    %c0_174 = arith.constant 0 : index
    %480 = vector.load %arg40[%c0_172, %c0_173, %c0_174] : memref<1x1x32xf32, #tpu.memory_space<vmem>>, vector<1x1x32xf32>
    %481 = vector.shape_cast %480 : vector<1x1x32xf32> to vector<1x32xf32>
    %482 = vector.shape_cast %479 : vector<1x32xf32> to vector<1x1x32xf32>
    tpu.vector_store %arg40[%c0_172, %c0_173, %c0_174], %482 {strides = array<i32>} : memref<1x1x32xf32, #tpu.memory_space<vmem>>, vector<1x1x32xf32>,
    %c0_175 = arith.constant 0 : index
    %c0_176 = arith.constant 0 : index
    %483 = vector.load %arg23[%c0_175, %c0_176] : memref<8x32xf32, #tpu.memory_space<vmem>>, vector<8x32xf32>
    %c0_177 = arith.constant 0 : index
    %c0_178 = arith.constant 0 : index
    %484 = vector.load %arg24[%c0_177, %c0_178] : memref<64x32xbf16, #tpu.memory_space<vmem>>, vector<64x32xbf16>
    %cst_179 = arith.constant dense<0.000000e+00> : vector<16x32xf32>
    %485 = tpu.matmul %425, %484, %cst_179 {dimension_numbers = #tpu.dot_dimension_numbers<[1], [0], [0], [1], [0, 0, 1, 1], [], []>} : vector<16x64xbf16>, vector<64x32xbf16>, vector<16x32xf32> -> vector<16x32xf32>
    %c0_180 = arith.constant 0 : index
    %c0_181 = arith.constant 0 : index
    %486 = vector.load %arg25[%c0_180, %c0_181] : memref<1x32xf32, #tpu.memory_space<vmem>>, vector<1x32xf32>
    %487 = vector.broadcast %486 : vector<1x32xf32> to vector<16x32xf32>
    %488 = arith.addf %485, %487 : vector<16x32xf32>
    %489 = arith.truncf %488 : vector<16x32xf32> to vector<16x32xbf16>
    %c0_182 = arith.constant 0 : index
    %c0_183 = arith.constant 0 : index
    %490 = vector.load %arg26[%c0_182, %c0_183] : memref<64x32xbf16, #tpu.memory_space<vmem>>, vector<64x32xbf16>
    %cst_184 = arith.constant dense<0.000000e+00> : vector<16x32xf32>
    %491 = tpu.matmul %425, %490, %cst_184 {dimension_numbers = #tpu.dot_dimension_numbers<[1], [0], [0], [1], [0, 0, 1, 1], [], []>} : vector<16x64xbf16>, vector<64x32xbf16>, vector<16x32xf32> -> vector<16x32xf32>
    %c0_185 = arith.constant 0 : index
    %c0_186 = arith.constant 0 : index
    %492 = vector.load %arg27[%c0_185, %c0_186] : memref<1x32xf32, #tpu.memory_space<vmem>>, vector<1x32xf32>
    %493 = vector.broadcast %492 : vector<1x32xf32> to vector<16x32xf32>
    %494 = arith.addf %491, %493 : vector<16x32xf32>
    %495 = arith.truncf %494 : vector<16x32xf32> to vector<16x32xbf16>
    %c0_187 = arith.constant 0 : index
    %c0_188 = arith.constant 0 : index
    %496 = vector.load %arg28[%c0_187, %c0_188] : memref<32x32xbf16, #tpu.memory_space<vmem>>, vector<32x32xbf16>
    %497 = arith.truncf %483 : vector<8x32xf32> to vector<8x32xbf16>
    %cst_189 = arith.constant dense<0.000000e+00> : vector<8x32xf32>
    %498 = tpu.matmul %497, %496, %cst_189 {dimension_numbers = #tpu.dot_dimension_numbers<[1], [0], [0], [1], [0, 0, 1, 1], [], []>} : vector<8x32xbf16>, vector<32x32xbf16>, vector<8x32xf32> -> vector<8x32xf32>
    %c0_190 = arith.constant 0 : index
    %c0_191 = arith.constant 0 : index
    %499 = vector.load %arg29[%c0_190, %c0_191] : memref<1x32xf32, #tpu.memory_space<vmem>>, vector<1x32xf32>
    %500 = vector.broadcast %499 : vector<1x32xf32> to vector<8x32xf32>
    %501 = arith.addf %498, %500 : vector<8x32xf32>
    %502 = arith.truncf %501 : vector<8x32xf32> to vector<8x32xbf16>
    %503 = vector.extract_strided_slice %502 {offsets = [0, 0], sizes = [8, 8], strides = [1, 1]} : vector<8x32xbf16> to vector<8x8xbf16>
    %504 = vector.extract_strided_slice %489 {offsets = [0, 0], sizes = [16, 8], strides = [1, 1]} : vector<16x32xbf16> to vector<16x8xbf16>
    %505 = vector.extract_strided_slice %495 {offsets = [0, 0], sizes = [16, 8], strides = [1, 1]} : vector<16x32xbf16> to vector<16x8xbf16>
    %cst_192 = arith.constant dense<0.000000e+00> : vector<8x16xf32>
    %506 = tpu.matmul %503, %504, %cst_192 {dimension_numbers = #tpu.dot_dimension_numbers<[1], [1], [0], [0], [0, 0, 1, 0], [], []>} : vector<8x8xbf16>, vector<16x8xbf16>, vector<8x16xf32> -> vector<8x16xf32>
    %cst_193 = arith.constant 0.353553385 : f32
    %507 = vector.broadcast %cst_193 : f32 to vector<8x16xf32>
    %508 = arith.mulf %506, %507 : vector<8x16xf32>
    %cst_194 = arith.constant dense<0xFF800000> : vector<8xf32>
    %509 = vector.multi_reduction <maximumf>, %508, %cst_194 [1] : vector<8x16xf32> to vector<8xf32>
    %510 = vector.shape_cast %509 : vector<8xf32> to vector<8x1xf32>
    %511 = vector.broadcast %510 : vector<8x1xf32> to vector<8x16xf32>
    %512 = arith.subf %508, %511 : vector<8x16xf32>
    %513 = math.exp %512 : vector<8x16xf32>
    %cst_195 = arith.constant dense<0.000000e+00> : vector<8xf32>
    %514 = vector.multi_reduction <add>, %513, %cst_195 [1] : vector<8x16xf32> to vector<8xf32>
    %515 = vector.shape_cast %514 : vector<8xf32> to vector<8x1xf32>
    %516 = tpu.reciprocal %515 {approx = true} : vector<8x1xf32> -> vector<8x1xf32>
    %517 = vector.broadcast %516 : vector<8x1xf32> to vector<8x16xf32>
    %518 = arith.mulf %513, %517 : vector<8x16xf32>
    %519 = arith.truncf %518 : vector<8x16xf32> to vector<8x16xbf16>
    %cst_196 = arith.constant dense<0.000000e+00> : vector<8x8xf32>
    %520 = tpu.matmul %519, %505, %cst_196 {dimension_numbers = #tpu.dot_dimension_numbers<[1], [0], [0], [1], [0, 0, 1, 1], [], []>} : vector<8x16xbf16>, vector<16x8xbf16>, vector<8x8xf32> -> vector<8x8xf32>
    %521 = vector.extract_strided_slice %502 {offsets = [0, 8], sizes = [8, 8], strides = [1, 1]} : vector<8x32xbf16> to vector<8x8xbf16>
    %522 = vector.extract_strided_slice %489 {offsets = [0, 8], sizes = [16, 8], strides = [1, 1]} : vector<16x32xbf16> to vector<16x8xbf16>
    %523 = vector.extract_strided_slice %495 {offsets = [0, 8], sizes = [16, 8], strides = [1, 1]} : vector<16x32xbf16> to vector<16x8xbf16>
    %cst_197 = arith.constant dense<0.000000e+00> : vector<8x16xf32>
    %524 = tpu.matmul %521, %522, %cst_197 {dimension_numbers = #tpu.dot_dimension_numbers<[1], [1], [0], [0], [0, 0, 1, 0], [], []>} : vector<8x8xbf16>, vector<16x8xbf16>, vector<8x16xf32> -> vector<8x16xf32>
    %cst_198 = arith.constant 0.353553385 : f32
    %525 = vector.broadcast %cst_198 : f32 to vector<8x16xf32>
    %526 = arith.mulf %524, %525 : vector<8x16xf32>
    %cst_199 = arith.constant dense<0xFF800000> : vector<8xf32>
    %527 = vector.multi_reduction <maximumf>, %526, %cst_199 [1] : vector<8x16xf32> to vector<8xf32>
    %528 = vector.shape_cast %527 : vector<8xf32> to vector<8x1xf32>
    %529 = vector.broadcast %528 : vector<8x1xf32> to vector<8x16xf32>
    %530 = arith.subf %526, %529 : vector<8x16xf32>
    %531 = math.exp %530 : vector<8x16xf32>
    %cst_200 = arith.constant dense<0.000000e+00> : vector<8xf32>
    %532 = vector.multi_reduction <add>, %531, %cst_200 [1] : vector<8x16xf32> to vector<8xf32>
    %533 = vector.shape_cast %532 : vector<8xf32> to vector<8x1xf32>
    %534 = tpu.reciprocal %533 {approx = true} : vector<8x1xf32> -> vector<8x1xf32>
    %535 = vector.broadcast %534 : vector<8x1xf32> to vector<8x16xf32>
    %536 = arith.mulf %531, %535 : vector<8x16xf32>
    %537 = arith.truncf %536 : vector<8x16xf32> to vector<8x16xbf16>
    %cst_201 = arith.constant dense<0.000000e+00> : vector<8x8xf32>
    %538 = tpu.matmul %537, %523, %cst_201 {dimension_numbers = #tpu.dot_dimension_numbers<[1], [0], [0], [1], [0, 0, 1, 1], [], []>} : vector<8x16xbf16>, vector<16x8xbf16>, vector<8x8xf32> -> vector<8x8xf32>
    %539 = vector.extract_strided_slice %502 {offsets = [0, 16], sizes = [8, 8], strides = [1, 1]} : vector<8x32xbf16> to vector<8x8xbf16>
    %540 = vector.extract_strided_slice %489 {offsets = [0, 16], sizes = [16, 8], strides = [1, 1]} : vector<16x32xbf16> to vector<16x8xbf16>
    %541 = vector.extract_strided_slice %495 {offsets = [0, 16], sizes = [16, 8], strides = [1, 1]} : vector<16x32xbf16> to vector<16x8xbf16>
    %cst_202 = arith.constant dense<0.000000e+00> : vector<8x16xf32>
    %542 = tpu.matmul %539, %540, %cst_202 {dimension_numbers = #tpu.dot_dimension_numbers<[1], [1], [0], [0], [0, 0, 1, 0], [], []>} : vector<8x8xbf16>, vector<16x8xbf16>, vector<8x16xf32> -> vector<8x16xf32>
    %cst_203 = arith.constant 0.353553385 : f32
    %543 = vector.broadcast %cst_203 : f32 to vector<8x16xf32>
    %544 = arith.mulf %542, %543 : vector<8x16xf32>
    %cst_204 = arith.constant dense<0xFF800000> : vector<8xf32>
    %545 = vector.multi_reduction <maximumf>, %544, %cst_204 [1] : vector<8x16xf32> to vector<8xf32>
    %546 = vector.shape_cast %545 : vector<8xf32> to vector<8x1xf32>
    %547 = vector.broadcast %546 : vector<8x1xf32> to vector<8x16xf32>
    %548 = arith.subf %544, %547 : vector<8x16xf32>
    %549 = math.exp %548 : vector<8x16xf32>
    %cst_205 = arith.constant dense<0.000000e+00> : vector<8xf32>
    %550 = vector.multi_reduction <add>, %549, %cst_205 [1] : vector<8x16xf32> to vector<8xf32>
    %551 = vector.shape_cast %550 : vector<8xf32> to vector<8x1xf32>
    %552 = tpu.reciprocal %551 {approx = true} : vector<8x1xf32> -> vector<8x1xf32>
    %553 = vector.broadcast %552 : vector<8x1xf32> to vector<8x16xf32>
    %554 = arith.mulf %549, %553 : vector<8x16xf32>
    %555 = arith.truncf %554 : vector<8x16xf32> to vector<8x16xbf16>
    %cst_206 = arith.constant dense<0.000000e+00> : vector<8x8xf32>
    %556 = tpu.matmul %555, %541, %cst_206 {dimension_numbers = #tpu.dot_dimension_numbers<[1], [0], [0], [1], [0, 0, 1, 1], [], []>} : vector<8x16xbf16>, vector<16x8xbf16>, vector<8x8xf32> -> vector<8x8xf32>
    %557 = vector.extract_strided_slice %502 {offsets = [0, 24], sizes = [8, 8], strides = [1, 1]} : vector<8x32xbf16> to vector<8x8xbf16>
    %558 = vector.extract_strided_slice %489 {offsets = [0, 24], sizes = [16, 8], strides = [1, 1]} : vector<16x32xbf16> to vector<16x8xbf16>
    %559 = vector.extract_strided_slice %495 {offsets = [0, 24], sizes = [16, 8], strides = [1, 1]} : vector<16x32xbf16> to vector<16x8xbf16>
    %cst_207 = arith.constant dense<0.000000e+00> : vector<8x16xf32>
    %560 = tpu.matmul %557, %558, %cst_207 {dimension_numbers = #tpu.dot_dimension_numbers<[1], [1], [0], [0], [0, 0, 1, 0], [], []>} : vector<8x8xbf16>, vector<16x8xbf16>, vector<8x16xf32> -> vector<8x16xf32>
    %cst_208 = arith.constant 0.353553385 : f32
    %561 = vector.broadcast %cst_208 : f32 to vector<8x16xf32>
    %562 = arith.mulf %560, %561 : vector<8x16xf32>
    %cst_209 = arith.constant dense<0xFF800000> : vector<8xf32>
    %563 = vector.multi_reduction <maximumf>, %562, %cst_209 [1] : vector<8x16xf32> to vector<8xf32>
    %564 = vector.shape_cast %563 : vector<8xf32> to vector<8x1xf32>
    %565 = vector.broadcast %564 : vector<8x1xf32> to vector<8x16xf32>
    %566 = arith.subf %562, %565 : vector<8x16xf32>
    %567 = math.exp %566 : vector<8x16xf32>
    %cst_210 = arith.constant dense<0.000000e+00> : vector<8xf32>
    %568 = vector.multi_reduction <add>, %567, %cst_210 [1] : vector<8x16xf32> to vector<8xf32>
    %569 = vector.shape_cast %568 : vector<8xf32> to vector<8x1xf32>
    %570 = tpu.reciprocal %569 {approx = true} : vector<8x1xf32> -> vector<8x1xf32>
    %571 = vector.broadcast %570 : vector<8x1xf32> to vector<8x16xf32>
    %572 = arith.mulf %567, %571 : vector<8x16xf32>
    %573 = arith.truncf %572 : vector<8x16xf32> to vector<8x16xbf16>
    %cst_211 = arith.constant dense<0.000000e+00> : vector<8x8xf32>
    %574 = tpu.matmul %573, %559, %cst_211 {dimension_numbers = #tpu.dot_dimension_numbers<[1], [0], [0], [1], [0, 0, 1, 1], [], []>} : vector<8x16xbf16>, vector<16x8xbf16>, vector<8x8xf32> -> vector<8x8xf32>
    %575 = tpu.concatenate %520, %538, %556, %574 in 1 : vector<8x8xf32>, vector<8x8xf32>, vector<8x8xf32>, vector<8x8xf32> -> vector<8x32xf32>
    %c0_212 = arith.constant 0 : index
    %c0_213 = arith.constant 0 : index
    %576 = vector.load %arg30[%c0_212, %c0_213] : memref<32x32xbf16, #tpu.memory_space<vmem>>, vector<32x32xbf16>
    %577 = arith.truncf %575 : vector<8x32xf32> to vector<8x32xbf16>
    %cst_214 = arith.constant dense<0.000000e+00> : vector<8x32xf32>
    %578 = tpu.matmul %577, %576, %cst_214 {dimension_numbers = #tpu.dot_dimension_numbers<[1], [0], [0], [1], [0, 0, 1, 1], [], []>} : vector<8x32xbf16>, vector<32x32xbf16>, vector<8x32xf32> -> vector<8x32xf32>
    %c0_215 = arith.constant 0 : index
    %c0_216 = arith.constant 0 : index
    %579 = vector.load %arg31[%c0_215, %c0_216] : memref<1x32xf32, #tpu.memory_space<vmem>>, vector<1x32xf32>
    %580 = vector.broadcast %579 : vector<1x32xf32> to vector<8x32xf32>
    %581 = arith.addf %578, %580 : vector<8x32xf32>
    %582 = arith.addf %581, %483 : vector<8x32xf32>
    %c0_217 = arith.constant 0 : index
    %c0_218 = arith.constant 0 : index
    %583 = vector.load %arg32[%c0_217, %c0_218] : memref<64x32xbf16, #tpu.memory_space<vmem>>, vector<64x32xbf16>
    %cst_219 = arith.constant dense<0.000000e+00> : vector<16x32xf32>
    %584 = tpu.matmul %425, %583, %cst_219 {dimension_numbers = #tpu.dot_dimension_numbers<[1], [0], [0], [1], [0, 0, 1, 1], [], []>} : vector<16x64xbf16>, vector<64x32xbf16>, vector<16x32xf32> -> vector<16x32xf32>
    %c0_220 = arith.constant 0 : index
    %c0_221 = arith.constant 0 : index
    %585 = vector.load %arg33[%c0_220, %c0_221] : memref<1x32xf32, #tpu.memory_space<vmem>>, vector<1x32xf32>
    %586 = vector.broadcast %585 : vector<1x32xf32> to vector<16x32xf32>
    %587 = arith.addf %584, %586 : vector<16x32xf32>
    %588 = arith.truncf %587 : vector<16x32xf32> to vector<16x32xbf16>
    %c0_222 = arith.constant 0 : index
    %c0_223 = arith.constant 0 : index
    %589 = vector.load %arg34[%c0_222, %c0_223] : memref<64x32xbf16, #tpu.memory_space<vmem>>, vector<64x32xbf16>
    %cst_224 = arith.constant dense<0.000000e+00> : vector<16x32xf32>
    %590 = tpu.matmul %425, %589, %cst_224 {dimension_numbers = #tpu.dot_dimension_numbers<[1], [0], [0], [1], [0, 0, 1, 1], [], []>} : vector<16x64xbf16>, vector<64x32xbf16>, vector<16x32xf32> -> vector<16x32xf32>
    %c0_225 = arith.constant 0 : index
    %c0_226 = arith.constant 0 : index
    %591 = vector.load %arg35[%c0_225, %c0_226] : memref<1x32xf32, #tpu.memory_space<vmem>>, vector<1x32xf32>
    %592 = vector.broadcast %591 : vector<1x32xf32> to vector<16x32xf32>
    %593 = arith.addf %590, %592 : vector<16x32xf32>
    %594 = arith.truncf %593 : vector<16x32xf32> to vector<16x32xbf16>
    %c0_227 = arith.constant 0 : index
    %c0_228 = arith.constant 0 : index
    %595 = vector.load %arg36[%c0_227, %c0_228] : memref<32x32xbf16, #tpu.memory_space<vmem>>, vector<32x32xbf16>
    %596 = arith.truncf %582 : vector<8x32xf32> to vector<8x32xbf16>
    %cst_229 = arith.constant dense<0.000000e+00> : vector<8x32xf32>
    %597 = tpu.matmul %596, %595, %cst_229 {dimension_numbers = #tpu.dot_dimension_numbers<[1], [0], [0], [1], [0, 0, 1, 1], [], []>} : vector<8x32xbf16>, vector<32x32xbf16>, vector<8x32xf32> -> vector<8x32xf32>
    %c0_230 = arith.constant 0 : index
    %c0_231 = arith.constant 0 : index
    %598 = vector.load %arg37[%c0_230, %c0_231] : memref<1x32xf32, #tpu.memory_space<vmem>>, vector<1x32xf32>
    %599 = vector.broadcast %598 : vector<1x32xf32> to vector<8x32xf32>
    %600 = arith.addf %597, %599 : vector<8x32xf32>
    %601 = arith.truncf %600 : vector<8x32xf32> to vector<8x32xbf16>
    %602 = vector.extract_strided_slice %601 {offsets = [0, 0], sizes = [8, 8], strides = [1, 1]} : vector<8x32xbf16> to vector<8x8xbf16>
    %603 = vector.extract_strided_slice %588 {offsets = [0, 0], sizes = [16, 8], strides = [1, 1]} : vector<16x32xbf16> to vector<16x8xbf16>
    %604 = vector.extract_strided_slice %594 {offsets = [0, 0], sizes = [16, 8], strides = [1, 1]} : vector<16x32xbf16> to vector<16x8xbf16>
    %cst_232 = arith.constant dense<0.000000e+00> : vector<8x16xf32>
    %605 = tpu.matmul %602, %603, %cst_232 {dimension_numbers = #tpu.dot_dimension_numbers<[1], [1], [0], [0], [0, 0, 1, 0], [], []>} : vector<8x8xbf16>, vector<16x8xbf16>, vector<8x16xf32> -> vector<8x16xf32>
    %cst_233 = arith.constant 0.353553385 : f32
    %606 = vector.broadcast %cst_233 : f32 to vector<8x16xf32>
    %607 = arith.mulf %605, %606 : vector<8x16xf32>
    %cst_234 = arith.constant dense<0xFF800000> : vector<8xf32>
    %608 = vector.multi_reduction <maximumf>, %607, %cst_234 [1] : vector<8x16xf32> to vector<8xf32>
    %609 = vector.shape_cast %608 : vector<8xf32> to vector<8x1xf32>
    %610 = vector.broadcast %609 : vector<8x1xf32> to vector<8x16xf32>
    %611 = arith.subf %607, %610 : vector<8x16xf32>
    %612 = math.exp %611 : vector<8x16xf32>
    %cst_235 = arith.constant dense<0.000000e+00> : vector<8xf32>
    %613 = vector.multi_reduction <add>, %612, %cst_235 [1] : vector<8x16xf32> to vector<8xf32>
    %614 = vector.shape_cast %613 : vector<8xf32> to vector<8x1xf32>
    %615 = tpu.reciprocal %614 {approx = true} : vector<8x1xf32> -> vector<8x1xf32>
    %616 = vector.broadcast %615 : vector<8x1xf32> to vector<8x16xf32>
    %617 = arith.mulf %612, %616 : vector<8x16xf32>
    %618 = arith.truncf %617 : vector<8x16xf32> to vector<8x16xbf16>
    %cst_236 = arith.constant dense<0.000000e+00> : vector<8x8xf32>
    %619 = tpu.matmul %618, %604, %cst_236 {dimension_numbers = #tpu.dot_dimension_numbers<[1], [0], [0], [1], [0, 0, 1, 1], [], []>} : vector<8x16xbf16>, vector<16x8xbf16>, vector<8x8xf32> -> vector<8x8xf32>
    %620 = vector.extract_strided_slice %601 {offsets = [0, 8], sizes = [8, 8], strides = [1, 1]} : vector<8x32xbf16> to vector<8x8xbf16>
    %621 = vector.extract_strided_slice %588 {offsets = [0, 8], sizes = [16, 8], strides = [1, 1]} : vector<16x32xbf16> to vector<16x8xbf16>
    %622 = vector.extract_strided_slice %594 {offsets = [0, 8], sizes = [16, 8], strides = [1, 1]} : vector<16x32xbf16> to vector<16x8xbf16>
    %cst_237 = arith.constant dense<0.000000e+00> : vector<8x16xf32>
    %623 = tpu.matmul %620, %621, %cst_237 {dimension_numbers = #tpu.dot_dimension_numbers<[1], [1], [0], [0], [0, 0, 1, 0], [], []>} : vector<8x8xbf16>, vector<16x8xbf16>, vector<8x16xf32> -> vector<8x16xf32>
    %cst_238 = arith.constant 0.353553385 : f32
    %624 = vector.broadcast %cst_238 : f32 to vector<8x16xf32>
    %625 = arith.mulf %623, %624 : vector<8x16xf32>
    %cst_239 = arith.constant dense<0xFF800000> : vector<8xf32>
    %626 = vector.multi_reduction <maximumf>, %625, %cst_239 [1] : vector<8x16xf32> to vector<8xf32>
    %627 = vector.shape_cast %626 : vector<8xf32> to vector<8x1xf32>
    %628 = vector.broadcast %627 : vector<8x1xf32> to vector<8x16xf32>
    %629 = arith.subf %625, %628 : vector<8x16xf32>
    %630 = math.exp %629 : vector<8x16xf32>
    %cst_240 = arith.constant dense<0.000000e+00> : vector<8xf32>
    %631 = vector.multi_reduction <add>, %630, %cst_240 [1] : vector<8x16xf32> to vector<8xf32>
    %632 = vector.shape_cast %631 : vector<8xf32> to vector<8x1xf32>
    %633 = tpu.reciprocal %632 {approx = true} : vector<8x1xf32> -> vector<8x1xf32>
    %634 = vector.broadcast %633 : vector<8x1xf32> to vector<8x16xf32>
    %635 = arith.mulf %630, %634 : vector<8x16xf32>
    %636 = arith.truncf %635 : vector<8x16xf32> to vector<8x16xbf16>
    %cst_241 = arith.constant dense<0.000000e+00> : vector<8x8xf32>
    %637 = tpu.matmul %636, %622, %cst_241 {dimension_numbers = #tpu.dot_dimension_numbers<[1], [0], [0], [1], [0, 0, 1, 1], [], []>} : vector<8x16xbf16>, vector<16x8xbf16>, vector<8x8xf32> -> vector<8x8xf32>
    %638 = vector.extract_strided_slice %601 {offsets = [0, 16], sizes = [8, 8], strides = [1, 1]} : vector<8x32xbf16> to vector<8x8xbf16>
    %639 = vector.extract_strided_slice %588 {offsets = [0, 16], sizes = [16, 8], strides = [1, 1]} : vector<16x32xbf16> to vector<16x8xbf16>
    %640 = vector.extract_strided_slice %594 {offsets = [0, 16], sizes = [16, 8], strides = [1, 1]} : vector<16x32xbf16> to vector<16x8xbf16>
    %cst_242 = arith.constant dense<0.000000e+00> : vector<8x16xf32>
    %641 = tpu.matmul %638, %639, %cst_242 {dimension_numbers = #tpu.dot_dimension_numbers<[1], [1], [0], [0], [0, 0, 1, 0], [], []>} : vector<8x8xbf16>, vector<16x8xbf16>, vector<8x16xf32> -> vector<8x16xf32>
    %cst_243 = arith.constant 0.353553385 : f32
    %642 = vector.broadcast %cst_243 : f32 to vector<8x16xf32>
    %643 = arith.mulf %641, %642 : vector<8x16xf32>
    %cst_244 = arith.constant dense<0xFF800000> : vector<8xf32>
    %644 = vector.multi_reduction <maximumf>, %643, %cst_244 [1] : vector<8x16xf32> to vector<8xf32>
    %645 = vector.shape_cast %644 : vector<8xf32> to vector<8x1xf32>
    %646 = vector.broadcast %645 : vector<8x1xf32> to vector<8x16xf32>
    %647 = arith.subf %643, %646 : vector<8x16xf32>
    %648 = math.exp %647 : vector<8x16xf32>
    %cst_245 = arith.constant dense<0.000000e+00> : vector<8xf32>
    %649 = vector.multi_reduction <add>, %648, %cst_245 [1] : vector<8x16xf32> to vector<8xf32>
    %650 = vector.shape_cast %649 : vector<8xf32> to vector<8x1xf32>
    %651 = tpu.reciprocal %650 {approx = true} : vector<8x1xf32> -> vector<8x1xf32>
    %652 = vector.broadcast %651 : vector<8x1xf32> to vector<8x16xf32>
    %653 = arith.mulf %648, %652 : vector<8x16xf32>
    %654 = arith.truncf %653 : vector<8x16xf32> to vector<8x16xbf16>
    %cst_246 = arith.constant dense<0.000000e+00> : vector<8x8xf32>
    %655 = tpu.matmul %654, %640, %cst_246 {dimension_numbers = #tpu.dot_dimension_numbers<[1], [0], [0], [1], [0, 0, 1, 1], [], []>} : vector<8x16xbf16>, vector<16x8xbf16>, vector<8x8xf32> -> vector<8x8xf32>
    %656 = vector.extract_strided_slice %601 {offsets = [0, 24], sizes = [8, 8], strides = [1, 1]} : vector<8x32xbf16> to vector<8x8xbf16>
    %657 = vector.extract_strided_slice %588 {offsets = [0, 24], sizes = [16, 8], strides = [1, 1]} : vector<16x32xbf16> to vector<16x8xbf16>
    %658 = vector.extract_strided_slice %594 {offsets = [0, 24], sizes = [16, 8], strides = [1, 1]} : vector<16x32xbf16> to vector<16x8xbf16>
    %cst_247 = arith.constant dense<0.000000e+00> : vector<8x16xf32>
    %659 = tpu.matmul %656, %657, %cst_247 {dimension_numbers = #tpu.dot_dimension_numbers<[1], [1], [0], [0], [0, 0, 1, 0], [], []>} : vector<8x8xbf16>, vector<16x8xbf16>, vector<8x16xf32> -> vector<8x16xf32>
    %cst_248 = arith.constant 0.353553385 : f32
    %660 = vector.broadcast %cst_248 : f32 to vector<8x16xf32>
    %661 = arith.mulf %659, %660 : vector<8x16xf32>
    %cst_249 = arith.constant dense<0xFF800000> : vector<8xf32>
    %662 = vector.multi_reduction <maximumf>, %661, %cst_249 [1] : vector<8x16xf32> to vector<8xf32>
    %663 = vector.shape_cast %662 : vector<8xf32> to vector<8x1xf32>
    %664 = vector.broadcast %663 : vector<8x1xf32> to vector<8x16xf32>
    %665 = arith.subf %661, %664 : vector<8x16xf32>
    %666 = math.exp %665 : vector<8x16xf32>
    %cst_250 = arith.constant dense<0.000000e+00> : vector<8xf32>
    %667 = vector.multi_reduction <add>, %666, %cst_250 [1] : vector<8x16xf32> to vector<8xf32>
    %668 = vector.shape_cast %667 : vector<8xf32> to vector<8x1xf32>
    %669 = tpu.reciprocal %668 {approx = true} : vector<8x1xf32> -> vector<8x1xf32>
    %670 = vector.broadcast %669 : vector<8x1xf32> to vector<8x16xf32>
    %671 = arith.mulf %666, %670 : vector<8x16xf32>
    %672 = arith.truncf %671 : vector<8x16xf32> to vector<8x16xbf16>
    %cst_251 = arith.constant dense<0.000000e+00> : vector<8x8xf32>
    %673 = tpu.matmul %672, %658, %cst_251 {dimension_numbers = #tpu.dot_dimension_numbers<[1], [0], [0], [1], [0, 0, 1, 1], [], []>} : vector<8x16xbf16>, vector<16x8xbf16>, vector<8x8xf32> -> vector<8x8xf32>
    %674 = tpu.concatenate %619, %637, %655, %673 in 1 : vector<8x8xf32>, vector<8x8xf32>, vector<8x8xf32>, vector<8x8xf32> -> vector<8x32xf32>
    %c0_252 = arith.constant 0 : index
    %c0_253 = arith.constant 0 : index
    %675 = vector.load %arg38[%c0_252, %c0_253] : memref<32x32xbf16, #tpu.memory_space<vmem>>, vector<32x32xbf16>
    %676 = arith.truncf %674 : vector<8x32xf32> to vector<8x32xbf16>
    %cst_254 = arith.constant dense<0.000000e+00> : vector<8x32xf32>
    %677 = tpu.matmul %676, %675, %cst_254 {dimension_numbers = #tpu.dot_dimension_numbers<[1], [0], [0], [1], [0, 0, 1, 1], [], []>} : vector<8x32xbf16>, vector<32x32xbf16>, vector<8x32xf32> -> vector<8x32xf32>
    %c0_255 = arith.constant 0 : index
    %c0_256 = arith.constant 0 : index
    %678 = vector.load %arg39[%c0_255, %c0_256] : memref<1x32xf32, #tpu.memory_space<vmem>>, vector<1x32xf32>
    %679 = vector.broadcast %678 : vector<1x32xf32> to vector<8x32xf32>
    %680 = arith.addf %677, %679 : vector<8x32xf32>
    %c0_257 = arith.constant 0 : index
    %c0_258 = arith.constant 0 : index
    %c0_259 = arith.constant 0 : index
    %681 = vector.load %arg41[%c0_257, %c0_258, %c0_259] : memref<1x8x32xf32, #tpu.memory_space<vmem>>, vector<1x8x32xf32>
    %682 = vector.shape_cast %681 : vector<1x8x32xf32> to vector<8x32xf32>
    %683 = vector.shape_cast %680 : vector<8x32xf32> to vector<1x8x32xf32>
    tpu.vector_store %arg41[%c0_257, %c0_258, %c0_259], %683 {strides = array<i32>} : memref<1x8x32xf32, #tpu.memory_space<vmem>>, vector<1x8x32xf32>,
    return
  }
  func.func @transform_0(%arg0: i32) -> (i32, i32, i32) {
    %c0_i32 = arith.constant 0 : i32
    %c0_i32_0 = arith.constant 0 : i32
    %c0_i32_1 = arith.constant 0 : i32
    return %arg0, %c0_i32, %c0_i32_0 : i32, i32, i32
  }
  func.func @transform_1(%arg0: i32) -> (i32, i32, i32) {
    %c0_i32 = arith.constant 0 : i32
    %c0_i32_0 = arith.constant 0 : i32
    %c0_i32_1 = arith.constant 0 : i32
    %c0_i32_2 = arith.constant 0 : i32
    return %c0_i32, %c0_i32_0, %c0_i32_1 : i32, i32, i32
  }
  func.func @transform_2(%arg0: i32) -> (i32, i32) {
    %c0_i32 = arith.constant 0 : i32
    %c0_i32_0 = arith.constant 0 : i32
    %c0_i32_1 = arith.constant 0 : i32
    return %c0_i32, %c0_i32_0 : i32, i32
  }
  func.func @transform_3(%arg0: i32) -> (i32, i32, i32) {
    %c0_i32 = arith.constant 0 : i32
    %c0_i32_0 = arith.constant 0 : i32
    %c0_i32_1 = arith.constant 0 : i32
    %c0_i32_2 = arith.constant 0 : i32
    return %c0_i32, %c0_i32_0, %c0_i32_1 : i32, i32, i32
  }
  func.func @transform_4(%arg0: i32) -> (i32, i32, i32) {
    %c0_i32 = arith.constant 0 : i32
    %c0_i32_0 = arith.constant 0 : i32
    %c0_i32_1 = arith.constant 0 : i32
    %c0_i32_2 = arith.constant 0 : i32
    return %c0_i32, %c0_i32_0, %c0_i32_1 : i32, i32, i32
  }
  func.func @transform_5(%arg0: i32) -> (i32, i32, i32, i32, i32) {
    %c0_i32 = arith.constant 0 : i32
    %c0_i32_0 = arith.constant 0 : i32
    %c0_i32_1 = arith.constant 0 : i32
    %c0_i32_2 = arith.constant 0 : i32
    %c0_i32_3 = arith.constant 0 : i32
    %c0_i32_4 = arith.constant 0 : i32
    return %c0_i32, %c0_i32_0, %c0_i32_1, %c0_i32_2, %c0_i32_3 : i32, i32, i32, i32, i32
  }
  func.func @transform_6(%arg0: i32) -> (i32, i32, i32, i32) {
    %c0_i32 = arith.constant 0 : i32
    %c0_i32_0 = arith.constant 0 : i32
    %c0_i32_1 = arith.constant 0 : i32
    %c0_i32_2 = arith.constant 0 : i32
    %c0_i32_3 = arith.constant 0 : i32
    return %c0_i32, %c0_i32_0, %c0_i32_1, %c0_i32_2 : i32, i32, i32, i32
  }
  func.func @transform_7(%arg0: i32) -> (i32, i32, i32, i32) {
    %c0_i32 = arith.constant 0 : i32
    %c0_i32_0 = arith.constant 0 : i32
    %c0_i32_1 = arith.constant 0 : i32
    %c0_i32_2 = arith.constant 0 : i32
    %c0_i32_3 = arith.constant 0 : i32
    return %c0_i32, %c0_i32_0, %c0_i32_1, %c0_i32_2 : i32, i32, i32, i32
  }
  func.func @transform_8(%arg0: i32) -> (i32, i32, i32) {
    %c0_i32 = arith.constant 0 : i32
    %c0_i32_0 = arith.constant 0 : i32
    %c0_i32_1 = arith.constant 0 : i32
    %c0_i32_2 = arith.constant 0 : i32
    return %c0_i32, %c0_i32_0, %c0_i32_1 : i32, i32, i32
  }
  func.func @transform_9(%arg0: i32) -> (i32, i32, i32) {
    %c0_i32 = arith.constant 0 : i32
    %c0_i32_0 = arith.constant 0 : i32
    %c0_i32_1 = arith.constant 0 : i32
    %c0_i32_2 = arith.constant 0 : i32
    return %c0_i32, %c0_i32_0, %c0_i32_1 : i32, i32, i32
  }
  func.func @transform_10(%arg0: i32) -> (i32, i32, i32) {
    %c0_i32 = arith.constant 0 : i32
    %c0_i32_0 = arith.constant 0 : i32
    %c0_i32_1 = arith.constant 0 : i32
    %c0_i32_2 = arith.constant 0 : i32
    return %c0_i32, %c0_i32_0, %c0_i32_1 : i32, i32, i32
  }
  func.func @transform_11(%arg0: i32) -> (i32, i32, i32) {
    %c0_i32 = arith.constant 0 : i32
    %c0_i32_0 = arith.constant 0 : i32
    %c0_i32_1 = arith.constant 0 : i32
    %c0_i32_2 = arith.constant 0 : i32
    return %c0_i32, %c0_i32_0, %c0_i32_1 : i32, i32, i32
  }
  func.func @transform_12(%arg0: i32) -> (i32, i32, i32) {
    %c0_i32 = arith.constant 0 : i32
    %c0_i32_0 = arith.constant 0 : i32
    %c0_i32_1 = arith.constant 0 : i32
    %c0_i32_2 = arith.constant 0 : i32
    return %c0_i32, %c0_i32_0, %c0_i32_1 : i32, i32, i32
  }
  func.func @transform_13(%arg0: i32) -> (i32, i32, i32) {
    %c0_i32 = arith.constant 0 : i32
    %c0_i32_0 = arith.constant 0 : i32
    %c0_i32_1 = arith.constant 0 : i32
    %c0_i32_2 = arith.constant 0 : i32
    return %c0_i32, %c0_i32_0, %c0_i32_1 : i32, i32, i32
  }
  func.func @transform_14(%arg0: i32) -> (i32, i32) {
    %c0_i32 = arith.constant 0 : i32
    %c0_i32_0 = arith.constant 0 : i32
    %c0_i32_1 = arith.constant 0 : i32
    return %c0_i32, %c0_i32_0 : i32, i32
  }
  func.func @transform_15(%arg0: i32) -> (i32, i32) {
    %c0_i32 = arith.constant 0 : i32
    %c0_i32_0 = arith.constant 0 : i32
    %c0_i32_1 = arith.constant 0 : i32
    return %c0_i32, %c0_i32_0 : i32, i32
  }
  func.func @transform_16(%arg0: i32) -> (i32, i32) {
    %c0_i32 = arith.constant 0 : i32
    %c0_i32_0 = arith.constant 0 : i32
    %c0_i32_1 = arith.constant 0 : i32
    return %c0_i32, %c0_i32_0 : i32, i32
  }
  func.func @transform_17(%arg0: i32) -> (i32, i32) {
    %c0_i32 = arith.constant 0 : i32
    %c0_i32_0 = arith.constant 0 : i32
    %c0_i32_1 = arith.constant 0 : i32
    return %c0_i32, %c0_i32_0 : i32, i32
  }
  func.func @transform_18(%arg0: i32) -> (i32, i32) {
    %c0_i32 = arith.constant 0 : i32
    %c0_i32_0 = arith.constant 0 : i32
    %c0_i32_1 = arith.constant 0 : i32
    return %c0_i32, %c0_i32_0 : i32, i32
  }
  func.func @transform_19(%arg0: i32) -> (i32, i32) {
    %c0_i32 = arith.constant 0 : i32
    %c0_i32_0 = arith.constant 0 : i32
    %c0_i32_1 = arith.constant 0 : i32
    return %c0_i32, %c0_i32_0 : i32, i32
  }
  func.func @transform_20(%arg0: i32) -> (i32, i32) {
    %c0_i32 = arith.constant 0 : i32
    %c0_i32_0 = arith.constant 0 : i32
    %c0_i32_1 = arith.constant 0 : i32
    return %c0_i32, %c0_i32_0 : i32, i32
  }
  func.func @transform_21(%arg0: i32) -> (i32, i32) {
    %c0_i32 = arith.constant 0 : i32
    %c0_i32_0 = arith.constant 0 : i32
    %c0_i32_1 = arith.constant 0 : i32
    return %c0_i32, %c0_i32_0 : i32, i32
  }
  func.func @transform_22(%arg0: i32) -> (i32, i32) {
    %c0_i32 = arith.constant 0 : i32
    %c0_i32_0 = arith.constant 0 : i32
    %c0_i32_1 = arith.constant 0 : i32
    return %c0_i32, %c0_i32_0 : i32, i32
  }
  func.func @transform_23(%arg0: i32) -> (i32, i32) {
    %c0_i32 = arith.constant 0 : i32
    %c0_i32_0 = arith.constant 0 : i32
    %c0_i32_1 = arith.constant 0 : i32
    return %c0_i32, %c0_i32_0 : i32, i32
  }
  func.func @transform_24(%arg0: i32) -> (i32, i32) {
    %c0_i32 = arith.constant 0 : i32
    %c0_i32_0 = arith.constant 0 : i32
    %c0_i32_1 = arith.constant 0 : i32
    return %c0_i32, %c0_i32_0 : i32, i32
  }
  func.func @transform_25(%arg0: i32) -> (i32, i32) {
    %c0_i32 = arith.constant 0 : i32
    %c0_i32_0 = arith.constant 0 : i32
    %c0_i32_1 = arith.constant 0 : i32
    return %c0_i32, %c0_i32_0 : i32, i32
  }
  func.func @transform_26(%arg0: i32) -> (i32, i32) {
    %c0_i32 = arith.constant 0 : i32
    %c0_i32_0 = arith.constant 0 : i32
    %c0_i32_1 = arith.constant 0 : i32
    return %c0_i32, %c0_i32_0 : i32, i32
  }
  func.func @transform_27(%arg0: i32) -> (i32, i32) {
    %c0_i32 = arith.constant 0 : i32
    %c0_i32_0 = arith.constant 0 : i32
    %c0_i32_1 = arith.constant 0 : i32
    return %c0_i32, %c0_i32_0 : i32, i32
  }
  func.func @transform_28(%arg0: i32) -> (i32, i32) {
    %c0_i32 = arith.constant 0 : i32
    %c0_i32_0 = arith.constant 0 : i32
    %c0_i32_1 = arith.constant 0 : i32
    return %c0_i32, %c0_i32_0 : i32, i32
  }
  func.func @transform_29(%arg0: i32) -> (i32, i32) {
    %c0_i32 = arith.constant 0 : i32
    %c0_i32_0 = arith.constant 0 : i32
    %c0_i32_1 = arith.constant 0 : i32
    return %c0_i32, %c0_i32_0 : i32, i32
  }
  func.func @transform_30(%arg0: i32) -> (i32, i32) {
    %c0_i32 = arith.constant 0 : i32
    %c0_i32_0 = arith.constant 0 : i32
    %c0_i32_1 = arith.constant 0 : i32
    return %c0_i32, %c0_i32_0 : i32, i32
  }
  func.func @transform_31(%arg0: i32) -> (i32, i32) {
    %c0_i32 = arith.constant 0 : i32
    %c0_i32_0 = arith.constant 0 : i32
    %c0_i32_1 = arith.constant 0 : i32
    return %c0_i32, %c0_i32_0 : i32, i32
  }
  func.func @transform_32(%arg0: i32) -> (i32, i32) {
    %c0_i32 = arith.constant 0 : i32
    %c0_i32_0 = arith.constant 0 : i32
    %c0_i32_1 = arith.constant 0 : i32
    return %c0_i32, %c0_i32_0 : i32, i32
  }
  func.func @transform_33(%arg0: i32) -> (i32, i32) {
    %c0_i32 = arith.constant 0 : i32
    %c0_i32_0 = arith.constant 0 : i32
    %c0_i32_1 = arith.constant 0 : i32
    return %c0_i32, %c0_i32_0 : i32, i32
  }
  func.func @transform_34(%arg0: i32) -> (i32, i32) {
    %c0_i32 = arith.constant 0 : i32
    %c0_i32_0 = arith.constant 0 : i32
    %c0_i32_1 = arith.constant 0 : i32
    return %c0_i32, %c0_i32_0 : i32, i32
  }
  func.func @transform_35(%arg0: i32) -> (i32, i32) {
    %c0_i32 = arith.constant 0 : i32
    %c0_i32_0 = arith.constant 0 : i32
    %c0_i32_1 = arith.constant 0 : i32
    return %c0_i32, %c0_i32_0 : i32, i32
  }
  func.func @transform_36(%arg0: i32) -> (i32, i32) {
    %c0_i32 = arith.constant 0 : i32
    %c0_i32_0 = arith.constant 0 : i32
    %c0_i32_1 = arith.constant 0 : i32
    return %c0_i32, %c0_i32_0 : i32, i32
  }
  func.func @transform_37(%arg0: i32) -> (i32, i32) {
    %c0_i32 = arith.constant 0 : i32
    %c0_i32_0 = arith.constant 0 : i32
    %c0_i32_1 = arith.constant 0 : i32
    return %c0_i32, %c0_i32_0 : i32, i32
  }
  func.func @transform_38(%arg0: i32) -> (i32, i32) {
    %c0_i32 = arith.constant 0 : i32
    %c0_i32_0 = arith.constant 0 : i32
    %c0_i32_1 = arith.constant 0 : i32
    return %c0_i32, %c0_i32_0 : i32, i32
  }
  func.func @transform_39(%arg0: i32) -> (i32, i32, i32) {
    %c0_i32 = arith.constant 0 : i32
    %c0_i32_0 = arith.constant 0 : i32
    %c0_i32_1 = arith.constant 0 : i32
    return %arg0, %c0_i32, %c0_i32_0 : i32, i32, i32
  }
  func.func @transform_40(%arg0: i32) -> (i32, i32, i32) {
    %c0_i32 = arith.constant 0 : i32
    %c0_i32_0 = arith.constant 0 : i32
    %c0_i32_1 = arith.constant 0 : i32
    return %arg0, %c0_i32, %c0_i32_0 : i32, i32, i32
  }
}

</mosaic_0001>

<bundles_post_ra>
// kernel: timbre_encoder_forward.1
= control target key start
LH: loop header
LB: loop body
LE: loop exit
PB: predicated region body
PF: predicated region fallthrough
CT: control target
= control target key end

     0   :  { %s4591_s6 = smov 1   ;;  %s4592_s10 = smov 2   ;;  %s5375_s0 = inlined_call_operand.smem [shape: u32[41], index: -1, kind: input, shape index: {}] }
   0x1   :  { %s4647_s5 = sld [smem:[%s5375_s0]]   ;;  %s4593_s14 = smov 3  }
   0x2   :  { %s4652_s9 = sld [smem:[%s5375_s0 + %s4591_s6]]   ;;  %s4594_s18 = smov 4  }
   0x3   :  { %s4657_s13 = sld [smem:[%s5375_s0 + %s4592_s10]]   ;;  %s4595_s22 = smov 5  }
   0x4   :  { %s4662_s17 = sld [smem:[%s5375_s0 + %s4593_s14]]   ;;  %s4596_s26 = smov 6  }
   0x5   :  { %s4667_s21 = sld [smem:[%s5375_s0 + %s4594_s18]]   ;;  %s4597_s30 = smov 7  }
   0x6   :  { %s4672_s25 = sld [smem:[%s5375_s0 + %s4595_s22]]   ;;  %s4598_s4 = smov 8  }
   0x7   :  { %5411 = sst [smem:[#allocation8_spill]] %s4647_s5  ;;  %s4599_s10 = smov 9  }
   0x8   :  { %5412 = sst [smem:[#allocation9_spill]] %s4652_s9  ;;  %s4600_s15 = smov 10  }
   0x9   :  { %5413 = sst [smem:[#allocation10_spill]] %s4657_s13  ;;  %s4601_s20 = smov 11  }
   0xa   :  { %s4677_s29 = sld [smem:[%s5375_s0 + %s4596_s26]]   ;;  %s4602_s26 = smov 12  }
   0xb   :  { %s4682_s3 = sld [smem:[%s5375_s0 + %s4597_s30]]   ;;  %s4603_s1 = smov 13  }
   0xc   :  { %s4687_s8 = sld [smem:[%s5375_s0 + %s4598_s4]]   ;;  %s4604_s7 = smov 14  }
   0xd   :  { %s4692_s14 = sld [smem:[%s5375_s0 + %s4599_s10]]   ;;  %s4606_s22 = smov 16  }
   0xe   :  { %s4697_s19 = sld [smem:[%s5375_s0 + %s4600_s15]]   ;;  %s4605_s15 = smov 15  }
   0xf   :  { %s4702_s24 = sld [smem:[%s5375_s0 + %s4601_s20]]   ;;  %s4607_s28 = smov 17  }
  0x10   :  { %s4707_s30 = sld [smem:[%s5375_s0 + %s4602_s26]]  }
  0x11   :  { %5414 = sst [smem:[#allocation11_spill]] %s4682_s3 }
  0x12   :  { %5415 = sst [smem:[#allocation12_spill]] %s4687_s8 }
  0x13   :  { %5416 = sst [smem:[#allocation13_spill]] %s4692_s14 }
  0x14   :  { %s4712_s6 = sld [smem:[%s5375_s0 + %s4603_s1]]  }
  0x15   :  { %s4717_s12 = sld [smem:[%s5375_s0 + %s4604_s7]]   ;;  %s4608_s7 = smov 18  }
  0x16   :  { %s4722_s20 = sld [smem:[%s5375_s0 + %s4605_s15]]   ;;  %s4609_s15 = smov 19  }
  0x17   :  { %s4727_s27 = sld [smem:[%s5375_s0 + %s4606_s22]]   ;;  %s4610_s22 = smov 20  }
  0x18   :  { %s4732_s4 = sld [smem:[%s5375_s0 + %s4607_s28]]   ;;  %s4611_s28 = smov 21  }
  0x1a   :  { %5417 = sst [smem:[#allocation14_spill]] %s4712_s6 }
  0x1b   :  { %5418 = sst [smem:[#allocation15_spill]] %s4717_s12 }
  0x1c   :  { %5419 = sst [smem:[#allocation16_spill]] %s4722_s20 }
  0x1d   :  { %5420 = sst [smem:[#allocation17_spill]] %s4727_s27 }
  0x1e   :  { %5421 = sst [smem:[#allocation18_spill]] %s4732_s4 }
  0x1f   :  { %s4737_s12 = sld [smem:[%s5375_s0 + %s4608_s7]]   ;;  %s4612_s7 = smov 22  }
  0x20   :  { %s4742_s20 = sld [smem:[%s5375_s0 + %s4609_s15]]   ;;  %s4613_s15 = smov 23  }
  0x21   :  { %s4747_s27 = sld [smem:[%s5375_s0 + %s4610_s22]]   ;;  %s4614_s22 = smov 24  }
  0x22   :  { %s4752_s4 = sld [smem:[%s5375_s0 + %s4611_s28]]   ;;  %s4615_s28 = smov 25  }
  0x25   :  { %5422 = sst [smem:[#allocation19_spill]] %s4737_s12 }
  0x26   :  { %5423 = sst [smem:[#allocation20_spill]] %s4742_s20 }
  0x27   :  { %5424 = sst [smem:[#allocation21_spill]] %s4747_s27 }
  0x28   :  { %5425 = sst [smem:[#allocation22_spill]] %s4752_s4 }
  0x29   :  { %s4757_s12 = sld [smem:[%s5375_s0 + %s4612_s7]]   ;;  %s4616_s7 = smov 26  }
  0x2a   :  { %s4762_s20 = sld [smem:[%s5375_s0 + %s4613_s15]]   ;;  %s4617_s15 = smov 27  }
  0x2b   :  { %s4767_s27 = sld [smem:[%s5375_s0 + %s4614_s22]]   ;;  %s4618_s22 = smov 28  }
  0x2c   :  { %s4772_s4 = sld [smem:[%s5375_s0 + %s4615_s28]]   ;;  %s4619_s28 = smov 29  }
  0x2f   :  { %5426 = sst [smem:[#allocation23_spill]] %s4757_s12 }
  0x30   :  { %5427 = sst [smem:[#allocation24_spill]] %s4762_s20 }
  0x31   :  { %5428 = sst [smem:[#allocation25_spill]] %s4767_s27 }
  0x32   :  { %5429 = sst [smem:[#allocation26_spill]] %s4772_s4 }
  0x33   :  { %s4777_s12 = sld [smem:[%s5375_s0 + %s4616_s7]]   ;;  %s4620_s7 = smov 30  }
  0x34   :  { %s4782_s20 = sld [smem:[%s5375_s0 + %s4617_s15]]   ;;  %s4621_s15 = smov 31  }
  0x35   :  { %s4787_s27 = sld [smem:[%s5375_s0 + %s4618_s22]]   ;;  %s4622_s22 = smov 32  }
  0x36   :  { %s4792_s4 = sld [smem:[%s5375_s0 + %s4619_s28]]   ;;  %s4623_s28 = smov 33  }
  0x39   :  { %5430 = sst [smem:[#allocation27_spill]] %s4777_s12 }
  0x3a   :  { %5431 = sst [smem:[#allocation28_spill]] %s4782_s20 }
  0x3b   :  { %5432 = sst [smem:[#allocation29_spill]] %s4787_s27 }
  0x3c   :  { %5433 = sst [smem:[#allocation30_spill]] %s4792_s4 }
  0x3d   :  { %s4797_s12 = sld [smem:[%s5375_s0 + %s4620_s7]]   ;;  %s4624_s7 = smov 34  }
  0x3e   :  { %s4802_s20 = sld [smem:[%s5375_s0 + %s4621_s15]]   ;;  %s4625_s15 = smov 35  }
  0x3f   :  { %s4807_s27 = sld [smem:[%s5375_s0 + %s4622_s22]]   ;;  %s4626_s22 = smov 36  }
  0x40   :  { %s4812_s4 = sld [smem:[%s5375_s0 + %s4623_s28]]   ;;  %s4627_s28 = smov 37  }
  0x43   :  { %5434 = sst [smem:[#allocation31_spill]] %s4797_s12 }
  0x44   :  { %5435 = sst [smem:[#allocation32_spill]] %s4802_s20 }
  0x45   :  { %5436 = sst [smem:[#allocation33_spill]] %s4807_s27 }
  0x46   :  { %5437 = sst [smem:[#allocation34_spill]] %s4812_s4 }
  0x47   :  { %s4817_s12 = sld [smem:[%s5375_s0 + %s4624_s7]]   ;;  %s4628_s7 = smov 38  }
  0x48   :  { %s4822_s20 = sld [smem:[%s5375_s0 + %s4625_s15]]   ;;  %s4629_s15 = smov 39  }
  0x49   :  { %s4827_s27 = sld [smem:[%s5375_s0 + %s4626_s22]]   ;;  %s4630_s22 = smov 40  }
  0x4a   :  { %s4832_s4 = sld [smem:[%s5375_s0 + %s4627_s28]]  }
  0x4d   :  { %5438 = sst [smem:[#allocation35_spill]] %s4817_s12 }
  0x4e   :  { %5439 = sst [smem:[#allocation36_spill]] %s4822_s20 }
  0x4f   :  { %5440 = sst [smem:[#allocation37_spill]] %s4827_s27 }
  0x50   :  { %5441 = sst [smem:[#allocation38_spill]] %s4832_s4 }
  0x51   :  { %s4837_s12 = sld [smem:[%s5375_s0 + %s4628_s7]]  }
  0x52   :  { %s4842_s20 = sld [smem:[%s5375_s0 + %s4629_s15]]  }
  0x53   :  { %s4847_s27 = sld [smem:[%s5375_s0 + %s4630_s22]]  }
  0x54   :  { %87 = vsyncpa [#allocation3], 0 }
  0x55   :  { %89 = vsyncpa [#allocation3 + $0x1], 0 }
  0x56   :  { %90 = vsyncpa [#allocation5], 0 }
  0x57   :  { %92 = vsyncpa [#allocation5 + $0x1], 0  ;;  %s4849_s28 = smov 0   ;;  %s4851_s1 = smov 0  }
  0x58   :  { %s4853_s2 = smov 0   ;;  %s4855_s7 = smov 0  }
  0x59 LB: > { %s5442_s14 = sld [smem:[#allocation13_spill]]  ;;  %s4870_s0 = sadd.s32 4294967295, %s4589_s7   ;;  %s4581_s1 = sphi %s4851_s1, %s5484_s1   ;;  %s4577_s28 = sphi %s4849_s28, %s5483_s28   ;;  %s4589_s7 = sphi %s4855_s7, %s5486_s7   ;;  %s4585_s2 = sphi %s4853_s2, %s5485_s2  }
  0x5a   : > { %s5443_s4 = sld [smem:[#allocation38_spill]]  ;;  %s3943_s10 = sadd.s32 4294967294, %s4589_s7  }
  0x5b   : > { %s5444_s9 = sld [smem:[#allocation9_spill]]  ;;  %s4874_s11 = sadd.s32 1, %s4589_s7  }
  0x5c   : > { %s5445_s8 = sld [smem:[#allocation12_spill]]  ;;  %s929_s15 = sadd.s32 1, %s4585_s2 }
  0x5d   : > { %s5446_s6 = sld [smem:[#allocation14_spill]]  ;;  %s926_s16 = ssub.s32 %s4589_s7, %s4874_s11 }
  0x5e   : > { %s5447_s3 = sld [smem:[#allocation11_spill]]  ;;  %p939_p0 = scmp.ne.s32.totalorder %s4585_s2, %s4581_s1 }
  0x5f   : > { %p927_p1 = scmp.eq.s32.totalorder %s926_s16, 0  ;;  %p940_p2 = scmp.eq.s32.totalorder %s4870_s0, 1 }
  0x60   : > { %p945_p3 = scmp.ne.s32.totalorder %s4581_s1, %s4577_s28  ;;  %p946_p4 = scmp.eq.s32.totalorder %s3943_s10, 1 }
  0x61   : > { %s4885_s18 = scalar_select %p927_p1, %s4585_s2, %s929_s15  }
  0x62   : > { %p4887_p5 = por %p940_p2, %p939_p0  ;;  %p4891_p6 = por %p946_p4, %p945_p3 }
  0x63   : > { %p3946_p7 = scmp.ge.s32.totalorder %s4589_s7, 1  ;;  %p1112_p8 = scmp.lt.s32.totalorder %s4589_s7, 3 }
  0x65   : > { %p1113_p9 = pnand %p3946_p7, %p1112_p8 }
  0x66   : > { %s5450_s5 = sld [smem:[#allocation8_spill]] (!%p1113_p9)  ;;  %p1214_p10 = scmp.lt.s32.totalorder (!%p1113_p9), %s4870_s0, 1 }
  0x67   : > { %1116 = sbr.rel (%p1113_p9) target bundleno = 6060 (0x17ac), region = 176  ;;  %s5451_s13 = sld [smem:[#allocation10_spill]] (!%p1113_p9) }
  0x68   : > { %s5393_s16 = smov (!%p1113_p9), 120  }
  0x6c   : > { %v4282_v0 = vld [vmem:[%s5444_s9 + $0x10] sm:$0xff]  ;;  %v4281_v1 = vld [vmem:[%s5444_s9 + $0x8] sm:$0xff]  ;;  %v4280_v2 = vld [vmem:[%s5444_s9] sm:$0xff]  ;;  %s1215_s26 = scalar_select %p1214_p10, %s4870_s0, 1  ;;  %vm1241_vm0 = vcmask 1040384   ;;  %vm1263_vm1 = vcmask 130048  }
  0x6d   : > { %v4283_v3 = vld [vmem:[%s5444_s9 + $0x18] sm:$0xff]  ;;  %1325 = vmatpush.bf16.msra.mxu2 %v4282_v0  ;;  %1274 = vmatpush.bf16.msra.mxu0 %v4281_v1  ;;  %v4284_v4 = vld [vmem:[%s5444_s9 + $0x20] sm:$0xff]  ;;  %vm1305_vm2 = vcmask 1046528   ;;  %vm1246_vm3 = vsmask.f32 7424  ;;  %vm1369_vm5 = vcmask 1045504  }
  0x6e   : > { %1296 = vmatpush.bf16.msra.mxu1 %v4280_v2  ;;  %1360 = vmatpush.bf16.msra.mxu3 %v4283_v3  ;;  %s4279_s10 = sshll.u32 %s1215_s26, 4  ;;  %vm1334_vm4 = vsmask.f32 6400  ;;  %v4286_v36 = vld [vmem:[%s4662_s17 + $0x8] sm:$0xff]  ;;  %v4285_v38 = vld [vmem:[%s4662_s17] sm:$0xff]  ;;  %vm1428_vm6 = vcmask 261120  }
  0x6f   : > { %s1218_s15 = scalar_lea.vmem %s5450_s5, %s4279_s10  ;;  %v1232_v46 = vld [vmem:[%s5451_s13] sm:$0x7]  ;;  %vm1494_vm7 = vcmask 1043456   ;;  %vm1490_vm8 = vcmask 64512   ;;  %s5387_s26 = smov 16   ;;  %vm2063_vm14 = vcmask 1041408  }
  0x70   : > { %v1220_v5 = vld [vmem:[%s1218_s15] sm:$0xff]  ;;  %v1221_v6 = vld [vmem:[%s1218_s15 + $0x8] sm:$0xff]  ;;  %v1398_v51 = vperm.slane %v1232_v46, 0  ;;  %v1403_v59 = vperm.slane %v1232_v46, 1  ;;  %v1406_v63 = vperm.slane %v1232_v46, 2  ;;  %s5385_s10 = smov 112  }
  0x71   : > { %1389 = vmatpush.bf16.msrb.mxu0 %v4284_v4  ;;  %v1233_v7 = vpack.c.bf16 %v1220_v5, %v1220_v5  ;;  %v1234_v8 = vpack.c.bf16 %v1221_v6, %v1221_v6  ;;  %v1454_v5 = vld [vmem:[%s4672_s25] sm:$0xf]  ;;  %s5389_s15 = smov 24   ;;  %vm2064_vm15 = vsmask.f32 1280  ;;  %s5459_s5 = sld [smem:[#allocation18_spill]] }
  0x72   : > { %1438 = vmatpush.bf16.msrb.mxu1 %v4286_v36  ;;  %v1414_v6 = vld [vmem:[%s4667_s21] sm:$0x7]  ;;  %s5462_s9 = sld [smem:[#allocation17_spill]]  ;;  %s5476_s13 = smov 24  }
  0x73   : > { %v1237_v9 = vunpack.c.l.b16 %v1233_v7  ;;  %v1238_v10 = vunpack.c.l.b16 %v1234_v8  ;;  %v1515_v7 = vsel %vm1494_vm7, %v1454_v5, 0  ;;  %v1415_v8 = vperm.slane %v1414_v6, 0  ;;  %v1463_v46 = vld [vmem:[%s4677_s29] sm:$0x7] }
  0x74   : > { %1524 = vmatpush.bf16.msrb.mxu3 %v1515_v7 }
  0x75   : > { %v1239_v11 = vpack.c.b16 %v1238_v10, %v1237_v9 }
  0x76   : > { %1439 = vmatpush.bf16.msrb.mxu1 %v4285_v38 }
  0x77   : > { %v1240_v12 = vrot.slane %v1239_v11, 7 }
  0x79   : > { %v1244_v13 = vsel %vm1241_vm0, 0, %v1240_v12  ;;  %v1245_v14 = vsel %vm1241_vm0, %v1240_v12, 0  ;;  %v1448_v12 = vperm.slane %v1414_v6, 1 }
  0x7a   : > { %v1306_v15 = vrot.slane %v1244_v13, 1  ;;  %v1307_v16 = vrot.slane %v1245_v14, 1  ;;  %v1247_v17 = vshrl.u32 %v1244_v13, 16  ;;  %v1249_v18 = vshll.u32 %v1244_v13, 16  ;;  %3959 = vmatmul.msk.bf16.vlgmr.msra.gmra.mxu1 %vm1263_vm1, %v1244_v13 }
  0x7b   : > { %v1253_v19 = vshll.u32 %v1245_v14, 16  ;;  %v1338_v20 = vshrl.u32 %v1245_v14, 16  ;;  %v1370_v33 = vrot.slane %v1244_v13, 2  ;;  %v1371_v34 = vrot.slane %v1245_v14, 2 }
  0x7c   : > { %v1308_v21 = vsel %vm1305_vm2, %v1306_v15, %v1307_v16  ;;  %v1251_v22 = vrot.slane %v1249_v18, 1  ;;  %v1335_v23 = vrot.slane %v1247_v17, 1  ;;  %v1336_v24 = vrot.slane %v1249_v18, 2 }
  0x7d   : > { %3964 = vmatmul.msk.bf16.vlgmr.msra.gmra.mxu2 %vm1263_vm1, %v1308_v21  ;;  %v1255_v25 = vrot.slane %v1253_v19, 1  ;;  %v1340_v26 = vrot.slane %v1338_v20, 1  ;;  %v1341_v27 = vrot.slane %v1253_v19, 2  ;;  %v1372_v35 = vsel %vm1369_vm5, %v1370_v33, %v1371_v34 }
  0x7e   : > { %v1252_v28 = vor.u32 %v1251_v22, %v1247_v17  ;;  %v1337_v29 = vor.u32 %v1336_v24, %v1335_v23  ;;  %v1451_v14 = vperm.slane %v1414_v6, 2  ;;  %v1457_v6 = vld [vmem:[%s4672_s25 + $0xc] sm:$0xf] }
  0x7f   : > { %v1342_v30 = vor.u32 %v1341_v27, %v1340_v26  ;;  %v1455_v27 = vld [vmem:[%s4672_s25 + $0x4] sm:$0xf]  ;;  %v1659_v7 = vsel %vm1494_vm7, %v1457_v6, 0 }
  0x80   : > { %v1256_v31 = vsel %vm1246_vm3, %v1252_v28, %v1255_v25  ;;  %v1456_v28 = vld [vmem:[%s4672_s25 + $0x8] sm:$0xf] }
  0x81   : > { %3954 = vmatmul.msk.bf16.vlgmr.msra.gmra.mxu0 %vm1263_vm1, %v1256_v31  ;;  %v1343_v32 = vsel %vm1334_vm4, %v1337_v29, %v1342_v30  ;;  %v1496_v29 = vsel %vm1494_vm7, %v1455_v27, 0  ;;  %v1538_v30 = vsel %vm1494_vm7, %v1456_v28, 0  ;;  %v1466_v31 = vld [vmem:[%s5447_s3] sm:$0xf] }
  0x82   : > { %3969 = vmatmul.msk.bf16.vlgmr.msra.gmra.mxu3 %vm1263_vm1, %v1343_v32  ;;  %1505 = vmatpush.bf16.msrb.mxu2 %v1496_v29  ;;  %v1592_v32 = vsel %vm1494_vm7, %v1466_v31, 0 }
  0x83   : > { %1547 = vmatpush.bf16.msra.mxu0 %v1538_v30 }
  0x86   : > { %1601 = vmatpush.bf16.msra.mxu2 %v1592_v32 }
  0x91   : > { %3974 = vmatmul.msk.bf16.vlgmr.msrb.gmra.mxu0 %vm1263_vm1, %v1372_v35 }
  0x92   : > { %1668 = vmatpush.bf16.msrb.mxu0 %v1659_v7 }
  0xf7   : > { %v1298_v39 = vpop.f32.mrf.mxu1 }
  0xfe   : > { %v1276_v37 = vpop.f32.mrf.mxu0 }
  0xff   : > { %v1299_v42 = vadd.f32 %v1298_v39, %v1276_v37  ;;  %v1300_v45 = vpop.f32.mrf.mxu1 }
 0x100   : > { %v1327_v40 = vpop.f32.mrf.mxu2 }
 0x101   : > { %v1332_v44 = vadd.f32 %v1327_v40, %v1299_v42 }
 0x105   : > { %v1362_v43 = vpop.f32.mrf.mxu3 }
 0x106   : > { %v1278_v41 = vpop.f32.mrf.mxu0  ;;  %v1367_v47 = vadd.f32 %v1362_v43, %v1332_v44  ;;  %v1467_v43 = vld [vmem:[%s5447_s3 + $0x4] sm:$0xf] }
 0x107   : > { %v1301_v49 = vadd.f32 %v1300_v45, %v1278_v41  ;;  %v1572_v44 = vsel %vm1494_vm7, %v1467_v43, 0 }
 0x108   : > { %v1329_v52 = vpop.f32.mrf.mxu2  ;;  %1581 = vmatpush.bf16.msra.mxu1 %v1572_v44 }
 0x109   : > { %v1333_v54 = vadd.f32 %v1329_v52, %v1301_v49 }
 0x10d   : > { %v1364_v53 = vpop.f32.mrf.mxu3 }
 0x10e   : > { %v1391_v48 = vpop.f32.mrf.mxu0  ;;  %v1368_v56 = vadd.f32 %v1364_v53, %v1333_v54  ;;  %v1561_v53 = vperm.slane %v1463_v46, 1 }
 0x10f   : > { %v1396_v50 = vadd.f32 %v1391_v48, %v1367_v47 }
 0x111   : > { %v1399_v55 = vadd.f32 %v1398_v51, %v1396_v50  ;;  %v1556_v50 = vperm.slane %v1463_v46, 0 }
 0x113   : > { %v1401_v58 = vmax.f32 %v1399_v55, 0.0  ;;  %v1564_v55 = vperm.slane %v1463_v46, 2 }
 0x115   : > { %v1404_v62 = vmul.f32 %v1403_v59, %v1401_v58 }
 0x116   : > { %v1393_v57 = vpop.f32.mrf.mxu0 }
 0x117   : > { %v1397_v60 = vadd.f32 %v1393_v57, %v1368_v56  ;;  %v4918_v2 = vadd.f32 %v1406_v63, %v1404_v62 }
 0x119   : > { %v1400_v61 = vadd.f32 %v1398_v51, %v1397_v60 }
 0x11b   : > { %v1402_v0 = vmax.f32 %v1400_v61, 0.0 }
 0x11d   : > { %v1405_v1 = vmul.f32 %v1403_v59, %v1402_v0 }
 0x11f   : > { %v4920_v3 = vadd.f32 %v1406_v63, %v1405_v1 }
 0x121   : > { %v1409_v4 = vpack.c.bf16 %v4920_v3, %v4918_v2 }
 0x123   : > { %3983 = vmatmul.msk.bf16.vlgmr.msrb.gmra.mxu1 %vm1428_vm6, %v1409_v4 }
 0x1a0   : > { %v1441_v9 = vpop.f32.mrf.mxu1 }
 0x1a1   : > { %v1442_v10 = vadd.f32 %v1441_v9, %v1415_v8 }
 0x1a3   : > { %v1446_v11 = vmax.f32 %v1442_v10, 0.0 }
 0x1a5   : > { %v1449_v13 = vmul.f32 %v1448_v12, %v1446_v11 }
 0x1a7   : > { %v4928_v17 = vadd.f32 %v1451_v14, %v1449_v13 }
 0x1a8   : > { %v1443_v15 = vpop.f32.mrf.mxu1 }
 0x1a9   : > { %v1444_v16 = vadd.f32 %v1443_v15, %v1415_v8  ;;  %v1472_v21 = vpack.c.bf16 %v4928_v17, %v4928_v17 }
 0x1ab   : > { %v1447_v18 = vmax.f32 %v1444_v16, 0.0  ;;  %v1476_v23 = vunpack.c.l.b16 %v1472_v21  ;;  %v1459_v21 = vld [vmem:[%s4672_s25 + $0x14] sm:$0xf] }
 0x1ad   : > { %v1450_v19 = vmul.f32 %v1448_v12, %v1447_v18 }
 0x1af   : > { %v4930_v20 = vadd.f32 %v1451_v14, %v1450_v19  ;;  %v1458_v19 = vld [vmem:[%s4672_s25 + $0x10] sm:$0xf] }
 0x1b1   : > { %v1473_v22 = vpack.c.bf16 %v4930_v20, %v4930_v20  ;;  %v1471_v42 = vpack.c.bf16 %v4930_v20, %v4928_v17 }
 0x1b3   : > { %v1477_v24 = vunpack.c.l.b16 %v1473_v22  ;;  %v1640_v22 = vsel %vm1494_vm7, %v1458_v19, 0 }
 0x1b4   : > { %1649 = vmatpush.bf16.msra.mxu3 %v1640_v22 }
 0x1b5   : > { %v1478_v25 = vpack.c.b16 %v1477_v24, %v1476_v23  ;;  %v1682_v23 = vsel %vm1494_vm7, %v1459_v21, 0 }
 0x1b6   : > { %1691 = vmatpush.bf16.msrb.mxu1 %v1682_v23  ;;  %v1469_v23 = vld [vmem:[%s5447_s3 + $0xc] sm:$0xf] }
 0x1b7   : > { %v1479_v26 = vrot.slane %v1478_v25, 7 }
 0x1b9   : > { %1480 = vrot.lane.b32.xlu0 %v1479_v26, %s5393_s16 }
 0x22b   : > { %v1481_v33 = vpop.permute.xlu0 %1480 }
 0x22c   : > { %v1483_v34 = vsel %vm1241_vm0, 0, %v1481_v33  ;;  %v1484_v35 = vsel %vm1241_vm0, %v1481_v33, 0 }
 0x22d   : > { %v1487_v36 = vrot.slane %v1483_v34, 1  ;;  %v1488_v37 = vrot.slane %v1484_v35, 1  ;;  %v1531_v38 = vrot.slane %v1483_v34, 2  ;;  %v1532_v39 = vrot.slane %v1484_v35, 2  ;;  %3985 = vmatmul.msk.bf16.vlgmr.msrb.gmra.mxu3 %vm1490_vm8, %v1483_v34  ;;  %v1468_v34 = vld [vmem:[%s5447_s3 + $0x8] sm:$0xf] }
 0x22e   : > { %v1716_v35 = vsel %vm1494_vm7, %v1468_v34, 0 }
 0x22f   : > { %v1489_v40 = vsel %vm1305_vm2, %v1487_v36, %v1488_v37  ;;  %v1533_v41 = vsel %vm1369_vm5, %v1531_v38, %v1532_v39  ;;  %v1464_v38 = vld [vmem:[%s4677_s29 + $0x4] sm:$0x7] }
 0x230   : > { %3984 = vmatmul.msk.bf16.vlgmr.msrb.gmra.mxu2 %vm1490_vm8, %v1489_v40  ;;  %3986 = vmatmul.msk.bf16.vlgmr.msra.gmra.mxu0 %vm1490_vm8, %v1533_v41 }
 0x231   : > { %1725 = vmatpush.bf16.msrb.mxu2 %v1716_v35 }
 0x240   : > { %3988 = vmatmul.msk.bf16.vlgmr.msra.gmra.mxu2 %vm1490_vm8, %v1471_v42  ;;  %v1700_v42 = vperm.slane %v1464_v38, 0 }
 0x2ad   : > { %v1549_v47 = vpop.f32.mrf.mxu0 }
 0x2b0   : > { %v1526_v45 = vpop.f32.mrf.mxu3 }
 0x2b3   : > { %v1507_v48 = vpop.f32.mrf.mxu2 }
 0x2b4   : > { %v1527_v49 = vadd.f32 %v1526_v45, %v1507_v48  ;;  %v1705_v45 = vperm.slane %v1464_v38, 1 }
 0x2b5   : > { %v1551_v60 = vpop.f32.mrf.mxu0 }
 0x2b6   : > { %v1554_v51 = vadd.f32 %v1549_v47, %v1527_v49  ;;  %v1708_v47 = vperm.slane %v1464_v38, 2 }
 0x2b8   : > { %v1557_v52 = vadd.f32 %v1556_v50, %v1554_v51  ;;  %v1528_v56 = vpop.f32.mrf.mxu3 }
 0x2ba   : > { %v1559_v54 = vmax.f32 %v1557_v52, 0.0 }
 0x2bb   : > { %v1509_v57 = vpop.f32.mrf.mxu2 }
 0x2bc   : > { %v1529_v58 = vadd.f32 %v1528_v56, %v1509_v57  ;;  %v1562_v59 = vmul.f32 %v1561_v53, %v1559_v54 }
 0x2be   : > { %v1555_v61 = vadd.f32 %v1551_v60, %v1529_v58  ;;  %v1565_v62 = vadd.f32 %v1564_v55, %v1562_v59 }
 0x2c0   : > { %v1558_v63 = vadd.f32 %v1556_v50, %v1555_v61  ;;  %1610 = vrot.lane.b32.xlu0 %v1565_v62, %s5387_s26 }
 0x2c2   : > { %v1560_v0 = vmax.f32 %v1558_v63, 0.0 }
 0x2c4   : > { %v1563_v1 = vmul.f32 %v1561_v53, %v1560_v0 }
 0x2c6   : > { %v1566_v4 = vadd.f32 %v1564_v55, %v1563_v1 }
 0x2c8   : > { %1612 = vrot.lane.b32.xlu1 %v1566_v4, %s5387_s26  ;;  %v1567_v5 = vpack.c.bf16 %v1566_v4, %v1565_v62 }
 0x2ca   : > { %3987 = vmatmul.msk.bf16.vlgmr.msra.gmra.mxu1 %vm1490_vm8, %v1567_v5 }
 0x332   : > { %v1611_v8 = vpop.permute.xlu0 %1610 }
 0x333   : > { %v1616_v9 = vadd.f32 %v1611_v8, %v4928_v17  ;;  %v1460_v8 = vld [vmem:[%s4672_s25 + $0x18] sm:$0xf] }
 0x335   : > { %v1618_v11 = vpack.c.bf16 %v1616_v9, %v1616_v9  ;;  %v1785_v9 = vsel %vm1494_vm7, %v1460_v8, 0 }
 0x336   : > { %1794 = vmatpush.bf16.msra.mxu0 %v1785_v9 }
 0x337   : > { %v1622_v14 = vunpack.c.l.b16 %v1618_v11  ;;  %v1462_v11 = vld [vmem:[%s4672_s25 + $0x20] sm:$0xf] }
 0x33a   : > { %v1613_v10 = vpop.permute.xlu1 %1612 }
 0x33b   : > { %v1617_v12 = vadd.f32 %v1613_v10, %v4930_v20  ;;  %v1461_v10 = vld [vmem:[%s4672_s25 + $0x1c] sm:$0xf] }
 0x33d   : > { %v1619_v13 = vpack.c.bf16 %v1617_v12, %v1617_v12  ;;  %v1808_v12 = vsel %vm1494_vm7, %v1462_v11, 0 }
 0x33e   : > { %1817 = vmatpush.bf16.msra.mxu1 %v1808_v12 }
 0x33f   : > { %v1623_v15 = vunpack.c.l.b16 %v1619_v13 }
 0x341   : > { %v1624_v16 = vpack.c.b16 %v1623_v15, %v1622_v14 }
 0x343   : > { %v1625_v18 = vrot.slane %v1624_v16, 7 }
 0x345   : > { %1626 = vrot.lane.b32.xlu1 %v1625_v18, %s5385_s10  ;;  %s5391_s10 = smov 104  }
 0x347   : > { %v4975_v33 = vpop.f32.mrf.mxu1 }
 0x34f   : > { %v4979_v36 = vpop.f32.mrf.mxu1 }
 0x3b7   : > { %v1627_v24 = vpop.permute.xlu1 %1626 }
 0x3b8   : > { %v1629_v25 = vsel %vm1241_vm0, 0, %v1627_v24  ;;  %v1630_v26 = vsel %vm1241_vm0, %v1627_v24, 0  ;;  %v1842_v24 = vsel %vm1494_vm7, %v1469_v23, 0 }
 0x3b9   : > { %v1633_v27 = vrot.slane %v1629_v25, 1  ;;  %v1634_v28 = vrot.slane %v1630_v26, 1  ;;  %v1675_v29 = vrot.slane %v1629_v25, 2  ;;  %v1676_v30 = vrot.slane %v1630_v26, 2  ;;  %3990 = vmatmul.msk.bf16.vlgmr.msrb.gmra.mxu0 %vm1490_vm8, %v1629_v25  ;;  %1851 = vmatpush.bf16.msra.mxu2 %v1842_v24 }
 0x3bb   : > { %v1635_v31 = vsel %vm1305_vm2, %v1633_v27, %v1634_v28  ;;  %v1677_v32 = vsel %vm1369_vm5, %v1675_v29, %v1676_v30  ;;  %v1465_v27 = vld [vmem:[%s4677_s29 + $0x8] sm:$0x7] }
 0x3bc   : > { %3989 = vmatmul.msk.bf16.vlgmr.msra.gmra.mxu3 %vm1490_vm8, %v1635_v31  ;;  %3991 = vmatmul.msk.bf16.vlgmr.msrb.gmra.mxu1 %vm1490_vm8, %v1677_v32  ;;  %v1826_v31 = vperm.slane %v1465_v27, 0 }
 0x436   : > { %v1670_v37 = vpop.f32.mrf.mxu0 }
 0x439   : > { %v1693_v39 = vpop.f32.mrf.mxu1 }
 0x43e   : > { %v1672_v48 = vpop.f32.mrf.mxu0 }
 0x43f   : > { %v1651_v40 = vpop.f32.mrf.mxu3 }
 0x440   : > { %v1671_v41 = vadd.f32 %v1670_v37, %v1651_v40  ;;  %v1831_v40 = vperm.slane %v1465_v27, 1 }
 0x441   : > { %v1695_v52 = vpop.f32.mrf.mxu1 }
 0x442   : > { %v1698_v43 = vadd.f32 %v1693_v39, %v1671_v41 }
 0x444   : > { %v1701_v44 = vadd.f32 %v1700_v42, %v1698_v43 }
 0x446   : > { %v1703_v46 = vmax.f32 %v1701_v44, 0.0  ;;  %v1834_v44 = vperm.slane %v1465_v27, 2 }
 0x447   : > { %v1653_v49 = vpop.f32.mrf.mxu3 }
 0x448   : > { %v1673_v50 = vadd.f32 %v1672_v48, %v1653_v49  ;;  %v1706_v51 = vmul.f32 %v1705_v45, %v1703_v46 }
 0x44a   : > { %v1699_v53 = vadd.f32 %v1695_v52, %v1673_v50  ;;  %v1709_v54 = vadd.f32 %v1708_v47, %v1706_v51  ;;  %v1603_v50 = vpop.f32.mrf.mxu2 }
 0x44c   : > { %v1702_v55 = vadd.f32 %v1700_v42, %v1699_v53  ;;  %1736 = vrot.lane.b32.xlu2 %v1709_v54, %s5389_s15 }
 0x44e   : > { %v1704_v56 = vmax.f32 %v1702_v55, 0.0  ;;  %v4288_v55 = vld [vmem:[%s5442_s14 + $0x8] sm:$0xff] }
 0x450   : > { %v1707_v57 = vmul.f32 %v1705_v45, %v1704_v56  ;;  %v1604_v56 = vadd.f32 %v1603_v50, %v4975_v33 }
 0x452   : > { %v1710_v58 = vadd.f32 %v1708_v47, %v1707_v57  ;;  %v1605_v51 = vpop.f32.mrf.mxu2  ;;  %v4287_v57 = vld [vmem:[%s5442_s14] sm:$0xff] }
 0x454   : > { %v1711_v59 = vpack.c.bf16 %v1710_v58, %v1709_v54  ;;  %1738 = vrot.lane.b32.xlu2 %v1710_v58, %s5389_s15  ;;  %v1470_v54 = vld [vmem:[%s5445_s8] sm:$0x7] }
 0x455   : > { %v1868_v9 = vperm.slane %v1470_v54, 2 }
 0x456   : > { %3992 = vmatmul.msk.bf16.vlgmr.msrb.gmra.mxu2 %vm1490_vm8, %v1711_v59  ;;  %v1860_v59 = vperm.slane %v1470_v54, 0 }
 0x4a6   : > { %v1737_v60 = vpop.permute.xlu2 %1736 }
 0x4a7   : > { %v1742_v61 = vadd.f32 %v1737_v60, %v4928_v17  ;;  %v1766_v17 = vsel %vm1494_vm7, %v1461_v10, 0 }
 0x4a8   : > { %1775 = vmatpush.bf16.msrb.mxu3 %v1766_v17 }
 0x4a9   : > { %v1744_v63 = vpack.c.bf16 %v1742_v61, %v1742_v61 }
 0x4ab   : > { %v1748_v4 = vunpack.c.l.b16 %v1744_v63  ;;  %v1606_v63 = vadd.f32 %v1605_v51, %v4979_v36 }
 0x4ac   : > { %1915 = vmatpush.bf16.msra.mxu3 %v4288_v55 }
 0x4ae   : > { %v1739_v62 = vpop.permute.xlu2 %1738 }
 0x4af   : > { %v1743_v0 = vadd.f32 %v1739_v62, %v4930_v20 }
 0x4b0   : > { %1916 = vmatpush.bf16.msra.mxu3 %v4287_v57 }
 0x4b1   : > { %v1745_v1 = vpack.c.bf16 %v1743_v0, %v1743_v0  ;;  %v4636_v0 = vmov 16.0  }
 0x4b2   : > { %4439 = vrcp.f32 %v4636_v0  ;;  %v4016_v0 = vld [vmem:[%s4667_s21 + $0x4] sm:$0x7] }
 0x4b3   : > { %v1749_v5 = vunpack.c.l.b16 %v1745_v1 }
 0x4b5   : > { %v1750_v6 = vpack.c.b16 %v1749_v5, %v1748_v4  ;;  %v1865_v5 = vperm.slane %v1470_v54, 1 }
 0x4b7   : > { %v1751_v7 = vrot.slane %v1750_v6, 7 }
 0x4b8   : > { %v4440_v10 = vpop.eup %4439 }
 0x4b9   : > { %1752 = vrot.lane.b32.xlu0 %v1751_v7, %s5391_s10  ;;  %vm1885_vm9 = vweird.f32 %v4440_v10 }
 0x4d9   : > { %v1727_v52 = vpop.f32.mrf.mxu2 }
 0x4da   : > { %v1732_v58 = vadd.f32 %v1727_v52, %v1604_v56 }
 0x4e1   : > { %v1729_v53 = vpop.f32.mrf.mxu2 }
 0x4e2   : > { %v1733_v1 = vadd.f32 %v1729_v53, %v1606_v63 }
 0x52b   : > { %v1753_v20 = vpop.permute.xlu0 %1752 }
 0x52c   : > { %v1755_v13 = vsel %vm1241_vm0, 0, %v1753_v20  ;;  %v1756_v14 = vsel %vm1241_vm0, %v1753_v20, 0  ;;  %v1881_v20 = vmul.f32 16.0, %v4440_v10  ;;  %vm5052_vm0 = vmand %vm2063_vm14, %vm2064_vm15 }
 0x52d   : > { %v1759_v15 = vrot.slane %v1755_v13, 1  ;;  %v1760_v16 = vrot.slane %v1756_v14, 1  ;;  %v1801_v18 = vrot.slane %v1755_v13, 2  ;;  %v1802_v19 = vrot.slane %v1756_v14, 2  ;;  %3994 = vmatmul.msk.bf16.vlgmr.msra.gmra.mxu0 %vm1490_vm8, %v1755_v13 }
 0x52f   : > { %v1761_v21 = vsel %vm1305_vm2, %v1759_v15, %v1760_v16  ;;  %v1803_v22 = vsel %vm1369_vm5, %v1801_v18, %v1802_v19  ;;  %v1882_v15 = vsub.f32 1.0, %v1881_v20  ;;  %vm2126_vm2 = vcmask 1044480  }
 0x530   : > { %3993 = vmatmul.msk.bf16.vlgmr.msrb.gmra.mxu3 %vm1490_vm8, %v1761_v21  ;;  %3995 = vmatmul.msk.bf16.vlgmr.msra.gmra.mxu1 %vm1490_vm8, %v1803_v22 }
 0x531   : > { %v1883_v19 = vmul.f32 %v4440_v10, %v1882_v15 }
 0x533   : > { %v1884_v23 = vadd.f32 %v4440_v10, %v1883_v19 }
 0x5aa   : > { %v1796_v25 = vpop.f32.mrf.mxu0 }
 0x5ad   : > { %v1819_v26 = vpop.f32.mrf.mxu1 }
 0x5b2   : > { %v1798_v34 = vpop.f32.mrf.mxu0 }
 0x5b3   : > { %v1777_v28 = vpop.f32.mrf.mxu3 }
 0x5b4   : > { %v1797_v29 = vadd.f32 %v1796_v25, %v1777_v28 }
 0x5b5   : > { %v1821_v38 = vpop.f32.mrf.mxu1 }
 0x5b6   : > { %v1824_v30 = vadd.f32 %v1819_v26, %v1797_v29  ;;  %v5012_v26 = vsel %vm1885_vm9, %v4440_v10, %v1884_v23  ;;  %vm2714_vm9 = vcmask 523264  }
 0x5b8   : > { %v1827_v32 = vadd.f32 %v1826_v31, %v1824_v30  ;;  %v4289_v30 = vld [vmem:[%s4702_s24] sm:$0xff] }
 0x5b9   : > { %1943 = vmatpush.bf16.msrb.mxu0 %v4289_v30 }
 0x5ba   : > { %v1829_v39 = vmax.f32 %v1827_v32, 0.0 }
 0x5bb   : > { %v1779_v35 = vpop.f32.mrf.mxu3 }
 0x5bc   : > { %v1799_v37 = vadd.f32 %v1798_v34, %v1779_v35  ;;  %v1832_v43 = vmul.f32 %v1831_v40, %v1829_v39  ;;  %v4293_v39 = vld [vmem:[%s4662_s17 + $0x18] sm:$0xff] }
 0x5bd   : > { %2007 = vmatpush.bf16.msrb.mxu1 %v4293_v39 }
 0x5be   : > { %v1825_v41 = vadd.f32 %v1821_v38, %v1799_v37  ;;  %v1835_v47 = vadd.f32 %v1834_v44, %v1832_v43 }
 0x5c0   : > { %v1828_v42 = vadd.f32 %v1826_v31, %v1825_v41  ;;  %v1893_v31 = vld [vmem:[%s4697_s19] sm:$0x1]  ;;  %v4292_v41 = vld [vmem:[%s4662_s17 + $0x10] sm:$0xff] }
 0x5c1   : > { %2008 = vmatpush.bf16.msrb.mxu1 %v4292_v41 }
 0x5c2   : > { %v1830_v45 = vmax.f32 %v1828_v42, 0.0 }
 0x5c4   : > { %v1833_v46 = vmul.f32 %v1831_v40, %v1830_v45  ;;  %v1926_v40 = vld [vmem:[%s4707_s30] sm:$0x1] }
 0x5c6   : > { %v1836_v48 = vadd.f32 %v1834_v44, %v1833_v46 }
 0x5c8   : > { %v1837_v49 = vpack.c.bf16 %v1836_v48, %v1835_v47 }
 0x5ca   : > { %3996 = vmatmul.msk.bf16.vlgmr.msra.gmra.mxu2 %vm1490_vm8, %v1837_v49 }
 0x64d   : > { %v1853_v60 = vpop.f32.mrf.mxu2 }
 0x64e   : > { %v1858_v61 = vadd.f32 %v1853_v60, %v1732_v58 }
 0x650   : > { %v1861_v62 = vadd.f32 %v1860_v59, %v1858_v61 }
 0x652   : > { %v1863_v4 = vmax.f32 %v1861_v62, 0.0 }
 0x654   : > { %v1866_v8 = vmul.f32 %v1865_v5, %v1863_v4  ;;  %v4026_v4 = vld [vmem:[%s4672_s25 + $0x24] sm:$0xf] }
 0x655   : > { %v1855_v6 = vpop.f32.mrf.mxu2 }
 0x656   : > { %v1859_v7 = vadd.f32 %v1855_v6, %v1733_v1  ;;  %v1869_v17 = vadd.f32 %v1868_v9, %v1866_v8  ;;  %v1985_v1 = vperm.slane %v4016_v0, 0  ;;  %v2017_v8 = vperm.slane %v4016_v0, 1 }
 0x658   : > { %v1862_v33 = vadd.f32 %v1860_v59, %v1859_v7  ;;  %v1871_v14 = vsel %vm1428_vm6, %v1869_v17, 0.0 }
 0x65a   : > { %v1864_v11 = vmax.f32 %v1862_v33, 0.0 }
 0x65c   : > { %v1867_v12 = vmul.f32 %v1865_v5, %v1864_v11  ;;  %v2108_v5 = vsel %vm1494_vm7, %v4026_v4, 0 }
 0x65d   : > { %2117 = vmatpush.bf16.msrb.mxu3 %v2108_v5 }
 0x65e   : > { %v1870_v13 = vadd.f32 %v1868_v9, %v1867_v12 }
 0x660   : > { %v1872_v36 = vsel %vm1428_vm6, %v1870_v13, 0.0 }
 0x661   : > { %v1873_v16 = vadd.f32 %v1872_v36, %v1871_v14 }
 0x663   : > { %v1874_v18 = vrot.slane %v1873_v16, 4 }
 0x665   : > { %v1875_v21 = vadd.f32 %v1874_v18, %v1873_v16 }
 0x667   : > { %v1876_v22 = vrot.slane %v1875_v21, 2 }
 0x669   : > { %v1877_v24 = vadd.f32 %v1876_v22, %v1875_v21 }
 0x66b   : > { %v1878_v25 = vrot.slane %v1877_v24, 1 }
 0x66d   : > { %v1879_v27 = vadd.f32 %v1878_v25, %v1877_v24  ;;  %v4028_v24 = vld [vmem:[%s4672_s25 + $0x2c] sm:$0xf] }
 0x66e   : > { %v2134_v25 = vsel %vm1494_vm7, %v4028_v24, 0 }
 0x66f   : > { %v1887_v28 = vmul.f32 %v5012_v26, %v1879_v27  ;;  %2143 = vmatpush.bf16.msra.mxu0 %v2134_v25  ;;  %v4027_v27 = vld [vmem:[%s4672_s25 + $0x28] sm:$0xf] }
 0x671   : > { %v1892_v29 = vpack.c.bf16 %v1887_v28, %v1887_v28  ;;  %v2089_v28 = vsel %vm1494_vm7, %v4027_v27, 0 }
 0x672   : > { %2098 = vmatpush.bf16.msrb.mxu2 %v2089_v28 }
 0x673   : > { %4005 = vmatmul.msk.bf16.vlgmr.msra.gmra.mxu3 %vm1428_vm6, %v1892_v29  ;;  %v4038_v29 = vld [vmem:[%s5447_s3 + $0x10] sm:$0xf] }
 0x674   : > { %v2188_v30 = vsel %vm1494_vm7, %v4038_v29, 0 }
 0x676   : > { %2197 = vmatpush.bf16.msra.mxu2 %v2188_v30 }
 0x6f6   : > { %v1918_v32 = vpop.f32.mrf.mxu3 }
 0x6f7   : > { %v1919_v34 = vadd.f32 %v1918_v32, %v1893_v31 }
 0x6f9   : > { %v1922_v35 = vmax.f32 %v1919_v34, 0.0 }
 0x6fb   : > { %v1925_v37 = vpack.c.bf16 %v1922_v35, %v1922_v35 }
 0x6fd   : > { %4010 = vmatmul.msk.bf16.vlgmr.msrb.gmra.mxu0 %vm1263_vm1, %v1925_v37 }
 0x6fe   : > { %v1920_v38 = vpop.f32.mrf.mxu3 }
 0x77a   : > { %v1945_v42 = vpop.f32.mrf.mxu0 }
 0x77b   : > { %v1946_v43 = vadd.f32 %v1945_v42, %v1926_v40 }
 0x77d   : > { %v4011_v44 = vmul.f32 -1.442695, %v1946_v43 }
 0x77f   : > { %4441 = vpow2.f32 %v4011_v44 }
 0x782   : > { %v1947_v45 = vpop.f32.mrf.mxu0 }
 0x785   : > { %v4442_v46 = vpop.eup %4441 }
 0x786   : > { %v1952_v47 = vadd.f32 1.0, %v4442_v46 }
 0x788   : > { %4443 = vrcp.f32 %v1952_v47  ;;  %v1964_v51 = vand.u32 2147483648, %v1952_v47  ;;  %v1962_v53 = vand.u32 2147483647, %v1952_v47  ;;  %vm1958_vm11 = vweird.f32 %v1952_v47 }
 0x78a   : > { %v1965_v55 = vor.u32 1.1754944e-38, %v1964_v51  ;;  %vm1963_vm13 = vcmp.eq.f32.partialorder %v1962_v53, 8.507059e+37 }
 0x78e   : > { %v4444_v48 = vpop.eup %4443 }
 0x78f   : > { %v1954_v49 = vmul.f32 %v4444_v48, %v1952_v47  ;;  %vm1959_vm10 = vweird.f32 %v4444_v48 }
 0x790   : > { %vm1960_vm12 = vmor %vm1958_vm11, %vm1959_vm10 }
 0x791   : > { %v1955_v50 = vsub.f32 1.0, %v1954_v49 }
 0x793   : > { %v1956_v52 = vmul.f32 %v4444_v48, %v1955_v50 }
 0x795   : > { %v1957_v54 = vadd.f32 %v4444_v48, %v1956_v52  ;;  %v4039_v52 = vld [vmem:[%s5447_s3 + $0x14] sm:$0xf] }
 0x796   : > { %v2168_v53 = vsel %vm1494_vm7, %v4039_v52, 0 }
 0x797   : > { %v1961_v56 = vsel %vm1960_vm12, %v4444_v48, %v1957_v54  ;;  %2177 = vmatpush.bf16.msra.mxu1 %v2168_v53  ;;  %vm3321_vm12 = vcmask 195584  }
 0x798   : > { %v1966_v57 = vsel %vm1963_vm13, %v1965_v55, %v1961_v56  ;;  %v4035_v55 = vld [vmem:[%s4677_s29 + $0xc] sm:$0x7]  ;;  %vm2920_vm13 = vcmask 253952  }
 0x799   : > { %v1968_v58 = vperm.slane %v1966_v57, 0  ;;  %v2160_v5 = vperm.slane %v4035_v55, 2 }
 0x79b   : > { %v1969_v59 = vmul.f32 %v1968_v58, %v1869_v17  ;;  %v1970_v60 = vmul.f32 %v1968_v58, %v1870_v13 }
 0x79d   : > { %v5023_v61 = vadd.f32 %v1969_v59, %v4918_v2  ;;  %v5026_v62 = vadd.f32 %v1970_v60, %v4920_v3  ;;  %v2020_v3 = vperm.slane %v4016_v0, 2  ;;  %v2152_v59 = vperm.slane %v4035_v55, 0 }
 0x79f   : > { %v5030_v63 = vpack.c.bf16 %v5026_v62, %v5023_v61 }
 0x7a1   : > { %4025 = vmatmul.msk.bf16.vlgmr.msrb.gmra.mxu1 %vm1428_vm6, %v5030_v63 }
 0x81e   : > { %v2010_v6 = vpop.f32.mrf.mxu1 }
 0x81f   : > { %v2011_v7 = vadd.f32 %v2010_v6, %v1985_v1 }
 0x821   : > { %v2015_v2 = vmax.f32 %v2011_v7, 0.0 }
 0x823   : > { %v2018_v9 = vmul.f32 %v2017_v8, %v2015_v2 }
 0x825   : > { %v5037_v11 = vadd.f32 %v2020_v3, %v2018_v9 }
 0x826   : > { %v2012_v33 = vpop.f32.mrf.mxu1 }
 0x827   : > { %v2013_v10 = vadd.f32 %v2012_v33, %v1985_v1  ;;  %v2045_v13 = vpack.c.bf16 %v5037_v11, %v5037_v11  ;;  %v2157_v1 = vperm.slane %v4035_v55, 1 }
 0x829   : > { %v2016_v17 = vmax.f32 %v2013_v10, 0.0  ;;  %v2049_v36 = vunpack.c.l.b16 %v2045_v13 }
 0x82b   : > { %v2019_v12 = vmul.f32 %v2017_v8, %v2016_v17 }
 0x82d   : > { %v5039_v20 = vadd.f32 %v2020_v3, %v2019_v12 }
 0x82f   : > { %v2046_v14 = vpack.c.bf16 %v5039_v20, %v5039_v20  ;;  %v2044_v51 = vpack.c.bf16 %v5039_v20, %v5037_v11 }
 0x831   : > { %v2050_v15 = vunpack.c.l.b16 %v2046_v14 }
 0x833   : > { %v2051_v16 = vpack.c.b16 %v2050_v15, %v2049_v36  ;;  %v4029_v36 = vld [vmem:[%s4672_s25 + $0x30] sm:$0xf] }
 0x834   : > { %v2274_v15 = vsel %vm1494_vm7, %v4029_v36, 0 }
 0x835   : > { %v2053_v18 = vshrl.u32 %v2051_v16, 16  ;;  %v2056_v19 = vshll.u32 %v2051_v16, 16  ;;  %2283 = vmatpush.bf16.msrb.mxu0 %v2274_v15 }
 0x837   : > { %v2055_v21 = vrot.slane %v2053_v18, 6  ;;  %v2058_v22 = vrot.slane %v2056_v19, 7 }
 0x839   : > { %v2059_v23 = vor.u32 %v2058_v22, %v2055_v21 }
 0x83b   : > { %2060 = vrot.lane.b32.xlu1 %v2059_v23, %s5393_s16  ;;  %s5457_s16 = sld [smem:[#allocation26_spill]] }
 0x8ad   : > { %v2061_v32 = vpop.permute.xlu1 %2060 }
 0x8ae   : > { %v2066_v34 = vsel %vm5052_vm0, 0, %v2061_v32  ;;  %v2067_v35 = vsel %vm5052_vm0, %v2061_v32, 0 }
 0x8af   : > { %v2069_v37 = vshrl.u32 %v2066_v34, 16  ;;  %v2072_v38 = vshll.u32 %v2066_v34, 16  ;;  %v2077_v39 = vshrl.u32 %v2067_v35, 16  ;;  %v2080_v40 = vshll.u32 %v2067_v35, 16  ;;  %4044 = vmatmul.msk.bf16.vlgmr.msrb.gmra.mxu3 %vm1490_vm8, %v2066_v34 }
 0x8b0   : > { %v2127_v41 = vrot.slane %v2066_v34, 3  ;;  %v2128_v42 = vrot.slane %v2067_v35, 3  ;;  %v4031_v35 = vld [vmem:[%s4672_s25 + $0x38] sm:$0xf] }
 0x8b1   : > { %v2071_v43 = vrot.slane %v2069_v37, 1  ;;  %v2074_v44 = vrot.slane %v2072_v38, 2  ;;  %v2079_v45 = vrot.slane %v2077_v39, 1  ;;  %v2082_v46 = vrot.slane %v2080_v40, 2  ;;  %v4030_v38 = vld [vmem:[%s4672_s25 + $0x34] sm:$0xf] }
 0x8b2   : > { %v2129_v47 = vsel %vm2126_vm2, %v2127_v41, %v2128_v42  ;;  %v2299_v37 = vsel %vm1494_vm7, %v4031_v35, 0  ;;  %v2255_v39 = vsel %vm1494_vm7, %v4030_v38, 0 }
 0x8b3   : > { %v2075_v48 = vor.u32 %v2074_v44, %v2071_v43  ;;  %v2083_v49 = vor.u32 %v2082_v46, %v2079_v45  ;;  %4045 = vmatmul.msk.bf16.vlgmr.msra.gmra.mxu0 %vm1490_vm8, %v2129_v47  ;;  %2308 = vmatpush.bf16.msrb.mxu1 %v2299_v37 }
 0x8b4   : > { %2264 = vmatpush.bf16.msra.mxu3 %v2255_v39 }
 0x8b5   : > { %v2084_v50 = vsel %vm1334_vm4, %v2075_v48, %v2083_v49 }
 0x8b6   : > { %4043 = vmatmul.msk.bf16.vlgmr.msrb.gmra.mxu2 %vm1490_vm8, %v2084_v50 }
 0x8c6   : > { %4047 = vmatmul.msk.bf16.vlgmr.msra.gmra.mxu2 %vm1490_vm8, %v2044_v51 }
 0x930   : > { %v2145_v56 = vpop.f32.mrf.mxu0 }
 0x932   : > { %v2119_v54 = vpop.f32.mrf.mxu3 }
 0x938   : > { %v2147_v9 = vpop.f32.mrf.mxu0 }
 0x939   : > { %v2100_v57 = vpop.f32.mrf.mxu2 }
 0x93a   : > { %v2120_v58 = vadd.f32 %v2119_v54, %v2100_v57  ;;  %v2121_v6 = vpop.f32.mrf.mxu3 }
 0x93c   : > { %v2150_v60 = vadd.f32 %v2145_v56, %v2120_v58  ;;  %v4040_v58 = vld [vmem:[%s5447_s3 + $0x18] sm:$0xf] }
 0x93e   : > { %v2153_v0 = vadd.f32 %v2152_v59, %v2150_v60 }
 0x940   : > { %v2155_v4 = vmax.f32 %v2153_v0, 0.0 }
 0x941   : > { %v2102_v7 = vpop.f32.mrf.mxu2 }
 0x942   : > { %v2122_v2 = vadd.f32 %v2121_v6, %v2102_v7  ;;  %v2158_v8 = vmul.f32 %v2157_v1, %v2155_v4 }
 0x944   : > { %v2151_v3 = vadd.f32 %v2147_v9, %v2122_v2  ;;  %v2161_v33 = vadd.f32 %v2160_v5, %v2158_v8 }
 0x946   : > { %v2154_v10 = vadd.f32 %v2152_v59, %v2151_v3  ;;  %2206 = vrot.lane.b32.xlu2 %v2161_v33, %s5387_s26  ;;  %v2333_v59 = vsel %vm1494_vm7, %v4040_v58, 0 }
 0x947   : > { %2342 = vmatpush.bf16.msrb.mxu2 %v2333_v59 }
 0x948   : > { %v2156_v17 = vmax.f32 %v2154_v10, 0.0 }
 0x94a   : > { %v2159_v12 = vmul.f32 %v2157_v1, %v2156_v17  ;;  %v4036_v1 = vld [vmem:[%s4677_s29 + $0x10] sm:$0x7] }
 0x94b   : > { %v2317_v7 = vperm.slane %v4036_v1, 0  ;;  %v2322_v9 = vperm.slane %v4036_v1, 1 }
 0x94c   : > { %v2162_v13 = vadd.f32 %v2160_v5, %v2159_v12 }
 0x94e   : > { %2208 = vrot.lane.b32.xlu0 %v2162_v13, %s5387_s26  ;;  %v2163_v14 = vpack.c.bf16 %v2162_v13, %v2161_v33  ;;  %s5454_s26 = smov 112   ;;  %v2325_v33 = vperm.slane %v4036_v1, 2 }
 0x950   : > { %4046 = vmatmul.msk.bf16.vlgmr.msra.gmra.mxu1 %vm1490_vm8, %v2163_v14 }
 0x9a0   : > { %v2207_v16 = vpop.permute.xlu2 %2206 }
 0x9a1   : > { %v2212_v18 = vadd.f32 %v2207_v16, %v5037_v11 }
 0x9a3   : > { %v2214_v21 = vpack.c.bf16 %v2212_v18, %v2212_v18 }
 0x9a5   : > { %v2218_v24 = vunpack.c.l.b16 %v2214_v21 }
 0x9c0   : > { %v2209_v19 = vpop.permute.xlu0 %2208 }
 0x9c1   : > { %v2213_v22 = vadd.f32 %v2209_v19, %v5039_v20 }
 0x9c3   : > { %v2215_v23 = vpack.c.bf16 %v2213_v22, %v2213_v22 }
 0x9c5   : > { %v2219_v25 = vunpack.c.l.b16 %v2215_v23 }
 0x9c7   : > { %v2220_v27 = vpack.c.b16 %v2219_v25, %v2218_v24  ;;  %v4032_v24 = vld [vmem:[%s4672_s25 + $0x3c] sm:$0xf] }
 0x9c9   : > { %v2222_v28 = vshrl.u32 %v2220_v27, 16  ;;  %v2225_v29 = vshll.u32 %v2220_v27, 16  ;;  %v2421_v27 = vsel %vm1494_vm7, %v4032_v24, 0 }
 0x9ca   : > { %2430 = vmatpush.bf16.msra.mxu0 %v2421_v27 }
 0x9cb   : > { %v2224_v30 = vrot.slane %v2222_v28, 6  ;;  %v2227_v32 = vrot.slane %v2225_v29, 7 }
 0x9cd   : > { %v2228_v34 = vor.u32 %v2227_v32, %v2224_v30  ;;  %v5092_v57 = vpop.f32.mrf.mxu1 }
 0x9cf   : > { %2229 = vrot.lane.b32.xlu1 %v2228_v34, %s5454_s26 }
 0x9d5   : > { %v5096_v60 = vpop.f32.mrf.mxu1 }
 0xa41   : > { %v2230_v40 = vpop.permute.xlu1 %2229 }
 0xa42   : > { %v2232_v41 = vsel %vm5052_vm0, 0, %v2230_v40  ;;  %v2233_v42 = vsel %vm5052_vm0, %v2230_v40, 0 }
 0xa43   : > { %v2235_v43 = vshrl.u32 %v2232_v41, 16  ;;  %v2238_v44 = vshll.u32 %v2232_v41, 16  ;;  %v2243_v45 = vshrl.u32 %v2233_v42, 16  ;;  %v2246_v46 = vshll.u32 %v2233_v42, 16  ;;  %4049 = vmatmul.msk.bf16.vlgmr.msrb.gmra.mxu0 %vm1490_vm8, %v2232_v41 }
 0xa44   : > { %v2292_v47 = vrot.slane %v2232_v41, 3  ;;  %v2293_v48 = vrot.slane %v2233_v42, 3 }
 0xa45   : > { %v2237_v49 = vrot.slane %v2235_v43, 1  ;;  %v2240_v50 = vrot.slane %v2238_v44, 2  ;;  %v2245_v51 = vrot.slane %v2243_v45, 1  ;;  %v2248_v52 = vrot.slane %v2246_v46, 2  ;;  %v4033_v44 = vld [vmem:[%s4672_s25 + $0x40] sm:$0xf] }
 0xa46   : > { %v2294_v53 = vsel %vm2126_vm2, %v2292_v47, %v2293_v48  ;;  %v2402_v45 = vsel %vm1494_vm7, %v4033_v44, 0 }
 0xa47   : > { %v2241_v54 = vor.u32 %v2240_v50, %v2237_v49  ;;  %v2249_v55 = vor.u32 %v2248_v52, %v2245_v51  ;;  %4050 = vmatmul.msk.bf16.vlgmr.msrb.gmra.mxu1 %vm1490_vm8, %v2294_v53  ;;  %2411 = vmatpush.bf16.msrb.mxu3 %v2402_v45 }
 0xa49   : > { %v2250_v56 = vsel %vm1334_vm4, %v2241_v54, %v2249_v55 }
 0xa4a   : > { %4048 = vmatmul.msk.bf16.vlgmr.msra.gmra.mxu3 %vm1490_vm8, %v2250_v56 }
 0xac0   : > { %v2285_v0 = vpop.f32.mrf.mxu0 }
 0xac4   : > { %v2310_v4 = vpop.f32.mrf.mxu1 }
 0xac8   : > { %v2287_v10 = vpop.f32.mrf.mxu0 }
 0xacc   : > { %v2312_v14 = vpop.f32.mrf.mxu1 }
 0xacd   : > { %v2266_v5 = vpop.f32.mrf.mxu3 }
 0xace   : > { %v2286_v6 = vadd.f32 %v2285_v0, %v2266_v5 }
 0xad0   : > { %v2315_v2 = vadd.f32 %v2310_v4, %v2286_v6  ;;  %v4041_v4 = vld [vmem:[%s5447_s3 + $0x1c] sm:$0xf]  ;;  %v4291_v6 = vld [vmem:[%s5446_s6 + $0x8] sm:$0xff]  ;;  %s5458_s3 = sld [smem:[#allocation15_spill]] }
 0xad1   : > { %v2480_v5 = vsel %vm1494_vm7, %v4041_v4, 0 }
 0xad2   : > { %v2318_v8 = vadd.f32 %v2317_v7, %v2315_v2  ;;  %2489 = vmatpush.bf16.msra.mxu2 %v2480_v5 }
 0xad4   : > { %v2320_v3 = vmax.f32 %v2318_v8, 0.0 }
 0xad5   : > { %v2268_v17 = vpop.f32.mrf.mxu3 }
 0xad6   : > { %v2288_v12 = vadd.f32 %v2287_v10, %v2268_v17  ;;  %v2323_v13 = vmul.f32 %v2322_v9, %v2320_v3 }
 0xad8   : > { %v2316_v36 = vadd.f32 %v2312_v14, %v2288_v12  ;;  %v2326_v15 = vadd.f32 %v2325_v33, %v2323_v13 }
 0xada   : > { %v2319_v16 = vadd.f32 %v2317_v7, %v2316_v36  ;;  %2353 = vrot.lane.b32.xlu2 %v2326_v15, %s5389_s15  ;;  %v4290_v7 = vld [vmem:[%s5446_s6] sm:$0xff] }
 0xadc   : > { %v2321_v18 = vmax.f32 %v2319_v16, 0.0 }
 0xade   : > { %v2324_v19 = vmul.f32 %v2322_v9, %v2321_v18  ;;  %v4037_v9 = vld [vmem:[%s4677_s29 + $0x14] sm:$0x7] }
 0xadf   : > { %v2464_v17 = vperm.slane %v4037_v9, 0  ;;  %v2469_v18 = vperm.slane %v4037_v9, 1 }
 0xae0   : > { %v2327_v21 = vadd.f32 %v2325_v33, %v2324_v19 }
 0xae2   : > { %2355 = vrot.lane.b32.xlu0 %v2327_v21, %s5389_s15  ;;  %v2328_v22 = vpack.c.bf16 %v2327_v21, %v2326_v15  ;;  %s5455_s15 = sld [smem:[#allocation16_spill]] }
 0xae4   : > { %4051 = vmatmul.msk.bf16.vlgmr.msrb.gmra.mxu2 %vm1490_vm8, %v2328_v22 }
 0xae5   : > { %2661 = vmatpush.bf16.msrb.mxu2 %v4291_v6 }
 0xae9   : > { %2662 = vmatpush.bf16.msrb.mxu2 %v4290_v7  ;;  %v4296_v7 = vld [vmem:[%s4702_s24 + $0x8] sm:$0xff] }
 0xaea   : > { %2578 = vmatpush.bf16.msrb.mxu0 %v4296_v7 }
 0xb34   : > { %v2354_v23 = vpop.permute.xlu2 %2353 }
 0xb35   : > { %v2359_v25 = vadd.f32 %v2354_v23, %v5037_v11  ;;  %v4034_v11 = vld [vmem:[%s4672_s25 + $0x44] sm:$0xf]  ;;  %v2472_v23 = vperm.slane %v4037_v9, 2 }
 0xb36   : > { %v2446_v43 = vsel %vm1494_vm7, %v4034_v11, 0  ;;  %v4294_v11 = vld [vmem:[%s5442_s14 + $0x10] sm:$0xff] }
 0xb37   : > { %v2361_v29 = vpack.c.bf16 %v2359_v25, %v2359_v25  ;;  %2455 = vmatpush.bf16.msra.mxu1 %v2446_v43 }
 0xb39   : > { %v2365_v34 = vunpack.c.l.b16 %v2361_v29 }
 0xb54   : > { %v2356_v28 = vpop.permute.xlu0 %2355 }
 0xb55   : > { %v2360_v30 = vadd.f32 %v2356_v28, %v5039_v20 }
 0xb57   : > { %v2362_v32 = vpack.c.bf16 %v2360_v30, %v2360_v30  ;;  %v2199_v30 = vpop.f32.mrf.mxu2 }
 0xb59   : > { %v2366_v35 = vunpack.c.l.b16 %v2362_v32 }
 0xb5b   : > { %v2367_v37 = vpack.c.b16 %v2366_v35, %v2365_v34 }
 0xb5d   : > { %v2369_v38 = vshrl.u32 %v2367_v37, 16  ;;  %v2372_v39 = vshll.u32 %v2367_v37, 16  ;;  %v4042_v37 = vld [vmem:[%s5445_s8 + $0x4] sm:$0x7]  ;;  %s5461_s8 = sld [smem:[#allocation25_spill]] }
 0xb5f   : > { %v2371_v40 = vrot.slane %v2369_v38, 6  ;;  %v2374_v41 = vrot.slane %v2372_v39, 7  ;;  %v2201_v32 = vpop.f32.mrf.mxu2  ;;  %v2200_v38 = vadd.f32 %v2199_v30, %v5092_v57  ;;  %v4295_v39 = vld [vmem:[%s5442_s14 + $0x18] sm:$0xff] }
 0xb60   : > { %2548 = vmatpush.bf16.msra.mxu3 %v4295_v39  ;;  %v2202_v45 = vadd.f32 %v2201_v32, %v5096_v60 }
 0xb61   : > { %v2375_v42 = vor.u32 %v2374_v41, %v2371_v40  ;;  %v2498_v41 = vperm.slane %v4042_v37, 0 }
 0xb63   : > { %2376 = vrot.lane.b32.xlu1 %v2375_v42, %s5391_s10  ;;  %s5456_s10 = sld [smem:[#allocation24_spill]] }
 0xb64   : > { %2549 = vmatpush.bf16.msra.mxu3 %v4294_v11 }
 0xb67   : > { %v2344_v34 = vpop.f32.mrf.mxu2 }
 0xb68   : > { %v2349_v40 = vadd.f32 %v2344_v34, %v2200_v38 }
 0xb69   : > { %v4314_v11 = vld [vmem:[%s5456_s10 + $0x10] sm:$0xff] }
 0xb6f   : > { %v2346_v35 = vpop.f32.mrf.mxu2 }
 0xbd5   : > { %v2377_v20 = vpop.permute.xlu1 %2376 }
 0xbd6   : > { %v2379_v46 = vsel %vm5052_vm0, 0, %v2377_v20  ;;  %v2380_v47 = vsel %vm5052_vm0, %v2377_v20, 0  ;;  %v2350_v20 = vadd.f32 %v2346_v35, %v2202_v45  ;;  %v4319_v45 = vld [vmem:[%s5457_s16 + $0x18] sm:$0xff] }
 0xbd7   : > { %v2382_v48 = vshrl.u32 %v2379_v46, 16  ;;  %v2385_v49 = vshll.u32 %v2379_v46, 16  ;;  %v2390_v50 = vshrl.u32 %v2380_v47, 16  ;;  %v2393_v51 = vshll.u32 %v2380_v47, 16  ;;  %4053 = vmatmul.msk.bf16.vlgmr.msra.gmra.mxu0 %vm1490_vm8, %v2379_v46 }
 0xbd8   : > { %v2439_v52 = vrot.slane %v2379_v46, 3  ;;  %v2440_v53 = vrot.slane %v2380_v47, 3  ;;  %v2503_v46 = vperm.slane %v4042_v37, 1 }
 0xbd9   : > { %v2384_v54 = vrot.slane %v2382_v48, 1  ;;  %v2387_v55 = vrot.slane %v2385_v49, 2  ;;  %v2392_v56 = vrot.slane %v2390_v50, 1  ;;  %v2395_v58 = vrot.slane %v2393_v51, 2 }
 0xbda   : > { %v2441_v59 = vsel %vm2126_vm2, %v2439_v52, %v2440_v53  ;;  %v2506_v50 = vperm.slane %v4042_v37, 2 }
 0xbdb   : > { %v2388_v31 = vor.u32 %v2387_v55, %v2384_v54  ;;  %v2396_v0 = vor.u32 %v2395_v58, %v2392_v56  ;;  %4054 = vmatmul.msk.bf16.vlgmr.msra.gmra.mxu1 %vm1490_vm8, %v2441_v59 }
 0xbdd   : > { %v2397_v1 = vsel %vm1334_vm4, %v2388_v31, %v2396_v0 }
 0xbde   : > { %4052 = vmatmul.msk.bf16.vlgmr.msrb.gmra.mxu3 %vm1490_vm8, %v2397_v1 }
 0xc54   : > { %v2432_v2 = vpop.f32.mrf.mxu0 }
 0xc58   : > { %v2457_v8 = vpop.f32.mrf.mxu1 }
 0xc5c   : > { %v2434_v13 = vpop.f32.mrf.mxu0 }
 0xc60   : > { %v2459_v15 = vpop.f32.mrf.mxu1 }
 0xc61   : > { %v2413_v3 = vpop.f32.mrf.mxu3 }
 0xc62   : > { %v2433_v33 = vadd.f32 %v2432_v2, %v2413_v3  ;;  %v4060_v2 = vld [vmem:[%s4697_s19 + $0x1] sm:$0x1] }
 0xc64   : > { %v2462_v10 = vadd.f32 %v2457_v8, %v2433_v33 }
 0xc66   : > { %v2465_v12 = vadd.f32 %v2464_v17, %v2462_v10 }
 0xc68   : > { %v2467_v16 = vmax.f32 %v2465_v12, 0.0  ;;  %v4072_v12 = vld [vmem:[%s4707_s30 + $0x1] sm:$0x1] }
 0xc69   : > { %v2415_v14 = vpop.f32.mrf.mxu3 }
 0xc6a   : > { %v2435_v36 = vadd.f32 %v2434_v13, %v2415_v14  ;;  %v2470_v22 = vmul.f32 %v2469_v18, %v2467_v16  ;;  %v4297_v13 = vld [vmem:[%s5446_s6 + $0x10] sm:$0xff] }
 0xc6c   : > { %v2463_v19 = vadd.f32 %v2459_v15, %v2435_v36  ;;  %v2473_v27 = vadd.f32 %v2472_v23, %v2470_v22 }
 0xc6e   : > { %v2466_v21 = vadd.f32 %v2464_v17, %v2463_v19  ;;  %v4298_v17 = vld [vmem:[%s5446_s6 + $0x18] sm:$0xff]  ;;  %s5460_s6 = sld [smem:[#allocation28_spill]] }
 0xc6f   : > { %2635 = vmatpush.bf16.msrb.mxu1 %v4298_v17 }
 0xc70   : > { %v2468_v24 = vmax.f32 %v2466_v21, 0.0 }
 0xc72   : > { %v2471_v25 = vmul.f32 %v2469_v18, %v2468_v24 }
 0xc73   : > { %2636 = vmatpush.bf16.msrb.mxu1 %v4297_v13 }
 0xc74   : > { %v2474_v28 = vadd.f32 %v2472_v23, %v2471_v25 }
 0xc76   : > { %v2475_v29 = vpack.c.bf16 %v2474_v28, %v2473_v27 }
 0xc78   : > { %4055 = vmatmul.msk.bf16.vlgmr.msra.gmra.mxu2 %vm1490_vm8, %v2475_v29 }
 0xc88   : > { %4100 = vmatmul.msk.bf16.vlgmr.msrb.gmra.mxu2 %vm1428_vm6, %v5030_v63 }
 0xcfb   : > { %v2491_v42 = vpop.f32.mrf.mxu2 }
 0xcfc   : > { %v2496_v43 = vadd.f32 %v2491_v42, %v2349_v40  ;;  %v4302_v40 = vld [vmem:[%s5455_s15 + $0x18] sm:$0xff]  ;;  %v4301_v42 = vld [vmem:[%s5455_s15 + $0x10] sm:$0xff] }
 0xcfd   : > { %2722 = vmatpush.bf16.msrb.mxu3 %v4302_v40 }
 0xcfe   : > { %v2499_v44 = vadd.f32 %v2498_v41, %v2496_v43  ;;  %v4313_v43 = vld [vmem:[%s5456_s10 + $0x8] sm:$0xff] }
 0xd00   : > { %v2501_v63 = vmax.f32 %v2499_v44, 0.0  ;;  %v4312_v44 = vld [vmem:[%s5456_s10] sm:$0xff] }
 0xd01   : > { %2723 = vmatpush.bf16.msrb.mxu3 %v4301_v42 }
 0xd02   : > { %v2504_v49 = vmul.f32 %v2503_v46, %v2501_v63  ;;  %v4317_v63 = vld [vmem:[%s5457_s16 + $0x8] sm:$0xff] }
 0xd03   : > { %v2493_v47 = vpop.f32.mrf.mxu2 }
 0xd04   : > { %v2497_v48 = vadd.f32 %v2493_v47, %v2350_v20  ;;  %v2507_v52 = vadd.f32 %v2506_v50, %v2504_v49  ;;  %v4318_v20 = vld [vmem:[%s5457_s16 + $0x10] sm:$0xff] }
 0xd06   : > { %v2500_v51 = vadd.f32 %v2498_v41, %v2497_v48  ;;  %v2509_v55 = vsel %vm1428_vm6, %v2507_v52, 0.0  ;;  %v4315_v41 = vld [vmem:[%s5456_s10 + $0x18] sm:$0xff]  ;;  %s5475_s10 = smov 16  }
 0xd07   : > { %2978 = vmatpush.bf16.msra.mxu2 %v4315_v41 }
 0xd08   : > { %v2502_v57 = vmax.f32 %v2500_v51, 0.0 }
 0xd0a   : > { %v2505_v53 = vmul.f32 %v2503_v46, %v2502_v57  ;;  %v4316_v46 = vld [vmem:[%s5457_s16] sm:$0xff] }
 0xd0b   : > { %2979 = vmatpush.bf16.msra.mxu2 %v4314_v11  ;;  %v2664_v47 = vpop.f32.mrf.mxu2 }
 0xd0c   : > { %v2508_v54 = vadd.f32 %v2506_v50, %v2505_v53  ;;  %v4428_v50 = vld [vmem:[%s5458_s3] ss:$0 sm:$0xff]  ;;  %s5463_s3 = sld [smem:[#allocation27_spill]] }
 0xd0e   : > { %v2510_v56 = vsel %vm1428_vm6, %v2508_v54, 0.0 }
 0xd0f   : > { %v2511_v58 = vadd.f32 %v2510_v56, %v2509_v55  ;;  %2980 = vmatpush.bf16.msra.mxu2 %v4313_v43 }
 0xd11   : > { %v2512_v60 = vrot.slane %v2511_v58, 4 }
 0xd13   : > { %v2513_v59 = vadd.f32 %v2512_v60, %v2511_v58  ;;  %2981 = vmatpush.bf16.msra.mxu2 %v4312_v44  ;;  %v2666_v51 = vpop.f32.mrf.mxu2  ;;  %v4303_v60 = vld [vmem:[%s5459_s5] sm:$0xff]  ;;  %s5464_s5 = sld [smem:[#allocation23_spill]] }
 0xd14   : > { %2757 = vmatpush.bf16.msra.mxu0 %v4303_v60 }
 0xd15   : > { %v2514_v31 = vrot.slane %v2513_v59, 2 }
 0xd17   : > { %v2515_v0 = vadd.f32 %v2514_v31, %v2513_v59  ;;  %v4321_v59 = vld [vmem:[%s5460_s6 + $0x8] sm:$0xff]  ;;  %v4320_v31 = vld [vmem:[%s5460_s6] sm:$0xff]  ;;  %s5468_s6 = sld [smem:[#allocation29_spill]] }
 0xd19   : > { %v2516_v1 = vrot.slane %v2515_v0, 1 }
 0xd1b   : > { %v2517_v4 = vadd.f32 %v2516_v1, %v2515_v0 }
 0xd1d   : > { %v2518_v5 = vmul.f32 %v2517_v4, %v5012_v26  ;;  %v4430_v4 = vld [vmem:[%s5461_s8] ss:$0 sm:$0xff]  ;;  %s5466_s8 = smov 104  }
 0xd1f   : > { %v2524_v6 = vpack.c.bf16 %v2518_v5, %v2518_v5  ;;  %v4429_v5 = vld [vmem:[%s5462_s9] ss:$0 sm:$0xff]  ;;  %s5465_s9 = smov 120  }
 0xd21   : > { %4069 = vmatmul.msk.bf16.vlgmr.msra.gmra.mxu3 %vm1428_vm6, %v2524_v6 }
 0xda4   : > { %v2551_v8 = vpop.f32.mrf.mxu3 }
 0xda5   : > { %v2552_v9 = vadd.f32 %v4060_v2, %v2551_v8 }
 0xda7   : > { %v2555_v3 = vmax.f32 %v2552_v9, 0.0 }
 0xda9   : > { %v2559_v33 = vpack.c.bf16 %v2555_v3, %v2555_v3 }
 0xdab   : > { %4077 = vmatmul.msk.bf16.vlgmr.msrb.gmra.mxu0 %vm1263_vm1, %v2559_v33 }
 0xdac   : > { %v2553_v10 = vpop.f32.mrf.mxu3  ;;  %3072 = vmatpush.bf16.msrb.mxu0 %v4321_v59 }
 0xdb0   : > { %3073 = vmatpush.bf16.msrb.mxu0 %v4320_v31 }
 0xe28   : > { %v2580_v14 = vpop.f32.mrf.mxu0 }
 0xe29   : > { %v2581_v36 = vadd.f32 %v4072_v12, %v2580_v14 }
 0xe2b   : > { %v4078_v26 = vmul.f32 -1.442695, %v2581_v36 }
 0xe2d   : > { %4445 = vpow2.f32 %v4078_v26 }
 0xe30   : > { %v2582_v15 = vpop.f32.mrf.mxu0 }
 0xe31   : > { %v4431_v15 = vld [vmem:[%s5463_s3] ss:$0 sm:$0xff]  ;;  %s5467_s3 = sld [smem:[#allocation19_spill]] }
 0xe33   : > { %v4446_v16 = vpop.eup %4445 }
 0xe34   : > { %v2587_v18 = vadd.f32 1.0, %v4446_v16 }
 0xe36   : > { %4447 = vrcp.f32 %v2587_v18  ;;  %v2599_v23 = vand.u32 2147483648, %v2587_v18  ;;  %v2597_v25 = vand.u32 2147483647, %v2587_v18  ;;  %vm2593_vm4 = vweird.f32 %v2587_v18 }
 0xe37   : > { %v4432_v41 = vld [vmem:[%s5467_s3] ss:$0 sm:$0xff]  ;;  %s4637_s3 = smov 64  }
 0xe38   : > { %v2600_v28 = vor.u32 1.1754944e-38, %v2599_v23  ;;  %vm2598_vm7 = vcmp.eq.f32.partialorder %v2597_v25, 8.507059e+37 }
 0xe3c   : > { %v4448_v19 = vpop.eup %4447 }
 0xe3d   : > { %v2589_v21 = vmul.f32 %v4448_v19, %v2587_v18  ;;  %vm2594_vm3 = vweird.f32 %v4448_v19 }
 0xe3e   : > { %vm2595_vm5 = vmor %vm2593_vm4, %vm2594_vm3 }
 0xe3f   : > { %v2590_v22 = vsub.f32 1.0, %v2589_v21 }
 0xe41   : > { %v2591_v24 = vmul.f32 %v4448_v19, %v2590_v22 }
 0xe43   : > { %v2592_v27 = vadd.f32 %v4448_v19, %v2591_v24 }
 0xe45   : > { %v2596_v29 = vsel %vm2595_vm5, %v4448_v19, %v2592_v27 }
 0xe46   : > { %v2601_v30 = vsel %vm2598_vm7, %v2600_v28, %v2596_v29  ;;  %v5185_v28 = vld [vmem:[%s5464_s5] sm:$0xff]  ;;  %s5470_s5 = sld [smem:[#allocation20_spill]] }
 0xe47   : > { %v2603_v32 = vperm.slane %v2601_v30, 0  ;;  %v3046_v30 = vpack.c.bf16 %v5185_v28, %v5185_v28 }
 0xe49   : > { %v2604_v34 = vmul.f32 %v2603_v32, %v2507_v52  ;;  %v2605_v35 = vmul.f32 %v2603_v32, %v2508_v54 }
 0xe4b   : > { %v2606_v37 = vadd.f32 %v2604_v34, %v5023_v61  ;;  %v2607_v38 = vadd.f32 %v2605_v35, %v5026_v62  ;;  %v4300_v61 = vld [vmem:[%s5455_s15 + $0x8] sm:$0xff]  ;;  %v4299_v62 = vld [vmem:[%s5455_s15] sm:$0xff] }
 0xe4c   : > { %2724 = vmatpush.bf16.msrb.mxu3 %v4300_v61 }
 0xe4d   : > { %v2608_v39 = vpack.c.bf16 %v2607_v38, %v2606_v37 }
 0xe4f   : > { %4091 = vmatmul.msk.bf16.vlgmr.msrb.gmra.mxu1 %vm1428_vm6, %v2608_v39 }
 0xe50   : > { %2725 = vmatpush.bf16.msrb.mxu3 %v4299_v62 }
 0xe54   : > { %3030 = vmatpush.bf16.msra.mxu3 %v4319_v45  ;;  %v4433_v45 = vld [vmem:[%s5468_s6] ss:$0 sm:$0xff]  ;;  %s5469_s6 = sld [smem:[#allocation34_spill]] }
 0xe58   : > { %3031 = vmatpush.bf16.msra.mxu3 %v4318_v20 }
 0xe5c   : > { %3032 = vmatpush.bf16.msra.mxu3 %v4317_v63 }
 0xe60   : > { %3033 = vmatpush.bf16.msra.mxu3 %v4316_v46 }
 0xecc   : > { %v2638_v48 = vpop.f32.mrf.mxu1 }
 0xecd   : > { %v2665_v49 = vadd.f32 %v2664_v47, %v2638_v48 }
 0xecf   : > { %v2673_v52 = vadd.f32 %v4428_v50, %v2665_v49 }
 0xed1   : > { %v5159_v55 = vmax.f32 %v2673_v52, 0.0 }
 0xed4   : > { %v2640_v57 = vpop.f32.mrf.mxu1 }
 0xed5   : > { %v2667_v53 = vadd.f32 %v2666_v51, %v2640_v57 }
 0xed7   : > { %v2674_v54 = vadd.f32 %v4428_v50, %v2667_v53 }
 0xed9   : > { %v5161_v56 = vmax.f32 %v2674_v54, 0.0 }
 0xedb   : > { %v5165_v58 = vpack.c.bf16 %v5161_v56, %v5159_v55 }
 0xedd   : > { %4117 = vmatmul.msk.bf16.vlgmr.msrb.gmra.mxu3 %vm2714_vm9, %v5165_v58  ;;  %4171 = vmatmul.msk.bf16.vlgmr.msra.gmra.mxu2 %vm2714_vm9, %v5165_v58 }
 0xeed   : > { %4188 = vmatmul.msk.bf16.vlgmr.msra.gmra.mxu3 %vm2714_vm9, %v5165_v58 }
 0xf60   : > { %v2727_v0 = vpop.f32.mrf.mxu3  ;;  %v2983_v1 = vpop.f32.mrf.mxu2 }
 0xf61   : > { %v2984_v6 = vadd.f32 %v4430_v4, %v2983_v1  ;;  %v2728_v7 = vadd.f32 %v4429_v5, %v2727_v0 }
 0xf63   : > { %v2988_v9 = vpack.c.bf16 %v2984_v6, %v2984_v6  ;;  %4449 = vtanh.f32 %v2728_v7 }
 0xf65   : > { %v3082_v17 = vunpack.c.l.b16 %v2988_v9 }
 0xf68   : > { %v2729_v2 = vpop.f32.mrf.mxu3  ;;  %v2985_v8 = vpop.f32.mrf.mxu2 }
 0xf69   : > { %v2730_v3 = vadd.f32 %v4429_v5, %v2729_v2  ;;  %v2986_v33 = vadd.f32 %v4430_v4, %v2985_v8  ;;  %v4450_v14 = vpop.eup %4449 }
 0xf6b   : > { %4451 = vtanh.f32 %v2730_v3  ;;  %v2989_v10 = vpack.c.bf16 %v2986_v33, %v2986_v33 }
 0xf6d   : > { %v3083_v12 = vunpack.c.l.b16 %v2989_v10 }
 0xf6f   : > { %v3084_v13 = vpack.c.b16 %v3083_v12, %v3082_v17 }
 0xf70   : > { %v3035_v36 = vpop.f32.mrf.mxu3 }
 0xf71   : > { %v4452_v26 = vpop.eup %4451  ;;  %3199 = vrot.lane.b32.xlu0 %v3084_v13, %s5454_s26  ;;  %3144 = vrot.lane.b32.xlu2 %v3084_v13, %s5465_s9  ;;  %v3089_v16 = vsel %vm1490_vm8, %v3084_v13, 0  ;;  %v3036_v19 = vadd.f32 %v4431_v15, %v3035_v36 }
 0xf72   : > { %v2736_v18 = vpack.c.bf16 %v4452_v26, %v4450_v14  ;;  %3098 = vmatpush.bf16.xpose.msrb.mxu2 %v3089_v16 }
 0xf73   : > { %v3040_v22 = vpack.c.bf16 %v3036_v19, %v3036_v19 }
 0xf74   : > { %4122 = vmatmul.msk.bf16.vlgmr.msra.gmra.mxu0 %vm1263_vm1, %v2736_v18 }
 0xf75   : > { %v3119_v25 = vunpack.c.l.b16 %v3040_v22 }
 0xf78   : > { %v3037_v21 = vpop.f32.mrf.mxu3 }
 0xf79   : > { %v3038_v23 = vadd.f32 %v4431_v15, %v3037_v21  ;;  %3254 = vrot.lane.b32.xlu0 %v3084_v13, %s5466_s8 }
 0xf7b   : > { %v3041_v24 = vpack.c.bf16 %v3038_v23, %v3038_v23 }
 0xf7d   : > { %v3120_v27 = vunpack.c.l.b16 %v3041_v24 }
 0xf7f   : > { %v5187_v29 = vpack.c.b16 %v3120_v27, %v3119_v25  ;;  %v4331_v25 = vld [vmem:[%s5469_s6 + $0x18] sm:$0xff] }
 0xf81   : > { %3133 = vmatpush.bf16.msrb.mxu3 %v5187_v29 }
 0xf84   : > { %4197 = vmatmul.msk.bf16.vlgmr.msrb.gmra.mxu0 %vm1428_vm6, %v3046_v30  ;;  %v4330_v30 = vld [vmem:[%s5469_s6 + $0x10] sm:$0xff] }
 0xfcb   : > { %v3145_v32 = vpop.permute.xlu2 %3144 }
 0xfcc   : > { %v3150_v34 = vsel %vm1490_vm8, %v3145_v32, 0  ;;  %v4328_v32 = vld [vmem:[%s5469_s6] sm:$0xff] }
 0xfcd   : > { %3159 = vmatpush.bf16.xpose.msra.mxu0 %v3150_v34 }
 0xfe3   : > { %v3200_v35 = vpop.permute.xlu0 %3199 }
 0xfe4   : > { %v3205_v37 = vsel %vm1490_vm8, %v3200_v35, 0 }
 0xfe5   : > { %3214 = vmatpush.bf16.xpose.msra.mxu2 %v3205_v37 }
 0xfeb   : > { %v3255_v38 = vpop.permute.xlu0 %3254 }
 0xfec   : > { %v3260_v39 = vsel %vm1490_vm8, %v3255_v38, 0 }
 0xfed   : > { %3269 = vmatpush.bf16.xpose.msrb.mxu0 %v3260_v39 }
 0xff1   : > { %v2759_v40 = vpop.f32.mrf.mxu0 }
 0xff2   : > { %v2760_v42 = vadd.f32 %v4432_v41, %v2759_v40 }
 0xff4   : > { %v2764_v43 = vsel %vm2714_vm9, %v2760_v42, -inf }
 0xff9   : > { %v2761_v11 = vpop.f32.mrf.mxu0 }
 0xffa   : > { %v2762_v61 = vadd.f32 %v4432_v41, %v2761_v11 }
 0xffc   : > { %v2765_v62 = vsel %vm2714_vm9, %v2762_v61, -inf }
 0xffd   : > { %v2766_v44 = vmax.f32 %v2764_v43, %v2765_v62 }
 0xfff   : > { %v2767_v20 = vrot.slane %v2766_v44, 4 }
0x1001   : > { %v2768_v63 = vmax.f32 %v2766_v44, %v2767_v20  ;;  %v3075_v46 = vpop.f32.mrf.mxu0 }
0x1002   : > { %v3076_v47 = vadd.f32 %v4433_v45, %v3075_v46 }
0x1003   : > { %v2769_v48 = vrot.slane %v2768_v63, 2 }
0x1004   : > { %v3079_v49 = vpack.c.bf16 %v3076_v47, %v3076_v47 }
0x1005   : > { %v2770_v50 = vmax.f32 %v2768_v63, %v2769_v48 }
0x1006   : > { %v3140_v51 = vunpack.c.l.b16 %v3079_v49  ;;  %4198 = vmatmul.msk.bf16.vlgmr.msrb.gmra.mxu2 %vm1490_vm8, %v3079_v49 }
0x1007   : > { %v2771_v57 = vrot.slane %v2770_v50, 1 }
0x1008   : > { %v3141_v52 = vpack.c.b16 %v3140_v51, %v3140_v51 }
0x1009   : > { %v2772_v53 = vmax.f32 %v2770_v50, %v2771_v57  ;;  %v3077_v54 = vpop.f32.mrf.mxu0 }
0x100a   : > { %3197 = vrot.lane.b32.xlu2 %v3141_v52, %s5454_s26  ;;  %3142 = vrot.lane.b32.xlu1 %v3141_v52, %s5465_s9 }
0x100b   : > { %v2773_v60 = vsub.f32 %v2760_v42, %v2772_v53  ;;  %v2774_v59 = vsub.f32 %v2762_v61, %v2772_v53 }
0x100d   : > { %v2775_v31 = vmul.f32 1.442695, %v2773_v60  ;;  %v2777_v0 = vmul.f32 1.442695, %v2774_v59 }
0x100f   : > { %4453 = vpow2.f32 %v2775_v31 }
0x1010   : > { %4455 = vpow2.f32 %v2777_v0 }
0x1012   : > { %3252 = vrot.lane.b32.xlu1 %v3141_v52, %s5466_s8 }
0x1015   : > { %v4454_v1 = vpop.eup %4453 }
0x1016   : > { %v4456_v4 = vpop.eup %4455  ;;  %v2779_v5 = vsel %vm2714_vm9, %v4454_v1, 0.0 }
0x1017   : > { %v2780_v6 = vsel %vm2714_vm9, %v4456_v4, 0.0 }
0x1018   : > { %v2781_v7 = vadd.f32 %v2780_v6, %v2779_v5 }
0x101a   : > { %v2782_v2 = vrot.slane %v2781_v7, 4 }
0x101c   : > { %v2783_v8 = vadd.f32 %v2782_v2, %v2781_v7 }
0x101e   : > { %v2784_v9 = vrot.slane %v2783_v8, 2 }
0x1020   : > { %v2785_v3 = vadd.f32 %v2784_v9, %v2783_v8 }
0x1022   : > { %v2786_v33 = vrot.slane %v2785_v3, 1 }
0x1024   : > { %v2787_v10 = vadd.f32 %v2786_v33, %v2785_v3 }
0x1026   : > { %4457 = vrcp.f32 %v2787_v10 }
0x102c   : > { %v4458_v17 = vpop.eup %4457 }
0x102d   : > { %v2789_v12 = vmul.f32 %v4458_v17, %v4454_v1  ;;  %v2790_v13 = vmul.f32 %v4458_v17, %v4456_v4 }
0x102f   : > { %v2791_v14 = vmul.f32 %v2789_v12, %v5159_v55  ;;  %v2792_v36 = vmul.f32 %v2790_v13, %v5161_v56 }
0x1031   : > { %v2793_v26 = vsel %vm2714_vm9, %v2791_v14, 0.0  ;;  %v2794_v15 = vsel %vm2714_vm9, %v2792_v36, 0.0  ;;  %v2802_v16 = vmul.f32 %v2791_v14, %v5159_v55  ;;  %v2803_v18 = vmul.f32 %v2792_v36, %v5161_v56  ;;  %v4329_v55 = vld [vmem:[%s5469_s6 + $0x8] sm:$0xff]  ;;  %s5404_s6 = smov 8  }
0x1032   : > { %v2795_v19 = vadd.f32 %v2794_v15, %v2793_v26  ;;  %v4311_v15 = vld [vmem:[%s5470_s5 + $0x38] sm:$0xff] }
0x1033   : > { %v2804_v21 = vsel %vm2714_vm9, %v2802_v16, 0.0  ;;  %v2805_v22 = vsel %vm2714_vm9, %v2803_v18, 0.0  ;;  %2900 = vmatpush.bf16.msra.mxu1 %v4311_v15  ;;  %v4310_v16 = vld [vmem:[%s5470_s5 + $0x30] sm:$0xff]  ;;  %v4309_v18 = vld [vmem:[%s5470_s5 + $0x28] sm:$0xff] }
0x1034   : > { %v2806_v23 = vadd.f32 %v2805_v22, %v2804_v21  ;;  %v2796_v39 = vrot.slane %v2795_v19, 4  ;;  %v4307_v21 = vld [vmem:[%s5470_s5 + $0x18] sm:$0xff]  ;;  %v4306_v22 = vld [vmem:[%s5470_s5 + $0x10] sm:$0xff] }
0x1036   : > { %v2797_v40 = vadd.f32 %v2796_v39, %v2795_v19  ;;  %v2807_v41 = vrot.slane %v2806_v23, 4  ;;  %v4308_v19 = vld [vmem:[%s5470_s5 + $0x20] sm:$0xff] }
0x1037   : > { %2901 = vmatpush.bf16.msra.mxu1 %v4310_v16 }
0x1038   : > { %v2798_v42 = vrot.slane %v2797_v40, 2  ;;  %v2808_v11 = vadd.f32 %v2807_v41, %v2806_v23  ;;  %v4305_v23 = vld [vmem:[%s5470_s5 + $0x8] sm:$0xff] }
0x103a   : > { %v2799_v61 = vadd.f32 %v2798_v42, %v2797_v40  ;;  %v2809_v43 = vrot.slane %v2808_v11, 2 }
0x103b   : > { %2902 = vmatpush.bf16.msra.mxu1 %v4309_v18 }
0x103c   : > { %v2800_v44 = vrot.slane %v2799_v61, 1  ;;  %v2810_v45 = vadd.f32 %v2809_v43, %v2808_v11 }
0x103e   : > { %v5228_v46 = vadd.f32 %v2800_v44, %v2799_v61  ;;  %v2811_v47 = vrot.slane %v2810_v45, 1 }
0x103f   : > { %2903 = vmatpush.bf16.msra.mxu1 %v4308_v19 }
0x1040   : > { %v2812_v49 = vadd.f32 %v2811_v47, %v2810_v45  ;;  %v2813_v50 = vmul.f32 %v5228_v46, %v5228_v46 }
0x1042   : > { %v2814_v51 = vsub.f32 %v2812_v49, %v2813_v50 }
0x1043   : > { %2904 = vmatpush.bf16.msra.mxu1 %v4307_v21 }
0x1044   : > { %v2815_v57 = vmax.f32 %v2814_v51, 0.0 }
0x1046   : > { %v2816_v54 = vadd.f32 1e-07, %v2815_v57 }
0x1047   : > { %2905 = vmatpush.bf16.msra.mxu1 %v4306_v22 }
0x1048   : > { %4459 = vrsqrt.f32 %v2816_v54  ;;  %vm2824_vm10 = vcmp.eq.f32.partialorder %v2816_v54, inf  ;;  %v2827_v36 = vand.u32 2147483648, %v2816_v54  ;;  %vm2826_vm11 = vcmp.eq.f32.partialorder %v2816_v54, 0.0 }
0x104b   : > { %2906 = vmatpush.bf16.msra.mxu1 %v4305_v23 }
0x104e   : > { %v4460_v4 = vpop.eup %4459 }
0x104f   : > { %v2818_v6 = vmul.f32 %v4460_v4, %v2816_v54 }
0x1051   : > { %v2819_v3 = vmul.f32 %v4460_v4, %v2818_v6 }
0x1053   : > { %v2820_v10 = vmul.f32 0.5, %v2819_v3 }
0x1055   : > { %v2821_v17 = vsub.f32 1.5, %v2820_v10 }
0x1057   : > { %v2822_v12 = vmul.f32 %v4460_v4, %v2821_v17 }
0x1059   : > { %v2823_v13 = vmul.f32 %v2822_v12, %v2816_v54 }
0x105b   : > { %v2825_v14 = vsel %vm2824_vm10, %v2816_v54, %v2823_v13 }
0x105c   : > { %v2828_v26 = vsel %vm2826_vm11, %v2827_v36, %v2825_v14 }
0x1064   : > { %v3198_v24 = vpop.permute.xlu2 %3197 }
0x1065   : > { %4202 = vmatmul.msk.bf16.vlgmr.msra.gmra.mxu2 %vm1490_vm8, %v3198_v24  ;;  %v4304_v24 = vld [vmem:[%s5470_s5] sm:$0xff]  ;;  %s5472_s5 = sld [smem:[#allocation35_spill]] }
0x1066   : > { %2907 = vmatpush.bf16.msra.mxu1 %v4304_v24 }
0x106b   : > { %v4434_v54 = vld [vmem:[%s5472_s5] ss:$0 sm:$0xff]  ;;  %s5473_s5 = sld [smem:[#allocation30_spill]] }
0x1071   : > { %v4323_v19 = vld [vmem:[%s5473_s5 + $0x8] sm:$0xff]  ;;  %v4322_v21 = vld [vmem:[%s5473_s5] sm:$0xff]  ;;  %s5479_s5 = sld [smem:[#allocation37_spill]] }
0x1072   : > { %3353 = vmatpush.bf16.msrb.mxu2 %v4323_v19 }
0x1076   : > { %3354 = vmatpush.bf16.msrb.mxu2 %v4322_v21 }
0x107c   : > { %v3143_v27 = vpop.permute.xlu1 %3142 }
0x107d   : > { %4200 = vmatmul.msk.bf16.vlgmr.msra.gmra.mxu0 %vm1490_vm8, %v3143_v27 }
0x107e   : > { %3453 = vmatpush.bf16.msra.mxu0 %v4331_v25 }
0x1082   : > { %3454 = vmatpush.bf16.msra.mxu0 %v4330_v30 }
0x1084   : > { %v3253_v35 = vpop.permute.xlu1 %3252 }
0x1086   : > { %3455 = vmatpush.bf16.msra.mxu0 %v4329_v55 }
0x1089   : > { %v3100_v56 = vpop.f32.mrf.mxu2 }
0x108a   : > { %v3104_v34 = vmul.f32 0.35355338, %v3100_v56  ;;  %3456 = vmatpush.bf16.msra.mxu0 %v4328_v32 }
0x108c   : > { %v3105_v37 = vsel %vm1263_vm1, %v3104_v34, -inf }
0x108d   : > { %4204 = vmatmul.msk.bf16.vlgmr.msrb.gmra.mxu0 %vm1490_vm8, %v3253_v35  ;;  %3106 = vmax.xlane.f32.xlu2 %v3105_v37 }
0x1091   : > { %v3102_v38 = vpop.f32.mrf.mxu2 }
0x109d   : > { %4248 = vmatmul.msk.bf16.vlgmr.msra.gmra.mxu0 %vm2714_vm9, %v5165_v58 }
0x10e8   : > { %v3216_v62 = vpop.f32.mrf.mxu2 }
0x10e9   : > { %v5224_v20 = vmul.f32 0.35355338, %v3216_v62 }
0x10eb   : > { %v3221_v63 = vsel %vm1263_vm1, %v5224_v20, -inf }
0x10ec   : > { %3222 = vmax.xlane.f32.xlu1 %v3221_v63 }
0x10f0   : > { %v3218_v48 = vpop.f32.mrf.mxu2 }
0x10fa   : > { %v3161_v52 = vpop.f32.mrf.mxu0 }
0x10fb   : > { %v3165_v53 = vmul.f32 0.35355338, %v3161_v52 }
0x10fd   : > { %v3166_v60 = vsel %vm1263_vm1, %v3165_v53, -inf }
0x10fe   : > { %3167 = vmax.xlane.f32.xlu0 %v3166_v60 }
0x1100   : > { %v3107_v59 = vpop.xlane.xlu2 %3106 }
0x1101   : > { %v3108_v31 = vsub.f32 %v3104_v34, %v3107_v59 }
0x1102   : > { %v3163_v0 = vpop.f32.mrf.mxu0 }
0x1103   : > { %v3109_v1 = vmul.f32 1.442695, %v3108_v31 }
0x1105   : > { %4461 = vpow2.f32 %v3109_v1 }
0x110a   : > { %v3271_v5 = vpop.f32.mrf.mxu0 }
0x110b   : > { %v4462_v7 = vpop.eup %4461  ;;  %v3275_v2 = vmul.f32 0.35355338, %v3271_v5 }
0x110c   : > { %v3111_v8 = vsel %vm1263_vm1, %v4462_v7, 0.0 }
0x110d   : > { %3112 = vadd.xlane.f32.xlu0 %v3111_v8  ;;  %v3276_v9 = vsel %vm1263_vm1, %v3275_v2, -inf }
0x110e   : > { %3277 = vmax.xlane.f32.xlu2 %v3276_v9 }
0x1112   : > { %v3273_v33 = vpop.f32.mrf.mxu0 }
0x111a   : > { %v3458_v57 = vpop.f32.mrf.mxu0 }
0x111b   : > { %v3459_v1 = vadd.f32 %v4434_v54, %v3458_v57 }
0x111d   : > { %v3463_v5 = vpack.c.bf16 %v3459_v1, %v3459_v1 }
0x111f   : > { %v3542_v8 = vunpack.c.l.b16 %v3463_v5 }
0x1121   : > { %3178 = vrot.lane.b32.xlu0 %v5187_v29, %s5465_s9 }
0x1126   : > { %2830 = vrot.lane.b32.xlu2 %v2828_v26, %s4637_s3  ;;  %s5471_s3 = sld [smem:[#allocation32_spill]] }
0x112c   : > { %v4327_v49 = vld [vmem:[%s5471_s3 + $0x18] sm:$0xff]  ;;  %v4325_v50 = vld [vmem:[%s5471_s3 + $0x8] sm:$0xff]  ;;  %v4324_v51 = vld [vmem:[%s5471_s3] sm:$0xff] }
0x112e   : > { %3233 = vrot.lane.b32.xlu2 %v5187_v29, %s5454_s26 }
0x115f   : > { %v3223_v25 = vpop.xlane.xlu1 %3222 }
0x1160   : > { %v3224_v55 = vsub.f32 %v5224_v20, %v3223_v25 }
0x1162   : > { %v3225_v56 = vmul.f32 1.442695, %v3224_v55 }
0x1171   : > { %v3168_v27 = vpop.xlane.xlu0 %3167 }
0x1172   : > { %v3169_v30 = vsub.f32 %v3165_v53, %v3168_v27  ;;  %v3460_v53 = vpop.f32.mrf.mxu0 }
0x1173   : > { %v3461_v59 = vadd.f32 %v4434_v54, %v3460_v53 }
0x1174   : > { %v3170_v32 = vmul.f32 1.442695, %v3169_v30 }
0x1175   : > { %v3464_v4 = vpack.c.bf16 %v3461_v59, %v3461_v59 }
0x1176   : > { %4463 = vpow2.f32 %v3170_v32 }
0x1177   : > { %4465 = vpow2.f32 %v3225_v56 }
0x117c   : > { %v4464_v34 = vpop.eup %4463 }
0x117d   : > { %v3172_v35 = vsel %vm1263_vm1, %v4464_v34, 0.0  ;;  %v4466_v39 = vpop.eup %4465 }
0x117e   : > { %3173 = vadd.xlane.f32.xlu1 %v3172_v35  ;;  %v3227_v42 = vsel %vm1263_vm1, %v4466_v39, 0.0 }
0x1180   : > { %v3113_v37 = vpop.xlane.xlu0 %3112 }
0x1181   : > { %4467 = vrcp.f32 %v3113_v37  ;;  %v3278_v38 = vpop.xlane.xlu2 %3277 }
0x1182   : > { %v3279_v40 = vsub.f32 %v3275_v2, %v3278_v38 }
0x1184   : > { %v3280_v41 = vmul.f32 1.442695, %v3279_v40 }
0x1186   : > { %4469 = vpow2.f32 %v3280_v41  ;;  %3228 = vadd.xlane.f32.xlu1 %v3227_v42 }
0x1187   : > { %v4468_v11 = vpop.eup %4467 }
0x1188   : > { %v3115_v61 = vmul.f32 %v4468_v11, %v4462_v7  ;;  %v3543_v7 = vunpack.c.l.b16 %v3464_v4 }
0x1189   : > { %v2831_v43 = vpop.permute.xlu2 %2830 }
0x118a   : > { %v3116_v62 = vpack.c.bf16 %v3115_v61, %v3115_v61  ;;  %v2833_v44 = vsel %vm2714_vm9, %v5228_v46, %v2831_v43  ;;  %v4326_v46 = vld [vmem:[%s5471_s3 + $0x10] sm:$0xff]  ;;  %v5262_v3 = vpack.c.b16 %v3543_v7, %v3542_v8  ;;  %s5474_s3 = sld [smem:[#allocation33_spill]] }
0x118b   : > { %v2850_v45 = vpack.c.bf16 %v2833_v44, %v2833_v44 }
0x118c   : > { %v4470_v20 = vpop.eup %4469  ;;  %4199 = vmatmul.msk.bf16.vlgmr.msrb.gmra.mxu3 %vm1263_vm1, %v3116_v62 }
0x118d   : > { %2908 = vmatmul.bf16.vlgmr.msra.gmra.mxu1 %v2850_v45  ;;  %v3282_v63 = vsel %vm1263_vm1, %v4470_v20, 0.0 }
0x118e   : > { %3283 = vadd.xlane.f32.xlu1 %v3282_v63 }
0x1190   : > { %v4435_v24 = vld [vmem:[%s5474_s3] ss:$0 sm:$0xff]  ;;  %s5477_s3 = sld [smem:[#allocation36_spill]] }
0x1191   : > { %v3234_v47 = vpop.permute.xlu2 %3233 }
0x1192   : > { %3246 = vmatpush.bf16.msra.mxu3 %v3234_v47 }
0x1193   : > { %v3179_v48 = vpop.permute.xlu0 %3178 }
0x1194   : > { %3191 = vmatpush.bf16.msrb.mxu1 %v3179_v48 }
0x1196   : > { %3401 = vmatpush.bf16.msrb.mxu3 %v4327_v49  ;;  %v4333_v49 = vld [vmem:[%s5477_s3 + $0x8] sm:$0xff] }
0x119a   : > { %3402 = vmatpush.bf16.msrb.mxu3 %v4326_v46  ;;  %v4332_v46 = vld [vmem:[%s5477_s3] sm:$0xff] }
0x119e   : > { %3403 = vmatpush.bf16.msrb.mxu3 %v4325_v50 }
0x11a2   : > { %3404 = vmatpush.bf16.msrb.mxu3 %v4324_v51 }
0x11a7   : > { %3288 = vrot.lane.b32.xlu1 %v5187_v29, %s5466_s8 }
0x11f1   : > { %v3174_v52 = vpop.xlane.xlu1 %3173 }
0x11f2   : > { %4471 = vrcp.f32 %v3174_v52 }
0x11f8   : > { %v4472_v60 = vpop.eup %4471 }
0x11f9   : > { %v3176_v31 = vmul.f32 %v4472_v60, %v4464_v34  ;;  %v3229_v0 = vpop.xlane.xlu1 %3228  ;;  %v4437_v60 = vld [vmem:[%s5479_s5] ss:$0 sm:$0xff]  ;;  %s5482_s5 = smov 8  }
0x11fa   : > { %4473 = vrcp.f32 %v3229_v0 }
0x11fb   : > { %v3177_v29 = vpack.c.bf16 %v3176_v31, %v3176_v31 }
0x11fd   : > { %4201 = vmatmul.msk.bf16.vlgmr.msrb.gmra.mxu1 %vm1263_vm1, %v3177_v29 }
0x1200   : > { %v4474_v6 = vpop.eup %4473 }
0x1201   : > { %v3231_v2 = vmul.f32 %v4474_v6, %v4466_v39  ;;  %v3284_v10 = vpop.xlane.xlu1 %3283 }
0x1202   : > { %4475 = vrcp.f32 %v3284_v10 }
0x1203   : > { %v3232_v9 = vpack.c.bf16 %v3231_v2, %v3231_v2 }
0x1205   : > { %4203 = vmatmul.msk.bf16.vlgmr.msra.gmra.mxu3 %vm1263_vm1, %v3232_v9 }
0x1206   : > { %3556 = vmatpush.bf16.msra.mxu3 %v5262_v3 }
0x1208   : > { %v4476_v13 = vpop.eup %4475 }
0x1209   : > { %v3286_v14 = vmul.f32 %v4476_v13, %v4470_v20 }
0x120a   : > { %v5266_v33 = vpop.f32.mrf.mxu1 }
0x120b   : > { %v3287_v15 = vpack.c.bf16 %v3286_v14, %v3286_v14 }
0x120f   : > { %v3135_v17 = vpop.f32.mrf.mxu3 }
0x1212   : > { %v2911_v12 = vpop.f32.mrf.mxu1 }
0x1215   : > { %4231 = vmatmul.msk.bf16.vlgmr.msrb.gmra.mxu3 %vm2714_vm9, %v5165_v58 }
0x1217   : > { %v3137_v36 = vpop.f32.mrf.mxu3 }
0x1219   : > { %v3289_v26 = vpop.permute.xlu1 %3288 }
0x121a   : > { %3301 = vmatpush.bf16.msra.mxu1 %v3289_v26 }
0x121d   : > { %4205 = vmatmul.msk.bf16.vlgmr.msra.gmra.mxu1 %vm1263_vm1, %v3287_v15 }
0x121e   : > { %3495 = vmatpush.bf16.msrb.mxu1 %v4333_v49 }
0x1222   : > { %3496 = vmatpush.bf16.msrb.mxu1 %v4332_v46 }
0x127a   : > { %v3193_v16 = vpop.f32.mrf.mxu1 }
0x127b   : > { %3308 = vrot.lane.b32.xlu0 %v3193_v16, %s5404_s6  ;;  %s5478_s6 = sld [smem:[#allocation31_spill]] }
0x1281   : > { %v4436_v50 = vld [vmem:[%s5478_s6] ss:$0 sm:$0xff]  ;;  %s5480_s6 = sld [smem:[#allocation21_spill]] }
0x1282   : > { %v3195_v18 = vpop.f32.mrf.mxu1 }
0x1288   : > { %v3248_v22 = vpop.f32.mrf.mxu3 }
0x1289   : > { %3312 = vrot.lane.b32.xlu2 %v3248_v22, %s5475_s10 }
0x1290   : > { %v3250_v58 = vpop.f32.mrf.mxu3 }
0x1298   : > { %v3406_v23 = vpop.f32.mrf.mxu3 }
0x1299   : > { %v3407_v27 = vadd.f32 %v4435_v24, %v3406_v23 }
0x129a   : > { %v3303_v25 = vpop.f32.mrf.mxu1 }
0x129b   : > { %3316 = vrot.lane.b32.xlu0 %v3303_v25, %s5476_s13  ;;  %v3411_v55 = vpack.c.bf16 %v3407_v27, %v3407_v27 }
0x129d   : > { %v3505_v35 = vunpack.c.l.b16 %v3411_v55 }
0x12a0   : > { %v3408_v30 = vpop.f32.mrf.mxu3 }
0x12a1   : > { %v3409_v32 = vadd.f32 %v4435_v24, %v3408_v30 }
0x12a2   : > { %v3305_v56 = vpop.f32.mrf.mxu1 }
0x12a3   : > { %v3412_v34 = vpack.c.bf16 %v3409_v32, %v3409_v32 }
0x12a5   : > { %v3506_v37 = vunpack.c.l.b16 %v3412_v34 }
0x12a7   : > { %v3507_v38 = vpack.c.b16 %v3506_v37, %v3505_v35 }
0x12a9   : > { %3622 = vrot.lane.b32.xlu0 %v3507_v38, %s5454_s26  ;;  %3567 = vrot.lane.b32.xlu2 %v3507_v38, %s5465_s9  ;;  %v3512_v39 = vsel %vm1490_vm8, %v3507_v38, 0 }
0x12aa   : > { %3521 = vmatpush.bf16.xpose.msra.mxu2 %v3512_v39 }
0x12b1   : > { %3677 = vrot.lane.b32.xlu0 %v3507_v38, %s5466_s8 }
0x12e3   : > { %v3313_v40 = vpop.permute.xlu2 %3312 }
0x12ed   : > { %v3309_v11 = vpop.permute.xlu0 %3308 }
0x12ee   : > { %v3319_v61 = vsel %vm1490_vm8, %v3135_v17, %v3309_v11 }
0x12ef   : > { %v3320_v62 = vsel %vm1263_vm1, %v3319_v61, %v3313_v40 }
0x1303   : > { %v3568_v41 = vpop.permute.xlu2 %3567 }
0x1304   : > { %v3573_v42 = vsel %vm1490_vm8, %v3568_v41, 0 }
0x1305   : > { %3582 = vmatpush.bf16.xpose.msrb.mxu0 %v3573_v42 }
0x130d   : > { %v3317_v43 = vpop.permute.xlu0 %3316 }
0x130e   : > { %v3322_v44 = vsel %vm3321_vm12, %v3320_v62, %v3317_v43 }
0x130f   : > { %v3327_v45 = vpack.c.bf16 %v3322_v44, %v3322_v44 }
0x1311   : > { %4214 = vmatmul.msk.bf16.vlgmr.msrb.gmra.mxu2 %vm1428_vm6, %v3327_v45 }
0x131b   : > { %v3623_v20 = vpop.permute.xlu0 %3622 }
0x131c   : > { %v3628_v63 = vsel %vm1490_vm8, %v3623_v20, 0 }
0x131d   : > { %3637 = vmatpush.bf16.xpose.msrb.mxu2 %v3628_v63  ;;  %v2851_v63 = vld [vmem:[%s5480_s6] sm:$0x1] }
0x1323   : > { %v3678_v47 = vpop.permute.xlu0 %3677 }
0x1324   : > { %v3683_v48 = vsel %vm1490_vm8, %v3678_v47, 0  ;;  %v2910_v47 = vadd.f32 %v5266_v33, %v2851_v63 }
0x1325   : > { %3692 = vmatpush.bf16.xpose.msra.mxu0 %v3683_v48 }
0x1394   : > { %v3356_v51 = vpop.f32.mrf.mxu2 }
0x1395   : > { %v3357_v57 = vadd.f32 %v4436_v50, %v3356_v51 }
0x1397   : > { %v3360_v52 = vadd.f32 %v3357_v57, %v5185_v28 }
0x1399   : > { %v3469_v53 = vpack.c.bf16 %v3360_v52, %v3360_v52 }
0x139b   : > { %4257 = vmatmul.msk.bf16.vlgmr.msrb.gmra.mxu1 %vm1428_vm6, %v3469_v53 }
0x139c   : > { %v3358_v54 = vpop.f32.mrf.mxu2 }
0x1418   : > { %v3498_v59 = vpop.f32.mrf.mxu1 }
0x1419   : > { %v3499_v31 = vadd.f32 %v4437_v60, %v3498_v59 }
0x141b   : > { %v3502_v0 = vpack.c.bf16 %v3499_v31, %v3499_v31 }
0x141d   : > { %v3563_v1 = vunpack.c.l.b16 %v3502_v0  ;;  %4258 = vmatmul.msk.bf16.vlgmr.msra.gmra.mxu2 %vm1490_vm8, %v3502_v0 }
0x141f   : > { %v3564_v29 = vpack.c.b16 %v3563_v1, %v3563_v1 }
0x1420   : > { %v3500_v4 = vpop.f32.mrf.mxu1 }
0x1421   : > { %3620 = vrot.lane.b32.xlu1 %v3564_v29, %s5454_s26  ;;  %3565 = vrot.lane.b32.xlu2 %v3564_v29, %s5465_s9 }
0x1429   : > { %3675 = vrot.lane.b32.xlu2 %v3564_v29, %s5466_s8 }
0x147b   : > { %v3566_v28 = vpop.permute.xlu2 %3565 }
0x147c   : > { %4260 = vmatmul.msk.bf16.vlgmr.msrb.gmra.mxu0 %vm1490_vm8, %v3566_v28 }
0x1483   : > { %v3676_v5 = vpop.permute.xlu2 %3675 }
0x148c   : > { %4264 = vmatmul.msk.bf16.vlgmr.msra.gmra.mxu0 %vm1490_vm8, %v3676_v5 }
0x1493   : > { %v3621_v6 = vpop.permute.xlu1 %3620 }
0x1494   : > { %4262 = vmatmul.msk.bf16.vlgmr.msrb.gmra.mxu2 %vm1490_vm8, %v3621_v6 }
0x14a0   : > { %v3523_v7 = vpop.f32.mrf.mxu2 }
0x14a1   : > { %v3527_v2 = vmul.f32 0.35355338, %v3523_v7 }
0x14a3   : > { %v3528_v8 = vsel %vm1263_vm1, %v3527_v2, -inf }
0x14a4   : > { %3529 = vmax.xlane.f32.xlu1 %v3528_v8 }
0x14a8   : > { %v3525_v9 = vpop.f32.mrf.mxu2 }
0x14f9   : > { %v3584_v10 = vpop.f32.mrf.mxu0 }
0x14fa   : > { %v3588_v17 = vmul.f32 0.35355338, %v3584_v10 }
0x14fc   : > { %v3589_v12 = vsel %vm1263_vm1, %v3588_v17, -inf }
0x14fd   : > { %3590 = vmax.xlane.f32.xlu0 %v3589_v12 }
0x1501   : > { %v3586_v13 = vpop.f32.mrf.mxu0 }
0x1509   : > { %v3694_v14 = vpop.f32.mrf.mxu0 }
0x150a   : > { %v3698_v36 = vmul.f32 0.35355338, %v3694_v14 }
0x150c   : > { %v3699_v26 = vsel %vm1263_vm1, %v3698_v36, -inf }
0x150d   : > { %3700 = vmax.xlane.f32.xlu1 %v3699_v26 }
0x1511   : > { %v3696_v15 = vpop.f32.mrf.mxu0 }
0x1517   : > { %v3530_v16 = vpop.xlane.xlu1 %3529  ;;  %v3639_v18 = vpop.f32.mrf.mxu2 }
0x1518   : > { %v3531_v19 = vsub.f32 %v3527_v2, %v3530_v16  ;;  %v3643_v21 = vmul.f32 0.35355338, %v3639_v18 }
0x151a   : > { %v3532_v22 = vmul.f32 1.442695, %v3531_v19  ;;  %v3644_v58 = vsel %vm1263_vm1, %v3643_v21, -inf }
0x151b   : > { %3645 = vmax.xlane.f32.xlu2 %v3644_v58  ;;  %v4335_v58 = vld [vmem:[%s5443_s4 + $0x8] sm:$0xff] }
0x151c   : > { %4477 = vpow2.f32 %v3532_v22  ;;  %3775 = vmatpush.bf16.msra.mxu2 %v4335_v58 }
0x151f   : > { %v3641_v23 = vpop.f32.mrf.mxu2 }
0x1520   : > { %v4334_v23 = vld [vmem:[%s5443_s4] sm:$0xff]  ;;  %s4515_s4 = scalar_lea.hbm %s4842_s20, 2 }
0x1521   : > { %3776 = vmatpush.bf16.msra.mxu2 %v4334_v23 }
0x1522   : > { %v4478_v24 = vpop.eup %4477 }
0x1523   : > { %v3534_v25 = vsel %vm1263_vm1, %v4478_v24, 0.0 }
0x1524   : > { %3535 = vadd.xlane.f32.xlu0 %v3534_v25 }
0x1526   : > { %3601 = vrot.lane.b32.xlu1 %v5262_v3, %s5465_s9  ;;  %s5481_s9 = sld [smem:[#allocation22_spill]] }
0x152c   : > { %v2913_v48 = vld [vmem:[%s5481_s9] sm:$0x3] }
0x152d   : > { %v2914_v49 = vmul.f32 %v2913_v48, %v2910_v47  ;;  %v2916_v46 = vrot.slane %v2913_v48, 1 }
0x152f   : > { %v2918_v50 = vadd.f32 %v2916_v46, %v2914_v49 }
0x1531   : > { %v2919_v51 = vmul.f32 %v2918_v50, %v2918_v50 }
0x1533   : > { %v2921_v57 = vsel %vm2920_vm13, %v2919_v51, 0.0 }
0x1570   : > { %v3591_v27 = vpop.xlane.xlu0 %3590 }
0x1571   : > { %v3592_v30 = vsub.f32 %v3588_v17, %v3591_v27 }
0x1573   : > { %v3593_v55 = vmul.f32 1.442695, %v3592_v30 }
0x1575   : > { %4479 = vpow2.f32 %v3593_v55 }
0x157b   : > { %v4480_v32 = vpop.eup %4479 }
0x157c   : > { %v3595_v56 = vsel %vm1263_vm1, %v4480_v32, 0.0 }
0x157d   : > { %3596 = vadd.xlane.f32.xlu2 %v3595_v56 }
0x1580   : > { %v3701_v34 = vpop.xlane.xlu1 %3700 }
0x1581   : > { %v3702_v35 = vsub.f32 %v3698_v36, %v3701_v34 }
0x1583   : > { %v3703_v37 = vmul.f32 1.442695, %v3702_v35 }
0x1585   : > { %4481 = vpow2.f32 %v3703_v37 }
0x158b   : > { %v4482_v38 = vpop.eup %4481 }
0x158c   : > { %v3705_v39 = vsel %vm1263_vm1, %v4482_v38, 0.0 }
0x158d   : > { %3706 = vadd.xlane.f32.xlu2 %v3705_v39 }
0x158e   : > { %v3646_v40 = vpop.xlane.xlu2 %3645 }
0x158f   : > { %v3647_v41 = vsub.f32 %v3643_v21, %v3646_v40 }
0x1591   : > { %v3648_v42 = vmul.f32 1.442695, %v3647_v41 }
0x1593   : > { %4483 = vpow2.f32 %v3648_v42 }
0x1597   : > { %v3536_v11 = vpop.xlane.xlu0 %3535 }
0x1598   : > { %4485 = vrcp.f32 %v3536_v11  ;;  %v3602_v61 = vpop.permute.xlu1 %3601 }
0x1599   : > { %v4484_v43 = vpop.eup %4483  ;;  %3614 = vmatpush.bf16.msra.mxu1 %v3602_v61 }
0x159a   : > { %v3650_v62 = vsel %vm1263_vm1, %v4484_v43, 0.0 }
0x159b   : > { %3651 = vadd.xlane.f32.xlu0 %v3650_v62 }
0x159e   : > { %v4486_v44 = vpop.eup %4485 }
0x159f   : > { %v3538_v45 = vmul.f32 %v4486_v44, %v4478_v24 }
0x15a1   : > { %v3539_v20 = vpack.c.bf16 %v3538_v45, %v3538_v45 }
0x15a3   : > { %4259 = vmatmul.msk.bf16.vlgmr.msra.gmra.mxu3 %vm1263_vm1, %v3539_v20 }
0x15a5   : > { %3711 = vrot.lane.b32.xlu2 %v5262_v3, %s5466_s8 }
0x15af   : > { %3656 = vrot.lane.b32.xlu0 %v5262_v3, %s5454_s26  ;;  %s5324_s26 = sand.u32 1, %s4581_s1  }
0x15b0   : > { %s1206_s8 = scalar_lea.vmem [#allocation2], %s5324_s26  ;;  %s3784_s9 = scalar_lea.sflag [#allocation3], %s5324_s26 }
0x15ce   : > { %2922 = vadd.xlane.f32.xlu2 %v2921_v57 }
0x15f0   : > { %v3597_v52 = vpop.xlane.xlu2 %3596 }
0x15f1   : > { %4487 = vrcp.f32 %v3597_v52 }
0x15f7   : > { %v4488_v53 = vpop.eup %4487 }
0x15f8   : > { %v3599_v54 = vmul.f32 %v4488_v53, %v4480_v32 }
0x15fa   : > { %v3600_v60 = vpack.c.bf16 %v3599_v54, %v3599_v54 }
0x15fc   : > { %4261 = vmatmul.msk.bf16.vlgmr.msra.gmra.mxu1 %vm1263_vm1, %v3600_v60 }
0x1600   : > { %v3707_v3 = vpop.xlane.xlu2 %3706 }
0x1601   : > { %4489 = vrcp.f32 %v3707_v3 }
0x1607   : > { %v4490_v59 = vpop.eup %4489 }
0x1608   : > { %v3709_v33 = vmul.f32 %v4490_v59, %v4482_v38  ;;  %v3712_v31 = vpop.permute.xlu2 %3711 }
0x1609   : > { %3724 = vmatpush.bf16.msrb.mxu1 %v3712_v31 }
0x160a   : > { %v3710_v0 = vpack.c.bf16 %v3709_v33, %v3709_v33 }
0x160c   : > { %4265 = vmatmul.msk.bf16.vlgmr.msrb.gmra.mxu1 %vm1263_vm1, %v3710_v0 }
0x160e   : > { %v3652_v1 = vpop.xlane.xlu0 %3651 }
0x160f   : > { %4491 = vrcp.f32 %v3652_v1 }
0x1615   : > { %v4492_v29 = vpop.eup %4491 }
0x1616   : > { %v3654_v4 = vmul.f32 %v4492_v29, %v4484_v43 }
0x1618   : > { %v3655_v5 = vpack.c.bf16 %v3654_v4, %v3654_v4 }
0x1621   : > { %v3657_v28 = vpop.permute.xlu0 %3656 }
0x1622   : > { %3669 = vmatpush.bf16.msrb.mxu3 %v3657_v28 }
0x1625   : > { %4263 = vmatmul.msk.bf16.vlgmr.msrb.gmra.mxu3 %vm1263_vm1, %v3655_v5 }
0x1626   : > { %v3558_v6 = vpop.f32.mrf.mxu3 }
0x162e   : > { %v3560_v7 = vpop.f32.mrf.mxu3 }
0x1641   : > { %v2923_v2 = vpop.xlane.xlu2 %2922 }
0x1642   : > { %v2924_v8 = vmax.f32 %v2923_v2, 1e-24 }
0x1644   : > { %4493 = vrsqrt.f32 %v2924_v8  ;;  %vm2931_vm15 = vweird.f32 %v2924_v8 }
0x164a   : > { %v4494_v9 = vpop.eup %4493 }
0x164b   : > { %v2926_v10 = vmul.f32 %v4494_v9, %v2924_v8  ;;  %vm2932_vm14 = vweird.f32 %v4494_v9 }
0x164c   : > { %vm2933_vm0 = vmor %vm2931_vm15, %vm2932_vm14 }
0x164d   : > { %v2927_v17 = vmul.f32 %v4494_v9, %v2926_v10 }
0x164f   : > { %v2928_v12 = vmul.f32 0.5, %v2927_v17 }
0x1651   : > { %v2929_v13 = vsub.f32 1.5, %v2928_v12 }
0x1653   : > { %v2930_v14 = vmul.f32 %v4494_v9, %v2929_v13 }
0x1655   : > { %v2934_v36 = vsel %vm2933_vm0, %v4494_v9, %v2930_v14 }
0x1656   : > { %v2935_v26 = vmul.f32 %v2934_v36, %v2918_v50 }
0x1658   : > { %2936 = vst.msk [vmem:[%s1206_s8] sm:$0x1] %vm2920_vm13, %v2935_v26 }
0x1679   : > { %v3616_v15 = vpop.f32.mrf.mxu1 }
0x167a   : > { %3731 = vrot.lane.b32.xlu1 %v3616_v15, %s5482_s5 }
0x1681   : > { %v3618_v16 = vpop.f32.mrf.mxu1 }
0x1689   : > { %v3726_v18 = vpop.f32.mrf.mxu1 }
0x168a   : > { %3739 = vrot.lane.b32.xlu1 %v3726_v18, %s5476_s13  ;;  %s3797_s13 = scalar_lea.hbm %s4842_s20, %s4870_s0 }
0x168b   : > { %s3801_s6 = sshll.u32 %s3797_s13, 4  ;;  %s3802_s6 = int_to_ptr.hbm [resolvable:$true] %s3801_s6 }
0x168c   : > { %s4509_s5 = sshra.s32 %s3802_s6, 4  ;;  %s4510_s5 = int_to_ptr.hbm [resolvable:$true] %s4509_s5 }
0x168d   : > { %s4511_s3 = scalar_lea.hbm %s4510_s5, 1  ;;  %p4516_p0 = scmp.lt.s32.totalorder %s4510_s5, %s4842_s20 }
0x168e   : > { %p4512_p11 = scmp.ne.s32.totalorder %s4510_s5, %s4511_s3  ;;  %p4517_p1 = scmp.lt.s32.totalorder %s4515_s4, %s4511_s3 }
0x1690   : > { %p4513_p12 = pnand %p4512_p11, %p4887_p5  ;;  %p4518_p2 = por %p4517_p1, %p4516_p0 }
0x1691   : > { %v3728_v19 = vpop.f32.mrf.mxu1 }
0x1692   : > { %p4514_p13 = pneg %p4513_p12 }
0x1694   : > { %p4519_p3 = pnand %p4518_p2, %p4514_p13 }
0x16a8   : > { %v3671_v21 = vpop.f32.mrf.mxu3 }
0x16a9   : > { %3735 = vrot.lane.b32.xlu0 %v3671_v21, %s5475_s10  ;;  %s3799_s10 = sshll.u32 %s1206_s8, 4  ;;  %s3800_s10 = int_to_ptr.vmem [resolvable:$true] %s3799_s10 }
0x16b0   : > { %v3673_v22 = vpop.f32.mrf.mxu3 }
0x16ec   : > { %v3732_v24 = vpop.permute.xlu1 %3731 }
0x16ed   : > { %v3742_v25 = vsel %vm1490_vm8, %v3558_v6, %v3732_v24 }
0x16fc   : > { %v3740_v30 = vpop.permute.xlu1 %3739 }
0x171b   : > { %v3736_v27 = vpop.permute.xlu0 %3735 }
0x171c   : > { %v3743_v55 = vsel %vm1263_vm1, %v3742_v25, %v3736_v27 }
0x171d   : > { %v3744_v32 = vsel %vm3321_vm12, %v3743_v55, %v3740_v30 }
0x171e   : > { %v3749_v56 = vpack.c.bf16 %v3744_v32, %v3744_v32 }
0x1720   : > { %4274 = vmatmul.msk.bf16.vlgmr.msra.gmra.mxu2 %vm1428_vm6, %v3749_v56 }
0x1721   : > { %4522 = shalt.err (!%p4519_p3)
}
0x1722   : > { %4336 = dma.vmem_to_hbm [thread:$0]  (%p4887_p5), %s3800_s10, 16, %s3802_s6, %s3784_s9   ;;  %v4438_v34 = vld [vmem:[%s4837_s12] ss:$0 sm:$0xff] }
0x1723   : > { %s4276_s8 = sshll.u32 %s4870_s0, 3  ;;  %s3947_s13 = sshll.u32 %s5324_s26, 3 }
0x1724   : > { %s3811_s14 = scalar_lea.hbm %s4847_s27, %s4276_s8  ;;  %s1213_s15 = scalar_lea.vmem [#allocation4], %s3947_s13 }
0x1725   : > { %s3813_s4 = sshll.u32 %s1213_s15, 4  ;;  %s3815_s3 = sshll.u32 %s3811_s14, 4  ;;  %s3814_s4 = int_to_ptr.vmem [resolvable:$true] %s3813_s4  ;;  %s3816_s3 = int_to_ptr.hbm [resolvable:$true] %s3815_s3 }
0x1726   : > { %s3788_s5 = scalar_lea.sflag [#allocation5], %s5324_s26  ;;  %s4537_s16 = sshra.s32 %s3816_s3, 4  ;;  %s4538_s16 = int_to_ptr.hbm [resolvable:$true] %s4537_s16 }
0x1727   : > { %s4539_s10 = scalar_lea.hbm %s4538_s16, 8  ;;  %s4543_s0 = scalar_lea.hbm %s4847_s27, 16 }
0x1728   : > { %p4540_p4 = scmp.ne.s32.totalorder %s4538_s16, %s4539_s10  ;;  %p4544_p9 = scmp.lt.s32.totalorder %s4538_s16, %s4847_s27 }
0x1729   : > { %p4545_p10 = scmp.lt.s32.totalorder %s4543_s0, %s4539_s10 }
0x172a   : > { %p4541_p7 = pnand %p4540_p4, %p4887_p5 }
0x172b   : > { %p4546_p11 = por %p4545_p10, %p4544_p9 }
0x172c   : > { %p4542_p8 = pneg %p4541_p7 }
0x172e   : > { %p4547_p12 = pnand %p4546_p11, %p4542_p8 }
0x17a3   : > { %v3778_v35 = vpop.f32.mrf.mxu2 }
0x17a4   : > { %v3779_v37 = vadd.f32 %v4438_v34, %v3778_v35 }
0x17a6   : > { %3782 = vst.msk [vmem:[%s1213_s15] sm:$0xff] %vm1428_vm6, %v3779_v37 }
0x17a7   : > { %4550 = shalt.err (!%p4547_p12)
}
0x17a8   : > { %4337 = dma.vmem_to_hbm [thread:$0]  (%p4887_p5), %s3814_s4, 128, %s3816_s3, %s3788_s5  }
0x17ab   : > { %v3780_v38 = vpop.f32.mrf.mxu2 }
0x17ac PF: > { %p4347_p13 = scmp.ge.s32.totalorder %s4589_s7, 2  ;;  %s3827_s14 = sand.u32 1, %s4577_s28  }
0x17ad   : > { %s3828_s15 = scalar_lea.sflag [#allocation3], %s3827_s14 }
0x17ae   : > { %p4341_p0 = pnand %p4347_p13, %p4891_p6 }
0x17b0   : > { %p4342_p1 = pneg %p4341_p0 }
0x17b2   : > { %4568 = dma.done.wait (%p4342_p1), %s3828_s15, 16  }
0x17b3   : > { %4570 = vsyncadd (%p4342_p1), %s3828_s15, 4294967280  ;;  %s3837_s16 = scalar_lea.sflag [#allocation5], %s3827_s14 }
0x17b4   : > { %4572 = dma.done.wait (%p4342_p1), %s3837_s16, 128  }
0x17b5   : > { %4574 = vsyncadd (%p4342_p1), %s3837_s16, 4294967168  ;;  %p95_p5 = scmp.ge.s32.totalorder %s4874_s11, 4   ;;  %s5483_s28 = smov %s4581_s1 }
0x17b6   : > { %s5484_s1 = smov %s4585_s2  ;;  %s5485_s2 = smov %s4885_s18 }
0x17b7   : > { %s5486_s7 = smov %s4874_s11  ;;  %97 = sbr.rel (!%p95_p5) target bundleno = 89 (0x59), region = 279 }
0x17bc   :  { %3843 = vsyncpa [#allocation3], 1 }
0x17bd   :  { %3845 = vsyncpa [#allocation3 + $0x1], 1 }
0x17be   :  { %3846 = vsyncpa [#allocation5], 1 }
0x17bf   :  { %3848 = vsyncpa [#allocation5 + $0x1], 1 }

</bundles_post_ra>
